<compile_context>
chip_gen: v6e
topology: v6e:2x2x1
jax: 0.10.0
libtpu: 0.0.40
codegen_flags: <defaults>
</compile_context>

<pallas_src>
import numpy as np
import jax
import jax.numpy as jnp
from jax import lax
from jax.experimental import pallas as pl
from jax.experimental.pallas import tpu as pltpu


# ---------------------------------------------------------------------------
# Pallas kernel: fused  conv1x1+ReLU -> (folded PixelShuffle) -> conv1x1+ReLU
# for BOTH branches, on one (TM, bnd) row tile.
# ---------------------------------------------------------------------------
def _motion_cond_kernel(x_ref,
                        w64a_ref, b64a_ref, w64b_ref, b64b_ref,
                        w256a_ref, b256a_ref, w256b_ref, b256b_ref,
                        o64_ref, o256_ref):
    x = x_ref[...]                                               # (TM, bnd)

    # branch '64': conv(bnd -> 16*bnd) + ReLU, PixelShuffle(4) folded into the
    # weights, conv(bnd -> 64) + ReLU, written as (TM, 16*64).
    y = jnp.dot(x, w64a_ref[...], preferred_element_type=jnp.float32)
    y = jnp.maximum(y + b64a_ref[...], 0.0)                      # (TM, 16*bnd)
    o = jnp.dot(y, w64b_ref[...], preferred_element_type=jnp.float32)
    o64_ref[...] = jnp.maximum(o + b64b_ref[...], 0.0).astype(o64_ref.dtype)

    # branch '256': conv(bnd -> 4*bnd) + ReLU, PixelShuffle(2) folded into the
    # weights, conv(bnd -> 256) + ReLU, written as (TM, 4*256).
    z = jnp.dot(x, w256a_ref[...], preferred_element_type=jnp.float32)
    z = jnp.maximum(z + b256a_ref[...], 0.0)                     # (TM, 4*bnd)
    o = jnp.dot(z, w256b_ref[...], preferred_element_type=jnp.float32)
    o256_ref[...] = jnp.maximum(o + b256b_ref[...], 0.0).astype(o256_ref.dtype)


# ---------------------------------------------------------------------------
# Trace-time weight preparation (folds PixelShuffle into the weights)
# ---------------------------------------------------------------------------
def _permute_first_conv(w, b, bnd, r):
    """Reorder first conv's output channels from torch's (c, i, j) order to
    (subpixel = i*r + j, c) order so the PixelShuffle becomes a pure reshape."""
    r2 = r * r
    perm = np.arange(bnd * r2).reshape(bnd, r2).T.reshape(-1)    # new[s*bnd+c] = c*r2+s
    return w[:, perm], b[perm].reshape(1, -1)


def _blockdiag_second_conv(w, b, r2):
    """Expand the second conv weight (bnd, cout) into a block-diagonal
    (r2*bnd, r2*cout) matrix so all r2 subpixels come out of one matmul.
    (The r2x FLOP overhead is negligible for small bnd; the op is HBM-bound.)"""
    big_w = jnp.kron(jnp.eye(r2, dtype=w.dtype), w)
    big_b = jnp.tile(b, r2).reshape(1, -1)
    return big_w, big_b


def _choose_tm(rows):
    # 512-row tiles sit near the HBM roofline; for small inputs split into two
    # tiles so the grid stays >= 2 (v7x megacore) without padding waste.
    if rows >= 1024:
        return 512
    half = -(-rows // 2)
    return max(8, ((half + 7) // 8) * 8)


# ---------------------------------------------------------------------------
# MotionCond forward
# ---------------------------------------------------------------------------
def motion_cond_forward(x_nchw, params):
    """x_nchw: (N, bnd, H, W) f32 -> {'64': (N,64,4H,4W), '256': (N,256,2H,2W)}."""
    n, bnd, h, w = x_nchw.shape
    rows = n * h * w

    # Channels-last rows; the input is by far the smallest tensor here.
    x_rows = jnp.transpose(x_nchw, (0, 2, 3, 1)).reshape(rows, bnd)

    # Fold PixelShuffle into the weights at trace time.
    w64a, b64a = _permute_first_conv(params["w64_a"], params["b64_a"], bnd, 4)
    w64b, b64b = _blockdiag_second_conv(params["w64_b"], params["b64_b"], 16)
    w256a, b256a = _permute_first_conv(params["w256_a"], params["b256_a"], bnd, 2)
    w256b, b256b = _blockdiag_second_conv(params["w256_b"], params["b256_b"], 4)

    c64 = 16 * 64      # fused '64' output columns: (subpixel=16, cout=64)
    c256 = 4 * 256     # fused '256' output columns: (subpixel=4, cout=256)

    # Always tile the row axis; pad up to a tile multiple (tail sliced off below).
    tm = _choose_tm(rows)
    padded = ((rows + tm - 1) // tm) * tm
    if padded != rows:
        x_rows = jnp.pad(x_rows, ((0, padded - rows), (0, 0)))

    flops = 2 * padded * (bnd * 16 * bnd + 16 * bnd * c64
                          + bnd * 4 * bnd + 4 * bnd * c256)
    bytes_accessed = 4 * (padded * bnd + padded * (c64 + c256)
                          + 16 * bnd * c64 + 4 * bnd * c256
                          + 20 * bnd * bnd + 20 * bnd + c64 + c256)

    o64, o256 = pl.pallas_call(
        _motion_cond_kernel,
        out_shape=(jax.ShapeDtypeStruct((padded, c64), jnp.float32),
                   jax.ShapeDtypeStruct((padded, c256), jnp.float32)),
        grid_spec=pltpu.PrefetchScalarGridSpec(
            num_scalar_prefetch=0,
            grid=(padded // tm,),
            in_specs=[
                pl.BlockSpec((tm, bnd), lambda i: (i, 0)),            # x tile
                pl.BlockSpec((bnd, 16 * bnd), lambda i: (0, 0)),      # w64 conv1 (permuted)
                pl.BlockSpec((1, 16 * bnd), lambda i: (0, 0)),        # b64 conv1
                pl.BlockSpec((16 * bnd, c64), lambda i: (0, 0)),      # w64 conv2 (block-diag)
                pl.BlockSpec((1, c64), lambda i: (0, 0)),             # b64 conv2
                pl.BlockSpec((bnd, 4 * bnd), lambda i: (0, 0)),       # w256 conv1 (permuted)
                pl.BlockSpec((1, 4 * bnd), lambda i: (0, 0)),         # b256 conv1
                pl.BlockSpec((4 * bnd, c256), lambda i: (0, 0)),      # w256 conv2 (block-diag)
                pl.BlockSpec((1, c256), lambda i: (0, 0)),            # b256 conv2
            ],
            out_specs=[
                pl.BlockSpec((tm, c64), lambda i: (i, 0)),
                pl.BlockSpec((tm, c256), lambda i: (i, 0)),
            ],
        ),
        compiler_params=pltpu.CompilerParams(
            dimension_semantics=("parallel",)),
        cost_estimate=pl.CostEstimate(flops=flops, transcendentals=0,
                                      bytes_accessed=bytes_accessed),
    )(x_rows, w64a, b64a, w64b, b64b, w256a, b256a, w256b, b256b)

    # Single layout transpose per branch: (n,h,w,i,j,c) -> (n,c,h,i,w,j) -> NCHW.
    o64 = o64[:rows].reshape(n, h, w, 4, 4, 64)
    out64 = jnp.transpose(o64, (0, 5, 1, 3, 2, 4)).reshape(n, 64, 4 * h, 4 * w)

    o256 = o256[:rows].reshape(n, h, w, 2, 2, 256)
    out256 = jnp.transpose(o256, (0, 5, 1, 3, 2, 4)).reshape(n, 256, 2 * h, 2 * w)

    return {"64": out64, "256": out256}


# ---------------------------------------------------------------------------
# Plain-JAX reference (mirrors the PyTorch module) for correctness checking
# ---------------------------------------------------------------------------
def motion_cond_reference(x_nchw, params):
    n, bnd, h, w = x_nchw.shape
    hp = lax.Precision.HIGHEST
    x = jnp.transpose(x_nchw, (0, 2, 3, 1))

    def conv_relu(a, wmat, bias):
        return jax.nn.relu(jnp.dot(a, wmat, precision=hp) + bias)

    def pixel_shuffle(a, r):
        nn_, hh, ww, crr = a.shape
        c = crr // (r * r)
        a = a.reshape(nn_, hh, ww, c, r, r)
        a = jnp.transpose(a, (0, 1, 4, 2, 5, 3))
        return a.reshape(nn_, hh * r, ww * r, c)

    y = conv_relu(x, params["w64_a"], params["b64_a"])
    y = pixel_shuffle(y, 4)
    y = conv_relu(y, params["w64_b"], params["b64_b"])
    out64 = jnp.transpose(y, (0, 3, 1, 2))

    z = conv_relu(x, params["w256_a"], params["b256_a"])
    z = pixel_shuffle(z, 2)
    z = conv_relu(z, params["w256_b"], params["b256_b"])
    out256 = jnp.transpose(z, (0, 3, 1, 2))
    return {"64": out64, "256": out256}


def init_params(key, bnd):
    """Deterministic synthetic parameters (shapes match the PyTorch Conv2d layers,
    stored transposed as (Cin, Cout) for channels-last matmul)."""
    ks = jax.random.split(key, 8)

    def w(k, cin, cout):
        return jax.random.normal(k, (cin, cout), jnp.float32) / jnp.sqrt(cin)

    def b(k, cout):
        return jax.random.normal(k, (cout,), jnp.float32) * 0.01

    return {
        "w64_a": w(ks[0], bnd, 16 * bnd), "b64_a": b(ks[1], 16 * bnd),
        "w64_b": w(ks[2], bnd, 64),       "b64_b": b(ks[3], 64),
        "w256_a": w(ks[4], bnd, 4 * bnd), "b256_a": b(ks[5], 4 * bnd),
        "w256_b": w(ks[6], bnd, 256),     "b256_b": b(ks[7], 256),
    }


if __name__ == "__main__":
    key = jax.random.PRNGKey(0)
    k_x, k_p = jax.random.split(key)

    N, BND, H, W = 2, 4, 16, 16
    x = jax.random.normal(k_x, (N, BND, H, W), jnp.float32)
    params = init_params(k_p, BND)

    out = jax.jit(motion_cond_forward)(x, params)
    out = jax.block_until_ready(out)

    assert out["64"].shape == (N, 64, 4 * H, 4 * W), out["64"].shape
    assert out["256"].shape == (N, 256, 2 * H, 2 * W), out["256"].shape
    assert out["64"].dtype == jnp.float32 and out["256"].dtype == jnp.float32

    ref = jax.block_until_ready(jax.jit(motion_cond_reference)(x, params))
    for name in ("64", "256"):
        err = float(jnp.max(jnp.abs(out[name] - ref[name])))
        assert err < 2e-3, (name, err)

    print("KERNEL_OK")
</pallas_src>

<mosaic_0001>
module attributes {stable_mosaic.version = 11 : i64} {
  func.func @_motion_cond_kernel(%arg0: i32, %arg1: memref<256x4xf32, #tpu.memory_space<vmem>>, %arg2: memref<4x64xf32, #tpu.memory_space<vmem>>, %arg3: memref<1x64xf32, #tpu.memory_space<vmem>>, %arg4: memref<64x1024xf32, #tpu.memory_space<vmem>>, %arg5: memref<1x1024xf32, #tpu.memory_space<vmem>>, %arg6: memref<4x16xf32, #tpu.memory_space<vmem>>, %arg7: memref<1x16xf32, #tpu.memory_space<vmem>>, %arg8: memref<16x1024xf32, #tpu.memory_space<vmem>>, %arg9: memref<1x1024xf32, #tpu.memory_space<vmem>>, %arg10: memref<256x1024xf32, #tpu.memory_space<vmem>>, %arg11: memref<256x1024xf32, #tpu.memory_space<vmem>>) attributes {dimension_semantics = [#tpu.dimension_semantics<parallel>], iteration_bounds = array<i64: 2>, scalar_prefetch = 0 : i64, scratch_operands = 0 : i64, tpu.core_type = #tpu.core_type<tc>, window_params = [{transform_indices = @transform_0, window_bounds = array<i64: 256, 4>}, {pipeline_mode = #tpu.pipeline_mode<synchronous>, transform_indices = @transform_1, window_bounds = array<i64: 4, 64>}, {pipeline_mode = #tpu.pipeline_mode<synchronous>, transform_indices = @transform_2, window_bounds = array<i64: 1, 64>}, {pipeline_mode = #tpu.pipeline_mode<synchronous>, transform_indices = @transform_3, window_bounds = array<i64: 64, 1024>}, {pipeline_mode = #tpu.pipeline_mode<synchronous>, transform_indices = @transform_4, window_bounds = array<i64: 1, 1024>}, {pipeline_mode = #tpu.pipeline_mode<synchronous>, transform_indices = @transform_5, window_bounds = array<i64: 4, 16>}, {pipeline_mode = #tpu.pipeline_mode<synchronous>, transform_indices = @transform_6, window_bounds = array<i64: 1, 16>}, {pipeline_mode = #tpu.pipeline_mode<synchronous>, transform_indices = @transform_7, window_bounds = array<i64: 16, 1024>}, {pipeline_mode = #tpu.pipeline_mode<synchronous>, transform_indices = @transform_8, window_bounds = array<i64: 1, 1024>}, {transform_indices = @transform_9, window_bounds = array<i64: 256, 1024>}, {transform_indices = @transform_10, window_bounds = array<i64: 256, 1024>}]} {
    %c0 = arith.constant 0 : index
    %c0_0 = arith.constant 0 : index
    %0 = vector.load %arg1[%c0, %c0_0] : memref<256x4xf32, #tpu.memory_space<vmem>>, vector<256x4xf32>
    %c0_1 = arith.constant 0 : index
    %c0_2 = arith.constant 0 : index
    %1 = vector.load %arg2[%c0_1, %c0_2] : memref<4x64xf32, #tpu.memory_space<vmem>>, vector<4x64xf32>
    %cst = arith.constant dense<0.000000e+00> : vector<256x64xf32>
    %2 = tpu.matmul %0, %1, %cst {dimension_numbers = #tpu.dot_dimension_numbers<[1], [0], [0], [1], [0, 0, 1, 1], [], []>} : vector<256x4xf32>, vector<4x64xf32>, vector<256x64xf32> -> vector<256x64xf32>
    %c0_3 = arith.constant 0 : index
    %c0_4 = arith.constant 0 : index
    %3 = vector.load %arg3[%c0_3, %c0_4] : memref<1x64xf32, #tpu.memory_space<vmem>>, vector<1x64xf32>
    %4 = vector.broadcast %3 : vector<1x64xf32> to vector<256x64xf32>
    %5 = arith.addf %2, %4 : vector<256x64xf32>
    %cst_5 = arith.constant 0.000000e+00 : f32
    %6 = vector.broadcast %cst_5 : f32 to vector<256x64xf32>
    %7 = arith.maximumf %5, %6 : vector<256x64xf32>
    %c0_6 = arith.constant 0 : index
    %c0_7 = arith.constant 0 : index
    %8 = vector.load %arg4[%c0_6, %c0_7] : memref<64x1024xf32, #tpu.memory_space<vmem>>, vector<64x1024xf32>
    %cst_8 = arith.constant dense<0.000000e+00> : vector<256x1024xf32>
    %9 = tpu.matmul %7, %8, %cst_8 {dimension_numbers = #tpu.dot_dimension_numbers<[1], [0], [0], [1], [0, 0, 1, 1], [], []>} : vector<256x64xf32>, vector<64x1024xf32>, vector<256x1024xf32> -> vector<256x1024xf32>
    %c0_9 = arith.constant 0 : index
    %c0_10 = arith.constant 0 : index
    %10 = vector.load %arg5[%c0_9, %c0_10] : memref<1x1024xf32, #tpu.memory_space<vmem>>, vector<1x1024xf32>
    %11 = vector.broadcast %10 : vector<1x1024xf32> to vector<256x1024xf32>
    %12 = arith.addf %9, %11 : vector<256x1024xf32>
    %cst_11 = arith.constant 0.000000e+00 : f32
    %13 = vector.broadcast %cst_11 : f32 to vector<256x1024xf32>
    %14 = arith.maximumf %12, %13 : vector<256x1024xf32>
    %c0_12 = arith.constant 0 : index
    %c0_13 = arith.constant 0 : index
    %15 = vector.load %arg10[%c0_12, %c0_13] : memref<256x1024xf32, #tpu.memory_space<vmem>>, vector<256x1024xf32>
    tpu.vector_store %arg10[%c0_12, %c0_13], %14 {strides = array<i32>} : memref<256x1024xf32, #tpu.memory_space<vmem>>, vector<256x1024xf32>,
    %c0_14 = arith.constant 0 : index
    %c0_15 = arith.constant 0 : index
    %16 = vector.load %arg6[%c0_14, %c0_15] : memref<4x16xf32, #tpu.memory_space<vmem>>, vector<4x16xf32>
    %cst_16 = arith.constant dense<0.000000e+00> : vector<256x16xf32>
    %17 = tpu.matmul %0, %16, %cst_16 {dimension_numbers = #tpu.dot_dimension_numbers<[1], [0], [0], [1], [0, 0, 1, 1], [], []>} : vector<256x4xf32>, vector<4x16xf32>, vector<256x16xf32> -> vector<256x16xf32>
    %c0_17 = arith.constant 0 : index
    %c0_18 = arith.constant 0 : index
    %18 = vector.load %arg7[%c0_17, %c0_18] : memref<1x16xf32, #tpu.memory_space<vmem>>, vector<1x16xf32>
    %19 = vector.broadcast %18 : vector<1x16xf32> to vector<256x16xf32>
    %20 = arith.addf %17, %19 : vector<256x16xf32>
    %cst_19 = arith.constant 0.000000e+00 : f32
    %21 = vector.broadcast %cst_19 : f32 to vector<256x16xf32>
    %22 = arith.maximumf %20, %21 : vector<256x16xf32>
    %c0_20 = arith.constant 0 : index
    %c0_21 = arith.constant 0 : index
    %23 = vector.load %arg8[%c0_20, %c0_21] : memref<16x1024xf32, #tpu.memory_space<vmem>>, vector<16x1024xf32>
    %cst_22 = arith.constant dense<0.000000e+00> : vector<256x1024xf32>
    %24 = tpu.matmul %22, %23, %cst_22 {dimension_numbers = #tpu.dot_dimension_numbers<[1], [0], [0], [1], [0, 0, 1, 1], [], []>} : vector<256x16xf32>, vector<16x1024xf32>, vector<256x1024xf32> -> vector<256x1024xf32>
    %c0_23 = arith.constant 0 : index
    %c0_24 = arith.constant 0 : index
    %25 = vector.load %arg9[%c0_23, %c0_24] : memref<1x1024xf32, #tpu.memory_space<vmem>>, vector<1x1024xf32>
    %26 = vector.broadcast %25 : vector<1x1024xf32> to vector<256x1024xf32>
    %27 = arith.addf %24, %26 : vector<256x1024xf32>
    %cst_25 = arith.constant 0.000000e+00 : f32
    %28 = vector.broadcast %cst_25 : f32 to vector<256x1024xf32>
    %29 = arith.maximumf %27, %28 : vector<256x1024xf32>
    %c0_26 = arith.constant 0 : index
    %c0_27 = arith.constant 0 : index
    %30 = vector.load %arg11[%c0_26, %c0_27] : memref<256x1024xf32, #tpu.memory_space<vmem>>, vector<256x1024xf32>
    tpu.vector_store %arg11[%c0_26, %c0_27], %29 {strides = array<i32>} : memref<256x1024xf32, #tpu.memory_space<vmem>>, vector<256x1024xf32>,
    return
  }
  func.func @transform_0(%arg0: i32) -> (i32, i32) {
    %c0_i32 = arith.constant 0 : i32
    %c0_i32_0 = arith.constant 0 : i32
    return %arg0, %c0_i32 : i32, i32
  }
  func.func @transform_1(%arg0: i32) -> (i32, i32) {
    %c0_i32 = arith.constant 0 : i32
    %c0_i32_0 = arith.constant 0 : i32
    %c0_i32_1 = arith.constant 0 : i32
    return %c0_i32, %c0_i32_0 : i32, i32
  }
  func.func @transform_2(%arg0: i32) -> (i32, i32) {
    %c0_i32 = arith.constant 0 : i32
    %c0_i32_0 = arith.constant 0 : i32
    %c0_i32_1 = arith.constant 0 : i32
    return %c0_i32, %c0_i32_0 : i32, i32
  }
  func.func @transform_3(%arg0: i32) -> (i32, i32) {
    %c0_i32 = arith.constant 0 : i32
    %c0_i32_0 = arith.constant 0 : i32
    %c0_i32_1 = arith.constant 0 : i32
    return %c0_i32, %c0_i32_0 : i32, i32
  }
  func.func @transform_4(%arg0: i32) -> (i32, i32) {
    %c0_i32 = arith.constant 0 : i32
    %c0_i32_0 = arith.constant 0 : i32
    %c0_i32_1 = arith.constant 0 : i32
    return %c0_i32, %c0_i32_0 : i32, i32
  }
  func.func @transform_5(%arg0: i32) -> (i32, i32) {
    %c0_i32 = arith.constant 0 : i32
    %c0_i32_0 = arith.constant 0 : i32
    %c0_i32_1 = arith.constant 0 : i32
    return %c0_i32, %c0_i32_0 : i32, i32
  }
  func.func @transform_6(%arg0: i32) -> (i32, i32) {
    %c0_i32 = arith.constant 0 : i32
    %c0_i32_0 = arith.constant 0 : i32
    %c0_i32_1 = arith.constant 0 : i32
    return %c0_i32, %c0_i32_0 : i32, i32
  }
  func.func @transform_7(%arg0: i32) -> (i32, i32) {
    %c0_i32 = arith.constant 0 : i32
    %c0_i32_0 = arith.constant 0 : i32
    %c0_i32_1 = arith.constant 0 : i32
    return %c0_i32, %c0_i32_0 : i32, i32
  }
  func.func @transform_8(%arg0: i32) -> (i32, i32) {
    %c0_i32 = arith.constant 0 : i32
    %c0_i32_0 = arith.constant 0 : i32
    %c0_i32_1 = arith.constant 0 : i32
    return %c0_i32, %c0_i32_0 : i32, i32
  }
  func.func @transform_9(%arg0: i32) -> (i32, i32) {
    %c0_i32 = arith.constant 0 : i32
    %c0_i32_0 = arith.constant 0 : i32
    return %arg0, %c0_i32 : i32, i32
  }
  func.func @transform_10(%arg0: i32) -> (i32, i32) {
    %c0_i32 = arith.constant 0 : i32
    %c0_i32_0 = arith.constant 0 : i32
    return %arg0, %c0_i32 : i32, i32
  }
}

</mosaic_0001>

<bundles_post_ra>
// kernel: tile.13
= control target key start
LH: loop header
LB: loop body
LE: loop exit
PB: predicated region body
PF: predicated region fallthrough
CT: control target
= control target key end

     0   :  { %2 = vsyncpa [#allocation1], 0  ;;  %s45_s6 = smov [#allocation0]   ;;  %s65_s0 = inlined_call_operand.hbm [shape: f32[64], index: 0, kind: input, shape index: {}]   ;;  %s66_s1 = inlined_call_operand.vmem [shape: f32[16,64], index: 1, kind: output, shape index: {}]  }
   0x1   :  { %s9_s7 = sshll.u32 %s45_s6, 4  ;;  %s10_s7 = int_to_ptr.vmem [resolvable:$true] %s9_s7 }
   0x2   :  { %s31_s8 = scalar_lea.vmem %s10_s7, 16  ;;  %s35_s9 = scalar_lea.vmem %s10_s7, 32 }
   0x3   :  { %p32_p0 = scmp.ne.s32.totalorder %s10_s7, %s31_s8  ;;  %p36_p1 = scmp.lt.s32.totalorder %s10_s7, %s10_s7 }
   0x4   :  { %p37_p2 = scmp.lt.s32.totalorder %s35_s9, %s31_s8 }
   0x6   :  { %p38_p3 = por %p37_p2, %p36_p1 }
   0x8   :  { %p39_p4 = pnand %p38_p3, %p32_p0 }
   0xa   :  { %42 = shalt.err (!%p39_p4)
}
   0xb   :  { %12 = dma.hbm_to_vmem [thread:$0]  %s65_s0, 16, %s10_s7, [#allocation1]  }
   0xc   :  { %43 = dma.done.wait [#allocation1], 16  }
   0xd   :  { %44 = vsyncadd [#allocation1], 4294967280  ;;  %v16_v0 = vld [vmem:[#allocation0] ss:$0 sm:$0xff] }
   0xe   :  { %17 = vst [vmem:[%s66_s1] sm:$0xff] %v16_v0  ;;  %21 = vst [vmem:[%s66_s1 + $0x8] sm:$0xff] %v16_v0 }
   0xf   :  { %20 = vsyncpa [#allocation1], 1 }

// kernel: tile.14
= control target key start
LH: loop header
LB: loop body
LE: loop exit
PB: predicated region body
PF: predicated region fallthrough
CT: control target
= control target key end

     0   :  { %vm3_vm0 = vcmask 523264   ;;  %vm10_vm1 = vcmask 1048064   ;;  %s125_s0 = inlined_call_operand.vmem [shape: f32[16,64], index: 0, kind: input, shape index: {}]   ;;  %s126_s1 = inlined_call_operand.vmem [shape: f32[1,1024], index: 1, kind: output, shape index: {}]  }
   0x1   :  { %v75_v0 = vld [vmem:[%s125_s0 + $0x1] ss:$2 sm:$0xff]   ;;  %v2_v1 = vld [vmem:[%s125_s0] ss:$2 sm:$0xff]   ;;  %s84_s0 = smov 64  }
   0x2   :  { %8 = vrot.lane.b32.xlu0 %v75_v0, %s84_s0  ;;  %4 = vst.msk [vmem:[#allocation0] ss:$8 sm:$0xf] %vm3_vm0, %v2_v1   ;;  %5 = vst.msk [vmem:[#allocation0] ss:$8 sm:$0xf0] %vm3_vm0, %v2_v1  }
  0x74   :  { %v9_v2 = vpop.permute.xlu0 %8  }
  0x75   :  { %11 = vst.msk [vmem:[#allocation0] ss:$8 sm:$0xf] %vm10_vm1, %v9_v2   ;;  %12 = vst.msk [vmem:[#allocation0] ss:$8 sm:$0xf0] %vm10_vm1, %v9_v2  }
  0x7c   :  { %v17_v3 = vld [vmem:[#allocation0] sm:$0x1]  ;;  %v22_v4 = vld [vmem:[#allocation0 + $0x8] sm:$0x1]  ;;  %v28_v5 = vld [vmem:[#allocation0 + $0x10] sm:$0x1] }
  0x7d   :  { %20 = vst [vmem:[%s126_s1] sm:$0x1] %v17_v3  ;;  %76 = vst [vmem:[%s126_s1 + $0x1] sm:$0x1] %v22_v4  ;;  %v35_v6 = vld [vmem:[#allocation0 + $0x18] sm:$0x1] }
  0x7e   :  { %77 = vst [vmem:[%s126_s1 + $0x2] sm:$0x1] %v28_v5  ;;  %v42_v7 = vld [vmem:[#allocation0 + $0x20] sm:$0x1]  ;;  %v49_v8 = vld [vmem:[#allocation0 + $0x28] sm:$0x1] }
  0x7f   :  { %78 = vst [vmem:[%s126_s1 + $0x3] sm:$0x1] %v35_v6  ;;  %79 = vst [vmem:[%s126_s1 + $0x4] sm:$0x1] %v42_v7  ;;  %v56_v9 = vld [vmem:[#allocation0 + $0x30] sm:$0x1] }
  0x80   :  { %80 = vst [vmem:[%s126_s1 + $0x5] sm:$0x1] %v49_v8  ;;  %v63_v10 = vld [vmem:[#allocation0 + $0x38] sm:$0x1]  ;;  %81 = vst [vmem:[%s126_s1 + $0x6] sm:$0x1] %v56_v9 }
  0x81   :  { %82 = vst [vmem:[%s126_s1 + $0x7] sm:$0x1] %v63_v10 }

// kernel: motion_cond_forward.1
= control target key start
LH: loop header
LB: loop body
LE: loop exit
PB: predicated region body
PF: predicated region fallthrough
CT: control target
= control target key end

     0   :  { %s5195_s13 = smov 0   ;;  %s7695_s0 = inlined_call_operand.vmem [shape: f32[512,4], index: 0, kind: input, shape index: {}]   ;;  %s7696_s1 = inlined_call_operand.vmem [shape: f32[4,64], index: 1, kind: input, shape index: {}]   ;;  %s7697_s2 = inlined_call_operand.vmem [shape: f32[1,64], index: 2, kind: input, shape index: {}]   ;;  %s7698_s3 = inlined_call_operand.vmem [shape: f32[64,1024], index: 3, kind: input, shape index: {}]   ;;  %s7699_s4 = inlined_call_operand.vmem [shape: f32[1,1024], index: 4, kind: input, shape index: {}]   ;;  %s7700_s5 = inlined_call_operand.vmem [shape: f32[4,16], index: 5, kind: input, shape index: {}]   ;;  %s7701_s6 = inlined_call_operand.vmem [shape: f32[1,16], index: 6, kind: input, shape index: {}]   ;;  %s7702_s7 = inlined_call_operand.vmem [shape: f32[16,1024], index: 7, kind: input, shape index: {}]   ;;  %s7703_s8 = inlined_call_operand.vmem [shape: f32[1,1024], index: 8, kind: input, shape index: {}]   ;;  %s7704_s9 = inlined_call_operand.vmem [shape: f32[512,1024], index: 9, kind: output, shape index: {0}]   ;;  %s7705_s10 = inlined_call_operand.vmem [shape: f32[512,1024], index: 10, kind: output, shape index: {1}]  }
   0x1 LB: > { %s4579_s14 = sadd.s32 4294967295, %s5137_s13   ;;  %p4583_p0 = scmp.ge.s32.totalorder %s5137_s13, 1  ;;  %s5137_s13 = sphi %s5195_s13, %s21_s13  }
   0x2   : > { %p316_p1 = scmp.lt.s32.totalorder %s5137_s13, 3 }
   0x4   : > { %p317_p2 = pnand %p4583_p0, %p316_p1 }
   0x5   : > { %s4584_s17 = sshll.u32 (!%p317_p2), %s4579_s14, 5 }
   0x6   : > { %320 = sbr.rel (%p317_p2) target bundleno = 1122 (0x462), region = 56  ;;  %p362_p3 = scmp.lt.s32.totalorder (!%p317_p2), %s4584_s17, 63 }
   0xb   : > { %v413_v0 = vld [vmem:[%s7696_s1] sm:$0xf]  ;;  %vm518_vm0 = vcmask 1043456   ;;  %v838_v1 = vld [vmem:[%s7698_s3 + $0x1d8] sm:$0xff]  ;;  %s7707_s17 = smov (!%p362_p3, %s4584_s17), 63  ;;  %vm421_vm1 = vcmask 31744  }
   0xc   : > { %4986 = vmatprep.subr.msk.mxu0 %vm518_vm0, %v413_v0  ;;  %s4585_s20 = sshll.u32 %s7707_s17, 3  ;;  %v836_v2 = vld [vmem:[%s7698_s3 + $0x1c8] sm:$0xff]  ;;  %v835_v3 = vld [vmem:[%s7698_s3 + $0x1c0] sm:$0xff]  ;;  %v837_v4 = vld [vmem:[%s7698_s3 + $0x1d0] sm:$0xff]  ;;  %vm885_vm2 = vcmask 523264   ;;  %s4918_s19 = sshll.u32 %s7707_s17, 6 }
   0xd   : > { %4987 = vmatpush3.msk.msra.mxu0 %vm518_vm0, %v413_v0  ;;  %s5223_s27 = scalar_lea.vmem %s7695_s0, %s4585_s20  ;;  %998 = vmatprep.subr.mxu1 %v836_v2  ;;  %v828_v5 = vld [vmem:[%s7698_s3 + $0x188] sm:$0xff]  ;;  %v827_v6 = vld [vmem:[%s7698_s3 + $0x180] sm:$0xff]  ;;  %v830_v10 = vld [vmem:[%s7698_s3 + $0x198] sm:$0xff]  ;;  %s5915_s22 = scalar_lea.vmem %s7704_s9, %s4918_s19  ;;  %vm2848_vm3 = vcmask 130048  }
   0xe   : > { %1255 = vmatprep.subr.mxu0 %v838_v1  ;;  %v381_v7 = vld [vmem:[%s5223_s27] sm:$0xff]  ;;  %v382_v8 = vld [vmem:[%s5223_s27 + $0x8] sm:$0xff]  ;;  %v383_v9 = vld [vmem:[%s5223_s27 + $0x10] sm:$0xff]  ;;  %999 = vmatpush1.msra.mxu1 %v835_v3  ;;  %v5139_v1 = vmov 0.0   ;;  %s7073_s11 = scalar_lea.vmem %s7705_s10, %s4918_s19 }
   0xf   : > { %4988 = vmatprep.mubr.msk.f32.mxu0 %vm421_vm1, %v381_v7  ;;  %1000 = vmatprep.subr.mxu1 %v828_v5  ;;  %v820_v11 = vld [vmem:[%s7698_s3 + $0x148] sm:$0xff]  ;;  %v829_v12 = vld [vmem:[%s7698_s3 + $0x190] sm:$0xff]  ;;  %v384_v13 = vld [vmem:[%s5223_s27 + $0x18] sm:$0xff] }
  0x10   : > { %4989 = vmatmul.mubr.msk.f32.vlgmr.msra.gmra.mxu0 %vm421_vm1, %v382_v8  ;;  %1001 = vmatpush1.msra.mxu1 %v827_v6  ;;  %v822_v14 = vld [vmem:[%s7698_s3 + $0x158] sm:$0xff]  ;;  %v385_v15 = vld [vmem:[%s5223_s27 + $0x20] sm:$0xff]  ;;  %v821_v16 = vld [vmem:[%s7698_s3 + $0x150] sm:$0xff] }
  0x11   : > { %4991 = vmatprep.mubr.msk.f32.mxu0 %vm421_vm1, %v383_v9  ;;  %1256 = vmatpush1.msra.mxu0 %v837_v4  ;;  %v814_v17 = vld [vmem:[%s7698_s3 + $0x118] sm:$0xff]  ;;  %v813_v18 = vld [vmem:[%s7698_s3 + $0x110] sm:$0xff]  ;;  %v386_v19 = vld [vmem:[%s5223_s27 + $0x28] sm:$0xff] }
  0x12   : > { %1257 = vmatprep.subr.mxu0 %v830_v10  ;;  %1002 = vmatprep.subr.mxu1 %v820_v11  ;;  %v806_v20 = vld [vmem:[%s7698_s3 + $0xd8] sm:$0xff]  ;;  %v387_v21 = vld [vmem:[%s5223_s27 + $0x30] sm:$0xff]  ;;  %v819_v25 = vld [vmem:[%s7698_s3 + $0x140] sm:$0xff] }
  0x13   : > { %1258 = vmatpush1.msra.mxu0 %v829_v12  ;;  %v805_v22 = vld [vmem:[%s7698_s3 + $0xd0] sm:$0xff]  ;;  %v798_v23 = vld [vmem:[%s7698_s3 + $0x98] sm:$0xff]  ;;  %v812_v28 = vld [vmem:[%s7698_s3 + $0x108] sm:$0xff]  ;;  %1003 = vmatpush1.msra.mxu1 %v819_v25 }
  0x14   : > { %4992 = vmatmul.mubr.msk.f32.gmra.mxu0 %vm421_vm1, %v384_v13  ;;  %1259 = vmatprep.subr.mxu0 %v822_v14  ;;  %v797_v24 = vld [vmem:[%s7698_s3 + $0x90] sm:$0xff]  ;;  %v388_v26 = vld [vmem:[%s5223_s27 + $0x38] sm:$0xff]  ;;  %v389_v29 = vld [vmem:[%s5223_s27 + $0x40] sm:$0xff] }
  0x15   : > { %4994 = vmatprep.mubr.msk.f32.mxu0 %vm421_vm1, %v385_v15  ;;  %1260 = vmatpush1.msra.mxu0 %v821_v16  ;;  %v790_v27 = vld [vmem:[%s7698_s3 + $0x58] sm:$0xff]  ;;  %v789_v30 = vld [vmem:[%s7698_s3 + $0x50] sm:$0xff]  ;;  %v811_v31 = vld [vmem:[%s7698_s3 + $0x100] sm:$0xff] }
  0x16   : > { %1261 = vmatprep.subr.mxu0 %v814_v17  ;;  %1004 = vmatprep.subr.mxu1 %v812_v28  ;;  %v782_v32 = vld [vmem:[%s7698_s3 + $0x18] sm:$0xff]  ;;  %v804_v33 = vld [vmem:[%s7698_s3 + $0xc8] sm:$0xff]  ;;  %v781_v34 = vld [vmem:[%s7698_s3 + $0x10] sm:$0xff] }
  0x17   : > { %1262 = vmatpush1.msra.mxu0 %v813_v18  ;;  %v390_v35 = vld [vmem:[%s5223_s27 + $0x48] sm:$0xff]  ;;  %v391_v36 = vld [vmem:[%s5223_s27 + $0x50] sm:$0xff]  ;;  %1005 = vmatpush1.msra.mxu1 %v811_v31  ;;  %v392_v37 = vld [vmem:[%s5223_s27 + $0x58] sm:$0xff] }
  0x18   : > { %4995 = vmatmul.mubr.msk.f32.gmra.mxu0 %vm421_vm1, %v386_v19  ;;  %1263 = vmatprep.subr.mxu0 %v806_v20  ;;  %v393_v38 = vld [vmem:[%s5223_s27 + $0x60] sm:$0xff]  ;;  %v394_v39 = vld [vmem:[%s5223_s27 + $0x68] sm:$0xff]  ;;  %v395_v40 = vld [vmem:[%s5223_s27 + $0x70] sm:$0xff] }
  0x19   : > { %4997 = vmatprep.mubr.msk.f32.mxu0 %vm421_vm1, %v387_v21  ;;  %1264 = vmatpush1.msra.mxu0 %v805_v22  ;;  %v396_v41 = vld [vmem:[%s5223_s27 + $0x78] sm:$0xff]  ;;  %v397_v42 = vld [vmem:[%s5223_s27 + $0x80] sm:$0xff]  ;;  %v398_v43 = vld [vmem:[%s5223_s27 + $0x88] sm:$0xff] }
  0x1a   : > { %1265 = vmatprep.subr.mxu0 %v798_v23  ;;  %1006 = vmatprep.subr.mxu1 %v804_v33  ;;  %v399_v44 = vld [vmem:[%s5223_s27 + $0x90] sm:$0xff]  ;;  %v400_v45 = vld [vmem:[%s5223_s27 + $0x98] sm:$0xff]  ;;  %v401_v46 = vld [vmem:[%s5223_s27 + $0xa0] sm:$0xff] }
  0x1b   : > { %1266 = vmatpush1.msra.mxu0 %v797_v24  ;;  %v402_v47 = vld [vmem:[%s5223_s27 + $0xa8] sm:$0xff]  ;;  %v403_v48 = vld [vmem:[%s5223_s27 + $0xb0] sm:$0xff]  ;;  %v404_v49 = vld [vmem:[%s5223_s27 + $0xb8] sm:$0xff]  ;;  %1046 = vmatprep.mubr.f32.mxu1 %v5139_v1 }
  0x1c   : > { %4998 = vmatmul.mubr.msk.f32.gmra.mxu0 %vm421_vm1, %v388_v26  ;;  %1267 = vmatprep.subr.mxu0 %v790_v27  ;;  %v405_v50 = vld [vmem:[%s5223_s27 + $0xc0] sm:$0xff]  ;;  %v406_v51 = vld [vmem:[%s5223_s27 + $0xc8] sm:$0xff]  ;;  %v407_v52 = vld [vmem:[%s5223_s27 + $0xd0] sm:$0xff] }
  0x1d   : > { %5000 = vmatprep.mubr.msk.f32.mxu0 %vm421_vm1, %v389_v29  ;;  %1268 = vmatpush1.msra.mxu0 %v789_v30  ;;  %v408_v53 = vld [vmem:[%s5223_s27 + $0xd8] sm:$0xff]  ;;  %v409_v54 = vld [vmem:[%s5223_s27 + $0xe0] sm:$0xff]  ;;  %v410_v55 = vld [vmem:[%s5223_s27 + $0xe8] sm:$0xff] }
  0x1e   : > { %1269 = vmatprep.subr.mxu0 %v782_v32  ;;  %v411_v56 = vld [vmem:[%s5223_s27 + $0xf0] sm:$0xff]  ;;  %v412_v57 = vld [vmem:[%s5223_s27 + $0xf8] sm:$0xff]  ;;  %v803_v58 = vld [vmem:[%s7698_s3 + $0xc0] sm:$0xff] }
  0x1f   : > { %1270 = vmatpush1.msra.mxu0 %v781_v34  ;;  %1007 = vmatpush1.msra.mxu1 %v803_v58  ;;  %v796_v59 = vld [vmem:[%s7698_s3 + $0x88] sm:$0xff]  ;;  %v795_v60 = vld [vmem:[%s7698_s3 + $0x80] sm:$0xff]  ;;  %v842_v2 = vld [vmem:[%s7698_s3 + $0x1f8] sm:$0xff] }
  0x20   : > { %5001 = vmatmul.mubr.msk.f32.gmra.mxu0 %vm421_vm1, %v390_v35  ;;  %1008 = vmatprep.subr.mxu1 %v796_v59  ;;  %v788_v61 = vld [vmem:[%s7698_s3 + $0x48] sm:$0xff]  ;;  %v787_v62 = vld [vmem:[%s7698_s3 + $0x40] sm:$0xff]  ;;  %v841_v11 = vld [vmem:[%s7698_s3 + $0x1f0] sm:$0xff] }
  0x21   : > { %5003 = vmatprep.mubr.msk.f32.mxu0 %vm421_vm1, %v391_v36  ;;  %1009 = vmatpush1.msra.mxu1 %v795_v60  ;;  %v780_v63 = vld [vmem:[%s7698_s3 + $0x8] sm:$0xff]  ;;  %v779_v0 = vld [vmem:[%s7698_s3] sm:$0xff]  ;;  %v834_v14 = vld [vmem:[%s7698_s3 + $0x1b8] sm:$0xff] }
  0x22   : > { %1010 = vmatprep.subr.mxu1 %v788_v61  ;;  %1769 = vmatprep.subr.mxu0 %v842_v2  ;;  %v840_v3 = vld [vmem:[%s7698_s3 + $0x1e8] sm:$0xff]  ;;  %v5387_v5 = vld [vmem:[%s7697_s2] ss:$0 sm:$0xff]  ;;  %v833_v19 = vld [vmem:[%s7698_s3 + $0x1b0] sm:$0xff] }
  0x23   : > { %1011 = vmatpush1.msra.mxu1 %v787_v62  ;;  %v839_v13 = vld [vmem:[%s7698_s3 + $0x1e0] sm:$0xff]  ;;  %v832_v15 = vld [vmem:[%s7698_s3 + $0x1a8] sm:$0xff]  ;;  %v826_v21 = vld [vmem:[%s7698_s3 + $0x178] sm:$0xff] }
  0x24   : > { %5004 = vmatmul.mubr.msk.f32.gmra.mxu0 %vm421_vm1, %v392_v37  ;;  %1012 = vmatprep.subr.mxu1 %v780_v63  ;;  %v831_v20 = vld [vmem:[%s7698_s3 + $0x1a0] sm:$0xff]  ;;  %v824_v22 = vld [vmem:[%s7698_s3 + $0x168] sm:$0xff]  ;;  %v825_v26 = vld [vmem:[%s7698_s3 + $0x170] sm:$0xff] }
  0x25   : > { %5006 = vmatprep.mubr.msk.f32.mxu0 %vm421_vm1, %v393_v38  ;;  %1013 = vmatpush1.msra.mxu1 %v779_v0  ;;  %v823_v27 = vld [vmem:[%s7698_s3 + $0x160] sm:$0xff]  ;;  %v818_v28 = vld [vmem:[%s7698_s3 + $0x138] sm:$0xff]  ;;  %v816_v29 = vld [vmem:[%s7698_s3 + $0x128] sm:$0xff] }
  0x26   : > { %1512 = vmatprep.subr.mxu1 %v840_v3  ;;  %v817_v33 = vld [vmem:[%s7698_s3 + $0x130] sm:$0xff]  ;;  %v815_v34 = vld [vmem:[%s7698_s3 + $0x120] sm:$0xff]  ;;  %v810_v35 = vld [vmem:[%s7698_s3 + $0xf8] sm:$0xff] }
  0x27   : > { %v808_v36 = vld [vmem:[%s7698_s3 + $0xe8] sm:$0xff]  ;;  %v785_v61 = vld [vmem:[%s7698_s3 + $0x30] sm:$0xff]  ;;  %v783_v62 = vld [vmem:[%s7698_s3 + $0x20] sm:$0xff] }
  0x28   : > { %5007 = vmatmul.mubr.msk.f32.gmra.mxu0 %vm421_vm1, %v394_v39  ;;  %v5553_v63 = vld [vmem:[%s7700_s5] sm:$0xf] }
  0x29   : > { %5009 = vmatprep.mubr.msk.f32.mxu0 %vm421_vm1, %v395_v40  ;;  %v809_v40 = vld [vmem:[%s7698_s3 + $0xf0] sm:$0xff] }
  0x2c   : > { %5010 = vmatmul.mubr.msk.f32.gmra.mxu0 %vm421_vm1, %v396_v41  ;;  %v807_v41 = vld [vmem:[%s7698_s3 + $0xe0] sm:$0xff] }
  0x2d   : > { %5012 = vmatprep.mubr.msk.f32.mxu0 %vm421_vm1, %v397_v42  ;;  %v802_v42 = vld [vmem:[%s7698_s3 + $0xb8] sm:$0xff] }
  0x30   : > { %5013 = vmatmul.mubr.msk.f32.gmra.mxu0 %vm421_vm1, %v398_v43  ;;  %v800_v43 = vld [vmem:[%s7698_s3 + $0xa8] sm:$0xff] }
  0x31   : > { %5015 = vmatprep.mubr.msk.f32.mxu0 %vm421_vm1, %v399_v44 }
  0x34   : > { %5016 = vmatmul.mubr.msk.f32.gmra.mxu0 %vm421_vm1, %v400_v45 }
  0x35   : > { %5018 = vmatprep.mubr.msk.f32.mxu0 %vm421_vm1, %v401_v46 }
  0x38   : > { %5019 = vmatmul.mubr.msk.f32.gmra.mxu0 %vm421_vm1, %v402_v47  ;;  %v801_v47 = vld [vmem:[%s7698_s3 + $0xb0] sm:$0xff] }
  0x39   : > { %5021 = vmatprep.mubr.msk.f32.mxu0 %vm421_vm1, %v403_v48  ;;  %v799_v48 = vld [vmem:[%s7698_s3 + $0xa0] sm:$0xff] }
  0x3c   : > { %5022 = vmatmul.mubr.msk.f32.gmra.mxu0 %vm421_vm1, %v404_v49  ;;  %v794_v49 = vld [vmem:[%s7698_s3 + $0x78] sm:$0xff] }
  0x3d   : > { %5024 = vmatprep.mubr.msk.f32.mxu0 %vm421_vm1, %v405_v50  ;;  %v792_v50 = vld [vmem:[%s7698_s3 + $0x68] sm:$0xff] }
  0x40   : > { %5025 = vmatmul.mubr.msk.f32.gmra.mxu0 %vm421_vm1, %v406_v51 }
  0x41   : > { %5027 = vmatprep.mubr.msk.f32.mxu0 %vm421_vm1, %v407_v52 }
  0x44   : > { %5028 = vmatmul.mubr.msk.f32.gmra.mxu0 %vm421_vm1, %v408_v53 }
  0x45   : > { %5030 = vmatprep.mubr.msk.f32.mxu0 %vm421_vm1, %v409_v54  ;;  %v793_v54 = vld [vmem:[%s7698_s3 + $0x70] sm:$0xff] }
  0x48   : > { %5031 = vmatmul.mubr.msk.f32.gmra.mxu0 %vm421_vm1, %v410_v55  ;;  %v791_v55 = vld [vmem:[%s7698_s3 + $0x60] sm:$0xff] }
  0x49   : > { %5033 = vmatprep.mubr.msk.f32.mxu0 %vm421_vm1, %v411_v56  ;;  %v786_v56 = vld [vmem:[%s7698_s3 + $0x38] sm:$0xff] }
  0x4c   : > { %5034 = vmatmul.mubr.msk.f32.gmra.mxu0 %vm421_vm1, %v412_v57  ;;  %v784_v57 = vld [vmem:[%s7698_s3 + $0x28] sm:$0xff] }
  0x4d   : > { %1303 = vmatprep.mubr.f32.mxu0 %v5139_v1 }
  0xd0   : > { %v4990_v4 = vpop.f32.mrf.mxu0 }
  0xd1   : > { %v594_v9 = vadd.f32 %v4990_v4, %v5387_v5 }
  0xd2   : > { %v588_v6 = vpop.f32.mrf.mxu0 }
  0xd3   : > { %v589_v7 = vadd.f32 %v5387_v5, %v588_v6  ;;  %v5410_v16 = vmax.f32 %v594_v9, 0.0 }
  0xd4   : > { %v4993_v8 = vpop.f32.mrf.mxu0 }
  0xd5   : > { %v5391_v10 = vmax.f32 %v589_v7, 0.0  ;;  %v604_v23 = vadd.f32 %v4993_v8, %v5387_v5 }
  0xd6   : > { %v598_v12 = vpop.f32.mrf.mxu0 }
  0xd7   : > { %4626 = vmatmul.mubr.msk.f32.vlgmr.msra.gmra.mxu1 %vm885_vm2, %v5391_v10  ;;  %4658 = vmatmul.mubr.msk.f32.vlgmr.msra.gmra.mxu0 %vm885_vm2, %v5391_v10  ;;  %v599_v17 = vadd.f32 %v5387_v5, %v598_v12  ;;  %v5453_v30 = vmax.f32 %v604_v23, 0.0 }
  0xd8   : > { %1770 = vmatpush1.msra.mxu0 %v841_v11  ;;  %1052 = vmatprep.mubr.f32.mxu1 %v5139_v1  ;;  %v4996_v18 = vpop.f32.mrf.mxu0 }
  0xd9   : > { %1309 = vmatprep.mubr.f32.mxu0 %v5139_v1  ;;  %1513 = vmatpush1.msra.mxu1 %v839_v13  ;;  %v5433_v24 = vmax.f32 %v599_v17, 0.0  ;;  %v614_v37 = vadd.f32 %v4996_v18, %v5387_v5 }
  0xda   : > { %1771 = vmatprep.subr.mxu0 %v834_v14  ;;  %1514 = vmatprep.subr.mxu1 %v832_v15  ;;  %v608_v25 = vpop.f32.mrf.mxu0 }
  0xdb   : > { %4627 = vmatmul.mubr.msk.f32.gmra.mxu1 %vm885_vm2, %v5410_v16  ;;  %4659 = vmatmul.mubr.msk.f32.gmra.mxu0 %vm885_vm2, %v5410_v16  ;;  %v609_v31 = vadd.f32 %v5387_v5, %v608_v25  ;;  %v5495_v44 = vmax.f32 %v614_v37, 0.0 }
  0xdc   : > { %1058 = vmatprep.mubr.f32.mxu1 %v5139_v1  ;;  %1315 = vmatprep.mubr.f32.mxu0 %v5139_v1  ;;  %v4999_v32 = vpop.f32.mrf.mxu0 }
  0xdd   : > { %1772 = vmatpush1.msra.mxu0 %v833_v19  ;;  %1515 = vmatpush1.msra.mxu1 %v831_v20  ;;  %v5475_v38 = vmax.f32 %v609_v31, 0.0  ;;  %v624_v51 = vadd.f32 %v4999_v32, %v5387_v5 }
  0xde   : > { %1773 = vmatprep.subr.mxu0 %v826_v21  ;;  %1516 = vmatprep.subr.mxu1 %v824_v22  ;;  %v618_v39 = vpop.f32.mrf.mxu0 }
  0xdf   : > { %4628 = vmatmul.mubr.msk.f32.gmra.mxu1 %vm885_vm2, %v5433_v24  ;;  %4660 = vmatmul.mubr.msk.f32.gmra.mxu0 %vm885_vm2, %v5433_v24  ;;  %v619_v45 = vadd.f32 %v5387_v5, %v618_v39  ;;  %v5537_v58 = vmax.f32 %v624_v51, 0.0 }
  0xe0   : > { %1064 = vmatprep.mubr.f32.mxu1 %v5139_v1  ;;  %1321 = vmatprep.mubr.f32.mxu0 %v5139_v1  ;;  %v5002_v46 = vpop.f32.mrf.mxu0 }
  0xe1   : > { %1774 = vmatpush1.msra.mxu0 %v825_v26  ;;  %1517 = vmatpush1.msra.mxu1 %v823_v27  ;;  %v5517_v52 = vmax.f32 %v619_v45, 0.0  ;;  %v634_v0 = vadd.f32 %v5002_v46, %v5387_v5 }
  0xe2   : > { %1775 = vmatprep.subr.mxu0 %v818_v28  ;;  %1518 = vmatprep.subr.mxu1 %v816_v29  ;;  %v628_v53 = vpop.f32.mrf.mxu0 }
  0xe3   : > { %4629 = vmatmul.mubr.msk.f32.gmra.mxu1 %vm885_vm2, %v5453_v30  ;;  %4661 = vmatmul.mubr.msk.f32.gmra.mxu0 %vm885_vm2, %v5453_v30  ;;  %v629_v59 = vadd.f32 %v5387_v5, %v628_v53  ;;  %v5570_v4 = vmax.f32 %v634_v0, 0.0 }
  0xe4   : > { %1070 = vmatprep.mubr.f32.mxu1 %v5139_v1  ;;  %1327 = vmatprep.mubr.f32.mxu0 %v5139_v1  ;;  %v5005_v60 = vpop.f32.mrf.mxu0 }
  0xe5   : > { %1776 = vmatpush1.msra.mxu0 %v817_v33  ;;  %1519 = vmatpush1.msra.mxu1 %v815_v34  ;;  %v5558_v2 = vmax.f32 %v629_v59, 0.0  ;;  %v644_v8 = vadd.f32 %v5005_v60, %v5387_v5 }
  0xe6   : > { %1777 = vmatprep.subr.mxu0 %v810_v35  ;;  %1520 = vmatprep.subr.mxu1 %v808_v36  ;;  %v638_v3 = vpop.f32.mrf.mxu0 }
  0xe7   : > { %4630 = vmatmul.mubr.msk.f32.gmra.mxu1 %vm885_vm2, %v5475_v38  ;;  %4662 = vmatmul.mubr.msk.f32.gmra.mxu0 %vm885_vm2, %v5475_v38  ;;  %v639_v6 = vadd.f32 %v5387_v5, %v638_v3  ;;  %v5588_v12 = vmax.f32 %v644_v8, 0.0 }
  0xe8   : > { %1076 = vmatprep.mubr.f32.mxu1 %v5139_v1  ;;  %1333 = vmatprep.mubr.f32.mxu0 %v5139_v1  ;;  %v5008_v7 = vpop.f32.mrf.mxu0 }
  0xe9   : > { %1778 = vmatpush1.msra.mxu0 %v809_v40  ;;  %1521 = vmatpush1.msra.mxu1 %v807_v41  ;;  %v5580_v9 = vmax.f32 %v639_v6, 0.0  ;;  %v654_v15 = vadd.f32 %v5008_v7, %v5387_v5 }
  0xea   : > { %1779 = vmatprep.subr.mxu0 %v802_v42  ;;  %1522 = vmatprep.subr.mxu1 %v800_v43  ;;  %v648_v11 = vpop.f32.mrf.mxu0 }
  0xeb   : > { %4631 = vmatmul.mubr.msk.f32.gmra.mxu1 %vm885_vm2, %v5495_v44  ;;  %4663 = vmatmul.mubr.msk.f32.gmra.mxu0 %vm885_vm2, %v5495_v44  ;;  %v649_v13 = vadd.f32 %v5387_v5, %v648_v11  ;;  %v5606_v19 = vmax.f32 %v654_v15, 0.0 }
  0xec   : > { %1082 = vmatprep.mubr.f32.mxu1 %v5139_v1  ;;  %1339 = vmatprep.mubr.f32.mxu0 %v5139_v1  ;;  %v5011_v14 = vpop.f32.mrf.mxu0 }
  0xed   : > { %1780 = vmatpush1.msra.mxu0 %v801_v47  ;;  %1523 = vmatpush1.msra.mxu1 %v799_v48  ;;  %v5598_v17 = vmax.f32 %v649_v13, 0.0  ;;  %v664_v22 = vadd.f32 %v5011_v14, %v5387_v5 }
  0xee   : > { %1781 = vmatprep.subr.mxu0 %v794_v49  ;;  %1524 = vmatprep.subr.mxu1 %v792_v50  ;;  %v658_v18 = vpop.f32.mrf.mxu0 }
  0xef   : > { %4632 = vmatmul.mubr.msk.f32.gmra.mxu1 %vm885_vm2, %v5517_v52  ;;  %4664 = vmatmul.mubr.msk.f32.gmra.mxu0 %vm885_vm2, %v5517_v52  ;;  %v659_v20 = vadd.f32 %v5387_v5, %v658_v18  ;;  %v5624_v26 = vmax.f32 %v664_v22, 0.0 }
  0xf0   : > { %1088 = vmatprep.mubr.f32.mxu1 %v5139_v1  ;;  %1345 = vmatprep.mubr.f32.mxu0 %v5139_v1  ;;  %v5014_v21 = vpop.f32.mrf.mxu0 }
  0xf1   : > { %1782 = vmatpush1.msra.mxu0 %v793_v54  ;;  %1525 = vmatpush1.msra.mxu1 %v791_v55  ;;  %v5616_v23 = vmax.f32 %v659_v20, 0.0  ;;  %v674_v29 = vadd.f32 %v5014_v21, %v5387_v5 }
  0xf2   : > { %1783 = vmatprep.subr.mxu0 %v786_v56  ;;  %1526 = vmatprep.subr.mxu1 %v784_v57  ;;  %v668_v25 = vpop.f32.mrf.mxu0 }
  0xf3   : > { %4633 = vmatmul.mubr.msk.f32.gmra.mxu1 %vm885_vm2, %v5537_v58  ;;  %4665 = vmatmul.mubr.msk.f32.gmra.mxu0 %vm885_vm2, %v5537_v58  ;;  %v669_v27 = vadd.f32 %v5387_v5, %v668_v25  ;;  %v5642_v33 = vmax.f32 %v674_v29, 0.0 }
  0xf4   : > { %1094 = vmatprep.mubr.f32.mxu1 %v5139_v1  ;;  %1351 = vmatprep.mubr.f32.mxu0 %v5139_v1  ;;  %v5017_v28 = vpop.f32.mrf.mxu0 }
  0xf5   : > { %1784 = vmatpush1.msra.mxu0 %v785_v61  ;;  %1527 = vmatpush1.msra.mxu1 %v783_v62  ;;  %v5634_v31 = vmax.f32 %v669_v27, 0.0  ;;  %v684_v36 = vadd.f32 %v5017_v28, %v5387_v5 }
  0xf6   : > { %5036 = vmatprep.subr.msk.mxu0 %vm518_vm0, %v5553_v63  ;;  %5086 = vmatprep.subr.msk.mxu1 %vm518_vm0, %v5553_v63  ;;  %v678_v32 = vpop.f32.mrf.mxu0 }
  0xf7   : > { %4634 = vmatmul.mubr.msk.f32.gmra.mxu1 %vm885_vm2, %v5558_v2  ;;  %4666 = vmatmul.mubr.msk.f32.gmra.mxu0 %vm885_vm2, %v5558_v2  ;;  %v679_v34 = vadd.f32 %v5387_v5, %v678_v32  ;;  %v5660_v40 = vmax.f32 %v684_v36, 0.0 }
  0xf8   : > { %1100 = vmatprep.mubr.f32.mxu1 %v5139_v1  ;;  %1357 = vmatprep.mubr.f32.mxu0 %v5139_v1  ;;  %v5020_v35 = vpop.f32.mrf.mxu0 }
  0xf9   : > { %v5652_v37 = vmax.f32 %v679_v34, 0.0  ;;  %v694_v43 = vadd.f32 %v5020_v35, %v5387_v5 }
  0xfa   : > { %v688_v39 = vpop.f32.mrf.mxu0 }
  0xfb   : > { %4635 = vmatmul.mubr.msk.f32.gmra.mxu1 %vm885_vm2, %v5570_v4  ;;  %4667 = vmatmul.mubr.msk.f32.gmra.mxu0 %vm885_vm2, %v5570_v4  ;;  %v689_v41 = vadd.f32 %v5387_v5, %v688_v39  ;;  %v5678_v47 = vmax.f32 %v694_v43, 0.0 }
  0xfc   : > { %1106 = vmatprep.mubr.f32.mxu1 %v5139_v1  ;;  %1363 = vmatprep.mubr.f32.mxu0 %v5139_v1  ;;  %v5023_v42 = vpop.f32.mrf.mxu0 }
  0xfd   : > { %v5670_v45 = vmax.f32 %v689_v41, 0.0  ;;  %v704_v50 = vadd.f32 %v5023_v42, %v5387_v5 }
  0xfe   : > { %v698_v46 = vpop.f32.mrf.mxu0 }
  0xff   : > { %4636 = vmatmul.mubr.msk.f32.gmra.mxu1 %vm885_vm2, %v5580_v9  ;;  %4668 = vmatmul.mubr.msk.f32.gmra.mxu0 %vm885_vm2, %v5580_v9  ;;  %v699_v48 = vadd.f32 %v5387_v5, %v698_v46  ;;  %v5696_v54 = vmax.f32 %v704_v50, 0.0 }
 0x100   : > { %1112 = vmatprep.mubr.f32.mxu1 %v5139_v1  ;;  %1369 = vmatprep.mubr.f32.mxu0 %v5139_v1  ;;  %v5026_v49 = vpop.f32.mrf.mxu0 }
 0x101   : > { %v5688_v51 = vmax.f32 %v699_v48, 0.0  ;;  %v714_v57 = vadd.f32 %v5026_v49, %v5387_v5 }
 0x102   : > { %v708_v53 = vpop.f32.mrf.mxu0 }
 0x103   : > { %4637 = vmatmul.mubr.msk.f32.gmra.mxu1 %vm885_vm2, %v5588_v12  ;;  %4669 = vmatmul.mubr.msk.f32.gmra.mxu0 %vm885_vm2, %v5588_v12  ;;  %v709_v55 = vadd.f32 %v5387_v5, %v708_v53  ;;  %v5714_v61 = vmax.f32 %v714_v57, 0.0 }
 0x104   : > { %1118 = vmatprep.mubr.f32.mxu1 %v5139_v1  ;;  %1375 = vmatprep.mubr.f32.mxu0 %v5139_v1  ;;  %v5029_v56 = vpop.f32.mrf.mxu0 }
 0x105   : > { %v5706_v59 = vmax.f32 %v709_v55, 0.0  ;;  %v724_v3 = vadd.f32 %v5029_v56, %v5387_v5 }
 0x106   : > { %v718_v60 = vpop.f32.mrf.mxu0 }
 0x107   : > { %4638 = vmatmul.mubr.msk.f32.gmra.mxu1 %vm885_vm2, %v5598_v17  ;;  %4670 = vmatmul.mubr.msk.f32.gmra.mxu0 %vm885_vm2, %v5598_v17  ;;  %v719_v62 = vadd.f32 %v5387_v5, %v718_v60  ;;  %v5732_v8 = vmax.f32 %v724_v3, 0.0 }
 0x108   : > { %1124 = vmatprep.mubr.f32.mxu1 %v5139_v1  ;;  %1381 = vmatprep.mubr.f32.mxu0 %v5139_v1  ;;  %v5032_v0 = vpop.f32.mrf.mxu0 }
 0x109   : > { %v5724_v6 = vmax.f32 %v719_v62, 0.0  ;;  %v734_v14 = vadd.f32 %v5032_v0, %v5387_v5 }
 0x10a   : > { %v728_v7 = vpop.f32.mrf.mxu0 }
 0x10b   : > { %4639 = vmatmul.mubr.msk.f32.gmra.mxu1 %vm885_vm2, %v5606_v19  ;;  %4671 = vmatmul.mubr.msk.f32.gmra.mxu0 %vm885_vm2, %v5606_v19  ;;  %v729_v11 = vadd.f32 %v5387_v5, %v728_v7  ;;  %v5750_v20 = vmax.f32 %v734_v14, 0.0 }
 0x10c   : > { %1130 = vmatprep.mubr.f32.mxu1 %v5139_v1  ;;  %1387 = vmatprep.mubr.f32.mxu0 %v5139_v1  ;;  %v5035_v13 = vpop.f32.mrf.mxu0 }
 0x10d   : > { %v5742_v15 = vmax.f32 %v729_v11, 0.0  ;;  %v744_v22 = vadd.f32 %v5035_v13, %v5387_v5 }
 0x10e   : > { %v738_v18 = vpop.f32.mrf.mxu0 }
 0x10f   : > { %4640 = vmatmul.mubr.msk.f32.gmra.mxu1 %vm885_vm2, %v5616_v23  ;;  %4672 = vmatmul.mubr.msk.f32.gmra.mxu0 %vm885_vm2, %v5616_v23  ;;  %v739_v21 = vadd.f32 %v5387_v5, %v738_v18  ;;  %v5768_v27 = vmax.f32 %v744_v22, 0.0  ;;  %v845_v5 = vlaneseq }
 0x110   : > { %1136 = vmatprep.mubr.f32.mxu1 %v5139_v1  ;;  %1393 = vmatprep.mubr.f32.mxu0 %v5139_v1 }
 0x111   : > { %v5760_v25 = vmax.f32 %v739_v21, 0.0 }
 0x113   : > { %4641 = vmatmul.mubr.msk.f32.gmra.mxu1 %vm885_vm2, %v5624_v26  ;;  %4673 = vmatmul.mubr.msk.f32.gmra.mxu0 %vm885_vm2, %v5624_v26 }
 0x114   : > { %1142 = vmatprep.mubr.f32.mxu1 %v5139_v1  ;;  %1399 = vmatprep.mubr.f32.mxu0 %v5139_v1 }
 0x117   : > { %4642 = vmatmul.mubr.msk.f32.gmra.mxu1 %vm885_vm2, %v5634_v31  ;;  %4674 = vmatmul.mubr.msk.f32.gmra.mxu0 %vm885_vm2, %v5634_v31 }
 0x118   : > { %1148 = vmatprep.mubr.f32.mxu1 %v5139_v1  ;;  %1405 = vmatprep.mubr.f32.mxu0 %v5139_v1 }
 0x11b   : > { %4643 = vmatmul.mubr.msk.f32.gmra.mxu1 %vm885_vm2, %v5642_v33  ;;  %4675 = vmatmul.mubr.msk.f32.gmra.mxu0 %vm885_vm2, %v5642_v33 }
 0x11c   : > { %1154 = vmatprep.mubr.f32.mxu1 %v5139_v1  ;;  %1411 = vmatprep.mubr.f32.mxu0 %v5139_v1 }
 0x11f   : > { %4644 = vmatmul.mubr.msk.f32.gmra.mxu1 %vm885_vm2, %v5652_v37  ;;  %4676 = vmatmul.mubr.msk.f32.gmra.mxu0 %vm885_vm2, %v5652_v37 }
 0x120   : > { %1160 = vmatprep.mubr.f32.mxu1 %v5139_v1  ;;  %1417 = vmatprep.mubr.f32.mxu0 %v5139_v1 }
 0x123   : > { %4645 = vmatmul.mubr.msk.f32.gmra.mxu1 %vm885_vm2, %v5660_v40  ;;  %4677 = vmatmul.mubr.msk.f32.gmra.mxu0 %vm885_vm2, %v5660_v40 }
 0x124   : > { %1166 = vmatprep.mubr.f32.mxu1 %v5139_v1  ;;  %1423 = vmatprep.mubr.f32.mxu0 %v5139_v1 }
 0x127   : > { %4646 = vmatmul.mubr.msk.f32.gmra.mxu1 %vm885_vm2, %v5670_v45  ;;  %4678 = vmatmul.mubr.msk.f32.gmra.mxu0 %vm885_vm2, %v5670_v45 }
 0x128   : > { %1172 = vmatprep.mubr.f32.mxu1 %v5139_v1  ;;  %1429 = vmatprep.mubr.f32.mxu0 %v5139_v1 }
 0x12b   : > { %4647 = vmatmul.mubr.msk.f32.gmra.mxu1 %vm885_vm2, %v5678_v47  ;;  %4679 = vmatmul.mubr.msk.f32.gmra.mxu0 %vm885_vm2, %v5678_v47 }
 0x12c   : > { %1178 = vmatprep.mubr.f32.mxu1 %v5139_v1  ;;  %1435 = vmatprep.mubr.f32.mxu0 %v5139_v1 }
 0x12f   : > { %4648 = vmatmul.mubr.msk.f32.gmra.mxu1 %vm885_vm2, %v5688_v51  ;;  %4680 = vmatmul.mubr.msk.f32.gmra.mxu0 %vm885_vm2, %v5688_v51 }
 0x130   : > { %1184 = vmatprep.mubr.f32.mxu1 %v5139_v1  ;;  %1441 = vmatprep.mubr.f32.mxu0 %v5139_v1 }
 0x133   : > { %4649 = vmatmul.mubr.msk.f32.gmra.mxu1 %vm885_vm2, %v5696_v54  ;;  %4681 = vmatmul.mubr.msk.f32.gmra.mxu0 %vm885_vm2, %v5696_v54 }
 0x134   : > { %1190 = vmatprep.mubr.f32.mxu1 %v5139_v1  ;;  %1447 = vmatprep.mubr.f32.mxu0 %v5139_v1 }
 0x137   : > { %4650 = vmatmul.mubr.msk.f32.gmra.mxu1 %vm885_vm2, %v5706_v59  ;;  %4682 = vmatmul.mubr.msk.f32.gmra.mxu0 %vm885_vm2, %v5706_v59 }
 0x138   : > { %1196 = vmatprep.mubr.f32.mxu1 %v5139_v1  ;;  %1453 = vmatprep.mubr.f32.mxu0 %v5139_v1 }
 0x13b   : > { %4651 = vmatmul.mubr.msk.f32.gmra.mxu1 %vm885_vm2, %v5714_v61  ;;  %4683 = vmatmul.mubr.msk.f32.gmra.mxu0 %vm885_vm2, %v5714_v61 }
 0x13c   : > { %1202 = vmatprep.mubr.f32.mxu1 %v5139_v1  ;;  %1459 = vmatprep.mubr.f32.mxu0 %v5139_v1 }
 0x13f   : > { %4652 = vmatmul.mubr.msk.f32.gmra.mxu1 %vm885_vm2, %v5724_v6  ;;  %4684 = vmatmul.mubr.msk.f32.gmra.mxu0 %vm885_vm2, %v5724_v6 }
 0x140   : > { %1208 = vmatprep.mubr.f32.mxu1 %v5139_v1  ;;  %1465 = vmatprep.mubr.f32.mxu0 %v5139_v1 }
 0x143   : > { %4653 = vmatmul.mubr.msk.f32.gmra.mxu1 %vm885_vm2, %v5732_v8  ;;  %4685 = vmatmul.mubr.msk.f32.gmra.mxu0 %vm885_vm2, %v5732_v8 }
 0x144   : > { %1214 = vmatprep.mubr.f32.mxu1 %v5139_v1  ;;  %1471 = vmatprep.mubr.f32.mxu0 %v5139_v1 }
 0x147   : > { %4654 = vmatmul.mubr.msk.f32.gmra.mxu1 %vm885_vm2, %v5742_v15  ;;  %4686 = vmatmul.mubr.msk.f32.gmra.mxu0 %vm885_vm2, %v5742_v15 }
 0x148   : > { %1220 = vmatprep.mubr.f32.mxu1 %v5139_v1  ;;  %1477 = vmatprep.mubr.f32.mxu0 %v5139_v1 }
 0x14b   : > { %4655 = vmatmul.mubr.msk.f32.gmra.mxu1 %vm885_vm2, %v5750_v20  ;;  %4687 = vmatmul.mubr.msk.f32.gmra.mxu0 %vm885_vm2, %v5750_v20 }
 0x14c   : > { %1226 = vmatprep.mubr.f32.mxu1 %v5139_v1  ;;  %1483 = vmatprep.mubr.f32.mxu0 %v5139_v1 }
 0x14f   : > { %4656 = vmatmul.mubr.msk.f32.gmra.mxu1 %vm885_vm2, %v5760_v25  ;;  %4688 = vmatmul.mubr.msk.f32.gmra.mxu0 %vm885_vm2, %v5760_v25 }
 0x150   : > { %1232 = vmatprep.mubr.f32.mxu1 %v5139_v1  ;;  %1489 = vmatprep.mubr.f32.mxu0 %v5139_v1 }
 0x153   : > { %4657 = vmatmul.mubr.msk.f32.gmra.mxu1 %vm885_vm2, %v5768_v27  ;;  %4689 = vmatmul.mubr.msk.f32.gmra.mxu0 %vm885_vm2, %v5768_v27 }
 0x154   : > { %1560 = vmatprep.mubr.f32.mxu1 %v5139_v1  ;;  %1817 = vmatprep.mubr.f32.mxu0 %v5139_v1 }
 0x157   : > { %4690 = vmatmul.mubr.msk.f32.vlgmr.msra.gmra.mxu1 %vm885_vm2, %v5391_v10  ;;  %4722 = vmatmul.mubr.msk.f32.vlgmr.msra.gmra.mxu0 %vm885_vm2, %v5391_v10  ;;  %v5864_v10 = vshrl.u32 %v845_v5, 7 }
 0x158   : > { %5037 = vmatpush3.msk.msra.mxu0 %vm518_vm0, %v5553_v63  ;;  %1566 = vmatprep.mubr.f32.mxu1 %v5139_v1 }
 0x159   : > { %1823 = vmatprep.mubr.f32.mxu0 %v5139_v1  ;;  %5087 = vmatpush3.msk.msra.mxu1 %vm518_vm0, %v5553_v63 }
 0x15b   : > { %4691 = vmatmul.mubr.msk.f32.gmra.mxu1 %vm885_vm2, %v5410_v16  ;;  %4723 = vmatmul.mubr.msk.f32.gmra.mxu0 %vm885_vm2, %v5410_v16  ;;  %v847_v16 = vsub.s32 0, %v5864_v10 }
 0x15c   : > { %1572 = vmatprep.mubr.f32.mxu1 %v5139_v1  ;;  %1829 = vmatprep.mubr.f32.mxu0 %v5139_v1 }
 0x15f   : > { %4692 = vmatmul.mubr.msk.f32.gmra.mxu1 %vm885_vm2, %v5433_v24  ;;  %4724 = vmatmul.mubr.msk.f32.gmra.mxu0 %vm885_vm2, %v5433_v24  ;;  %v855_v24 = vsub.s32 2, %v5864_v10 }
 0x160   : > { %1578 = vmatprep.mubr.f32.mxu1 %v5139_v1  ;;  %1835 = vmatprep.mubr.f32.mxu0 %v5139_v1 }
 0x163   : > { %4693 = vmatmul.mubr.msk.f32.gmra.mxu1 %vm885_vm2, %v5453_v30  ;;  %4725 = vmatmul.mubr.msk.f32.gmra.mxu0 %vm885_vm2, %v5453_v30  ;;  %v843_v30 = vld [vmem:[%s7699_s4] sm:$0xff] }
 0x164   : > { %1584 = vmatprep.mubr.f32.mxu1 %v5139_v1  ;;  %1841 = vmatprep.mubr.f32.mxu0 %v5139_v1 }
 0x167   : > { %4694 = vmatmul.mubr.msk.f32.gmra.mxu1 %vm885_vm2, %v5475_v38  ;;  %4726 = vmatmul.mubr.msk.f32.gmra.mxu0 %vm885_vm2, %v5475_v38  ;;  %v851_v38 = vsub.s32 1, %v5864_v10 }
 0x168   : > { %1590 = vmatprep.mubr.f32.mxu1 %v5139_v1  ;;  %1847 = vmatprep.mubr.f32.mxu0 %v5139_v1 }
 0x169   : > { %v5896_v63 = vrot.slane %v843_v30, %v851_v38 }
 0x16b   : > { %4695 = vmatmul.mubr.msk.f32.gmra.mxu1 %vm885_vm2, %v5495_v44  ;;  %4727 = vmatmul.mubr.msk.f32.gmra.mxu0 %vm885_vm2, %v5495_v44  ;;  %v859_v44 = vsub.s32 3, %v5864_v10 }
 0x16c   : > { %1596 = vmatprep.mubr.f32.mxu1 %v5139_v1  ;;  %1853 = vmatprep.mubr.f32.mxu0 %v5139_v1 }
 0x16f   : > { %4696 = vmatmul.mubr.msk.f32.gmra.mxu1 %vm885_vm2, %v5517_v52  ;;  %4728 = vmatmul.mubr.msk.f32.gmra.mxu0 %vm885_vm2, %v5517_v52  ;;  %v5887_v52 = vrot.slane %v843_v30, %v847_v16 }
 0x170   : > { %1602 = vmatprep.mubr.f32.mxu1 %v5139_v1  ;;  %1859 = vmatprep.mubr.f32.mxu0 %v5139_v1 }
 0x173   : > { %4697 = vmatmul.mubr.msk.f32.gmra.mxu1 %vm885_vm2, %v5537_v58  ;;  %4729 = vmatmul.mubr.msk.f32.gmra.mxu0 %vm885_vm2, %v5537_v58  ;;  %v5891_v58 = vrot.slane %v843_v30, %v855_v24 }
 0x174   : > { %1608 = vmatprep.mubr.f32.mxu1 %v5139_v1  ;;  %1865 = vmatprep.mubr.f32.mxu0 %v5139_v1 }
 0x177   : > { %4698 = vmatmul.mubr.msk.f32.gmra.mxu1 %vm885_vm2, %v5558_v2  ;;  %4730 = vmatmul.mubr.msk.f32.gmra.mxu0 %vm885_vm2, %v5558_v2  ;;  %v5900_v2 = vrot.slane %v843_v30, %v859_v44 }
 0x178   : > { %1614 = vmatprep.mubr.f32.mxu1 %v5139_v1  ;;  %1871 = vmatprep.mubr.f32.mxu0 %v5139_v1 }
 0x17b   : > { %4699 = vmatmul.mubr.msk.f32.gmra.mxu1 %vm885_vm2, %v5570_v4  ;;  %4731 = vmatmul.mubr.msk.f32.gmra.mxu0 %vm885_vm2, %v5570_v4 }
 0x17c   : > { %1620 = vmatprep.mubr.f32.mxu1 %v5139_v1  ;;  %1877 = vmatprep.mubr.f32.mxu0 %v5139_v1 }
 0x17f   : > { %4700 = vmatmul.mubr.msk.f32.gmra.mxu1 %vm885_vm2, %v5580_v9  ;;  %4732 = vmatmul.mubr.msk.f32.gmra.mxu0 %vm885_vm2, %v5580_v9 }
 0x180   : > { %1626 = vmatprep.mubr.f32.mxu1 %v5139_v1  ;;  %1883 = vmatprep.mubr.f32.mxu0 %v5139_v1 }
 0x183   : > { %4701 = vmatmul.mubr.msk.f32.gmra.mxu1 %vm885_vm2, %v5588_v12  ;;  %4733 = vmatmul.mubr.msk.f32.gmra.mxu0 %vm885_vm2, %v5588_v12 }
 0x184   : > { %1632 = vmatprep.mubr.f32.mxu1 %v5139_v1  ;;  %1889 = vmatprep.mubr.f32.mxu0 %v5139_v1 }
 0x187   : > { %4702 = vmatmul.mubr.msk.f32.gmra.mxu1 %vm885_vm2, %v5598_v17  ;;  %4734 = vmatmul.mubr.msk.f32.gmra.mxu0 %vm885_vm2, %v5598_v17 }
 0x188   : > { %1638 = vmatprep.mubr.f32.mxu1 %v5139_v1  ;;  %1895 = vmatprep.mubr.f32.mxu0 %v5139_v1 }
 0x18b   : > { %4703 = vmatmul.mubr.msk.f32.gmra.mxu1 %vm885_vm2, %v5606_v19  ;;  %4735 = vmatmul.mubr.msk.f32.gmra.mxu0 %vm885_vm2, %v5606_v19 }
 0x18c   : > { %1644 = vmatprep.mubr.f32.mxu1 %v5139_v1  ;;  %1901 = vmatprep.mubr.f32.mxu0 %v5139_v1 }
 0x18f   : > { %4704 = vmatmul.mubr.msk.f32.gmra.mxu1 %vm885_vm2, %v5616_v23  ;;  %4736 = vmatmul.mubr.msk.f32.gmra.mxu0 %vm885_vm2, %v5616_v23 }
 0x190   : > { %1650 = vmatprep.mubr.f32.mxu1 %v5139_v1  ;;  %1907 = vmatprep.mubr.f32.mxu0 %v5139_v1 }
 0x193   : > { %4705 = vmatmul.mubr.msk.f32.gmra.mxu1 %vm885_vm2, %v5624_v26  ;;  %4737 = vmatmul.mubr.msk.f32.gmra.mxu0 %vm885_vm2, %v5624_v26 }
 0x194   : > { %1656 = vmatprep.mubr.f32.mxu1 %v5139_v1  ;;  %1913 = vmatprep.mubr.f32.mxu0 %v5139_v1 }
 0x197   : > { %v1048_v4 = vpop.f32.mrf.mxu1  ;;  %v1305_v9 = vpop.f32.mrf.mxu0  ;;  %4706 = vmatmul.mubr.msk.f32.gmra.mxu1 %vm885_vm2, %v5634_v31  ;;  %4738 = vmatmul.mubr.msk.f32.gmra.mxu0 %vm885_vm2, %v5634_v31 }
 0x198   : > { %v1049_v12 = vadd.f32 %v1048_v4, %v5887_v52  ;;  %v1306_v17 = vadd.f32 %v1305_v9, %v5891_v58  ;;  %1662 = vmatprep.mubr.f32.mxu1 %v5139_v1  ;;  %1919 = vmatprep.mubr.f32.mxu0 %v5139_v1 }
 0x199   : > { %v1050_v19 = vpop.f32.mrf.mxu1  ;;  %v1307_v23 = vpop.f32.mrf.mxu0 }
 0x19a   : > { %v2010_v26 = vmax.f32 %v1049_v12, 0.0  ;;  %v2012_v28 = vmax.f32 %v1306_v17, 0.0  ;;  %v1051_v29 = vadd.f32 %v1050_v19, %v5896_v63  ;;  %v1308_v31 = vadd.f32 %v1307_v23, %v5900_v2 }
 0x19b   : > { %v1054_v32 = vpop.f32.mrf.mxu1  ;;  %v1311_v34 = vpop.f32.mrf.mxu0  ;;  %4707 = vmatmul.mubr.msk.f32.gmra.mxu1 %vm885_vm2, %v5642_v33  ;;  %4739 = vmatmul.mubr.msk.f32.gmra.mxu0 %vm885_vm2, %v5642_v33 }
 0x19c   : > { %2266 = vst [vmem:[%s5915_s22] sm:$0xff] %v2010_v26  ;;  %2268 = vst [vmem:[%s5915_s22 + $0x10] sm:$0xff] %v2012_v28  ;;  %v2011_v35 = vmax.f32 %v1051_v29, 0.0  ;;  %v2013_v36 = vmax.f32 %v1308_v31, 0.0  ;;  %v1055_v39 = vadd.f32 %v1054_v32, %v5887_v52  ;;  %v1312_v41 = vadd.f32 %v1311_v34, %v5891_v58  ;;  %1668 = vmatprep.mubr.f32.mxu1 %v5139_v1 }
 0x19d   : > { %1925 = vmatprep.mubr.f32.mxu0 %v5139_v1  ;;  %v1056_v42 = vpop.f32.mrf.mxu1  ;;  %v1313_v43 = vpop.f32.mrf.mxu0 }
 0x19e   : > { %2267 = vst [vmem:[%s5915_s22 + $0x8] sm:$0xff] %v2011_v35  ;;  %2269 = vst [vmem:[%s5915_s22 + $0x18] sm:$0xff] %v2013_v36  ;;  %v2018_v46 = vmax.f32 %v1055_v39, 0.0  ;;  %v2020_v33 = vmax.f32 %v1312_v41, 0.0  ;;  %v1057_v48 = vadd.f32 %v1056_v42, %v5896_v63  ;;  %v1314_v49 = vadd.f32 %v1313_v43, %v5900_v2 }
 0x19f   : > { %v1060_v50 = vpop.f32.mrf.mxu1  ;;  %v1317_v53 = vpop.f32.mrf.mxu0  ;;  %4708 = vmatmul.mubr.msk.f32.gmra.mxu1 %vm885_vm2, %v5652_v37  ;;  %4740 = vmatmul.mubr.msk.f32.gmra.mxu0 %vm885_vm2, %v5652_v37 }
 0x1a0   : > { %2274 = vst [vmem:[%s5915_s22 + $0x40] sm:$0xff] %v2018_v46  ;;  %2276 = vst [vmem:[%s5915_s22 + $0x50] sm:$0xff] %v2020_v33  ;;  %v2019_v55 = vmax.f32 %v1057_v48, 0.0  ;;  %v2021_v56 = vmax.f32 %v1314_v49, 0.0  ;;  %v1061_v57 = vadd.f32 %v1060_v50, %v5887_v52  ;;  %v1318_v60 = vadd.f32 %v1317_v53, %v5891_v58  ;;  %1674 = vmatprep.mubr.f32.mxu1 %v5139_v1 }
 0x1a1   : > { %1931 = vmatprep.mubr.f32.mxu0 %v5139_v1  ;;  %v1062_v62 = vpop.f32.mrf.mxu1  ;;  %v1319_v0 = vpop.f32.mrf.mxu0 }
 0x1a2   : > { %2275 = vst [vmem:[%s5915_s22 + $0x48] sm:$0xff] %v2019_v55  ;;  %2277 = vst [vmem:[%s5915_s22 + $0x58] sm:$0xff] %v2021_v56  ;;  %v2026_v3 = vmax.f32 %v1061_v57, 0.0  ;;  %v2028_v37 = vmax.f32 %v1318_v60, 0.0  ;;  %v1063_v7 = vadd.f32 %v1062_v62, %v5896_v63  ;;  %v1320_v11 = vadd.f32 %v1319_v0, %v5900_v2 }
 0x1a3   : > { %v1066_v13 = vpop.f32.mrf.mxu1  ;;  %v1323_v14 = vpop.f32.mrf.mxu0  ;;  %4709 = vmatmul.mubr.msk.f32.gmra.mxu1 %vm885_vm2, %v5660_v40  ;;  %4741 = vmatmul.mubr.msk.f32.gmra.mxu0 %vm885_vm2, %v5660_v40 }
 0x1a4   : > { %2282 = vst [vmem:[%s5915_s22 + $0x80] sm:$0xff] %v2026_v3  ;;  %2284 = vst [vmem:[%s5915_s22 + $0x90] sm:$0xff] %v2028_v37  ;;  %v2027_v18 = vmax.f32 %v1063_v7, 0.0  ;;  %v2029_v21 = vmax.f32 %v1320_v11, 0.0  ;;  %v1067_v22 = vadd.f32 %v1066_v13, %v5887_v52  ;;  %v1324_v5 = vadd.f32 %v1323_v14, %v5891_v58  ;;  %1680 = vmatprep.mubr.f32.mxu1 %v5139_v1 }
 0x1a5   : > { %1937 = vmatprep.mubr.f32.mxu0 %v5139_v1  ;;  %v1068_v30 = vpop.f32.mrf.mxu1  ;;  %v1325_v4 = vpop.f32.mrf.mxu0 }
 0x1a6   : > { %2283 = vst [vmem:[%s5915_s22 + $0x88] sm:$0xff] %v2027_v18  ;;  %2285 = vst [vmem:[%s5915_s22 + $0x98] sm:$0xff] %v2029_v21  ;;  %v2034_v9 = vmax.f32 %v1067_v22, 0.0  ;;  %v2036_v40 = vmax.f32 %v1324_v5, 0.0  ;;  %v1069_v12 = vadd.f32 %v1068_v30, %v5896_v63  ;;  %v1326_v17 = vadd.f32 %v1325_v4, %v5900_v2 }
 0x1a7   : > { %v1072_v19 = vpop.f32.mrf.mxu1  ;;  %v1329_v23 = vpop.f32.mrf.mxu0  ;;  %4710 = vmatmul.mubr.msk.f32.gmra.mxu1 %vm885_vm2, %v5670_v45  ;;  %4742 = vmatmul.mubr.msk.f32.gmra.mxu0 %vm885_vm2, %v5670_v45 }
 0x1a8   : > { %2290 = vst [vmem:[%s5915_s22 + $0xc0] sm:$0xff] %v2034_v9  ;;  %2292 = vst [vmem:[%s5915_s22 + $0xd0] sm:$0xff] %v2036_v40  ;;  %v2035_v26 = vmax.f32 %v1069_v12, 0.0  ;;  %v2037_v28 = vmax.f32 %v1326_v17, 0.0  ;;  %v1073_v29 = vadd.f32 %v1072_v19, %v5887_v52  ;;  %v1330_v31 = vadd.f32 %v1329_v23, %v5891_v58  ;;  %1686 = vmatprep.mubr.f32.mxu1 %v5139_v1 }
 0x1a9   : > { %1943 = vmatprep.mubr.f32.mxu0 %v5139_v1  ;;  %v1074_v32 = vpop.f32.mrf.mxu1  ;;  %v1331_v34 = vpop.f32.mrf.mxu0 }
 0x1aa   : > { %2291 = vst [vmem:[%s5915_s22 + $0xc8] sm:$0xff] %v2035_v26  ;;  %2293 = vst [vmem:[%s5915_s22 + $0xd8] sm:$0xff] %v2037_v28  ;;  %v2042_v35 = vmax.f32 %v1073_v29, 0.0  ;;  %v2044_v45 = vmax.f32 %v1330_v31, 0.0  ;;  %v1075_v36 = vadd.f32 %v1074_v32, %v5896_v63  ;;  %v1332_v39 = vadd.f32 %v1331_v34, %v5900_v2 }
 0x1ab   : > { %v1078_v41 = vpop.f32.mrf.mxu1  ;;  %v1335_v42 = vpop.f32.mrf.mxu0  ;;  %4711 = vmatmul.mubr.msk.f32.gmra.mxu1 %vm885_vm2, %v5678_v47  ;;  %4743 = vmatmul.mubr.msk.f32.gmra.mxu0 %vm885_vm2, %v5678_v47 }
 0x1ac   : > { %2298 = vst [vmem:[%s5915_s22 + $0x100] sm:$0xff] %v2042_v35  ;;  %2300 = vst [vmem:[%s5915_s22 + $0x110] sm:$0xff] %v2044_v45  ;;  %v2043_v43 = vmax.f32 %v1075_v36, 0.0  ;;  %v2045_v46 = vmax.f32 %v1332_v39, 0.0  ;;  %v1079_v33 = vadd.f32 %v1078_v41, %v5887_v52  ;;  %v1336_v48 = vadd.f32 %v1335_v42, %v5891_v58  ;;  %1692 = vmatprep.mubr.f32.mxu1 %v5139_v1 }
 0x1ad   : > { %1949 = vmatprep.mubr.f32.mxu0 %v5139_v1  ;;  %v1080_v49 = vpop.f32.mrf.mxu1  ;;  %v1337_v50 = vpop.f32.mrf.mxu0 }
 0x1ae   : > { %2299 = vst [vmem:[%s5915_s22 + $0x108] sm:$0xff] %v2043_v43  ;;  %2301 = vst [vmem:[%s5915_s22 + $0x118] sm:$0xff] %v2045_v46  ;;  %v2050_v53 = vmax.f32 %v1079_v33, 0.0  ;;  %v2052_v47 = vmax.f32 %v1336_v48, 0.0  ;;  %v1081_v55 = vadd.f32 %v1080_v49, %v5896_v63  ;;  %v1338_v56 = vadd.f32 %v1337_v50, %v5900_v2 }
 0x1af   : > { %v1084_v57 = vpop.f32.mrf.mxu1  ;;  %v1341_v60 = vpop.f32.mrf.mxu0  ;;  %4712 = vmatmul.mubr.msk.f32.gmra.mxu1 %vm885_vm2, %v5688_v51  ;;  %4744 = vmatmul.mubr.msk.f32.gmra.mxu0 %vm885_vm2, %v5688_v51 }
 0x1b0   : > { %2306 = vst [vmem:[%s5915_s22 + $0x140] sm:$0xff] %v2050_v53  ;;  %2308 = vst [vmem:[%s5915_s22 + $0x150] sm:$0xff] %v2052_v47  ;;  %v2051_v62 = vmax.f32 %v1081_v55, 0.0  ;;  %v2053_v0 = vmax.f32 %v1338_v56, 0.0  ;;  %v1085_v3 = vadd.f32 %v1084_v57, %v5887_v52  ;;  %v1342_v37 = vadd.f32 %v1341_v60, %v5891_v58  ;;  %1698 = vmatprep.mubr.f32.mxu1 %v5139_v1 }
 0x1b1   : > { %1955 = vmatprep.mubr.f32.mxu0 %v5139_v1  ;;  %v1086_v7 = vpop.f32.mrf.mxu1  ;;  %v1343_v11 = vpop.f32.mrf.mxu0 }
 0x1b2   : > { %2307 = vst [vmem:[%s5915_s22 + $0x148] sm:$0xff] %v2051_v62  ;;  %2309 = vst [vmem:[%s5915_s22 + $0x158] sm:$0xff] %v2053_v0  ;;  %v2058_v13 = vmax.f32 %v1085_v3, 0.0  ;;  %v2060_v51 = vmax.f32 %v1342_v37, 0.0  ;;  %v1087_v14 = vadd.f32 %v1086_v7, %v5896_v63  ;;  %v1344_v18 = vadd.f32 %v1343_v11, %v5900_v2 }
 0x1b3   : > { %v1090_v21 = vpop.f32.mrf.mxu1  ;;  %v1347_v22 = vpop.f32.mrf.mxu0  ;;  %4713 = vmatmul.mubr.msk.f32.gmra.mxu1 %vm885_vm2, %v5696_v54  ;;  %4745 = vmatmul.mubr.msk.f32.gmra.mxu0 %vm885_vm2, %v5696_v54 }
 0x1b4   : > { %2314 = vst [vmem:[%s5915_s22 + $0x180] sm:$0xff] %v2058_v13  ;;  %2316 = vst [vmem:[%s5915_s22 + $0x190] sm:$0xff] %v2060_v51  ;;  %v2059_v5 = vmax.f32 %v1087_v14, 0.0  ;;  %v2061_v30 = vmax.f32 %v1344_v18, 0.0  ;;  %v1091_v4 = vadd.f32 %v1090_v21, %v5887_v52  ;;  %v1348_v9 = vadd.f32 %v1347_v22, %v5891_v58  ;;  %1704 = vmatprep.mubr.f32.mxu1 %v5139_v1 }
 0x1b5   : > { %1961 = vmatprep.mubr.f32.mxu0 %v5139_v1  ;;  %v1092_v40 = vpop.f32.mrf.mxu1  ;;  %v1349_v12 = vpop.f32.mrf.mxu0 }
 0x1b6   : > { %2315 = vst [vmem:[%s5915_s22 + $0x188] sm:$0xff] %v2059_v5  ;;  %2317 = vst [vmem:[%s5915_s22 + $0x198] sm:$0xff] %v2061_v30  ;;  %v2066_v17 = vmax.f32 %v1091_v4, 0.0  ;;  %v2068_v54 = vmax.f32 %v1348_v9, 0.0  ;;  %v1093_v19 = vadd.f32 %v1092_v40, %v5896_v63  ;;  %v1350_v23 = vadd.f32 %v1349_v12, %v5900_v2 }
 0x1b7   : > { %v1096_v26 = vpop.f32.mrf.mxu1  ;;  %v1353_v28 = vpop.f32.mrf.mxu0  ;;  %4714 = vmatmul.mubr.msk.f32.gmra.mxu1 %vm885_vm2, %v5706_v59  ;;  %4746 = vmatmul.mubr.msk.f32.gmra.mxu0 %vm885_vm2, %v5706_v59 }
 0x1b8   : > { %2322 = vst [vmem:[%s5915_s22 + $0x1c0] sm:$0xff] %v2066_v17  ;;  %2324 = vst [vmem:[%s5915_s22 + $0x1d0] sm:$0xff] %v2068_v54  ;;  %v2067_v29 = vmax.f32 %v1093_v19, 0.0  ;;  %v2069_v31 = vmax.f32 %v1350_v23, 0.0  ;;  %v1097_v32 = vadd.f32 %v1096_v26, %v5887_v52  ;;  %v1354_v34 = vadd.f32 %v1353_v28, %v5891_v58  ;;  %1710 = vmatprep.mubr.f32.mxu1 %v5139_v1 }
 0x1b9   : > { %1967 = vmatprep.mubr.f32.mxu0 %v5139_v1  ;;  %v1098_v35 = vpop.f32.mrf.mxu1  ;;  %v1355_v45 = vpop.f32.mrf.mxu0 }
 0x1ba   : > { %2323 = vst [vmem:[%s5915_s22 + $0x1c8] sm:$0xff] %v2067_v29  ;;  %2325 = vst [vmem:[%s5915_s22 + $0x1d8] sm:$0xff] %v2069_v31  ;;  %v2074_v36 = vmax.f32 %v1097_v32, 0.0  ;;  %v2076_v59 = vmax.f32 %v1354_v34, 0.0  ;;  %v1099_v39 = vadd.f32 %v1098_v35, %v5896_v63  ;;  %v1356_v41 = vadd.f32 %v1355_v45, %v5900_v2 }
 0x1bb   : > { %v1102_v42 = vpop.f32.mrf.mxu1  ;;  %v1359_v43 = vpop.f32.mrf.mxu0  ;;  %4715 = vmatmul.mubr.msk.f32.gmra.mxu1 %vm885_vm2, %v5714_v61  ;;  %4747 = vmatmul.mubr.msk.f32.gmra.mxu0 %vm885_vm2, %v5714_v61 }
 0x1bc   : > { %2330 = vst [vmem:[%s5915_s22 + $0x200] sm:$0xff] %v2074_v36  ;;  %2332 = vst [vmem:[%s5915_s22 + $0x210] sm:$0xff] %v2076_v59  ;;  %v2075_v46 = vmax.f32 %v1099_v39, 0.0  ;;  %v2077_v33 = vmax.f32 %v1356_v41, 0.0  ;;  %v1103_v48 = vadd.f32 %v1102_v42, %v5887_v52  ;;  %v1360_v49 = vadd.f32 %v1359_v43, %v5891_v58  ;;  %1716 = vmatprep.mubr.f32.mxu1 %v5139_v1 }
 0x1bd   : > { %1973 = vmatprep.mubr.f32.mxu0 %v5139_v1  ;;  %v1104_v50 = vpop.f32.mrf.mxu1  ;;  %v1361_v53 = vpop.f32.mrf.mxu0 }
 0x1be   : > { %2331 = vst [vmem:[%s5915_s22 + $0x208] sm:$0xff] %v2075_v46  ;;  %2333 = vst [vmem:[%s5915_s22 + $0x218] sm:$0xff] %v2077_v33  ;;  %v2082_v47 = vmax.f32 %v1103_v48, 0.0  ;;  %v2084_v61 = vmax.f32 %v1360_v49, 0.0  ;;  %v1105_v55 = vadd.f32 %v1104_v50, %v5896_v63  ;;  %v1362_v56 = vadd.f32 %v1361_v53, %v5900_v2 }
 0x1bf   : > { %v1108_v57 = vpop.f32.mrf.mxu1  ;;  %v1365_v60 = vpop.f32.mrf.mxu0  ;;  %4716 = vmatmul.mubr.msk.f32.gmra.mxu1 %vm885_vm2, %v5724_v6  ;;  %4748 = vmatmul.mubr.msk.f32.gmra.mxu0 %vm885_vm2, %v5724_v6 }
 0x1c0   : > { %2338 = vst [vmem:[%s5915_s22 + $0x240] sm:$0xff] %v2082_v47  ;;  %2340 = vst [vmem:[%s5915_s22 + $0x250] sm:$0xff] %v2084_v61  ;;  %v2083_v62 = vmax.f32 %v1105_v55, 0.0  ;;  %v2085_v0 = vmax.f32 %v1362_v56, 0.0  ;;  %v1109_v3 = vadd.f32 %v1108_v57, %v5887_v52  ;;  %v1366_v37 = vadd.f32 %v1365_v60, %v5891_v58  ;;  %1722 = vmatprep.mubr.f32.mxu1 %v5139_v1 }
 0x1c1   : > { %1979 = vmatprep.mubr.f32.mxu0 %v5139_v1  ;;  %v1110_v7 = vpop.f32.mrf.mxu1  ;;  %v1367_v11 = vpop.f32.mrf.mxu0 }
 0x1c2   : > { %2339 = vst [vmem:[%s5915_s22 + $0x248] sm:$0xff] %v2083_v62  ;;  %2341 = vst [vmem:[%s5915_s22 + $0x258] sm:$0xff] %v2085_v0  ;;  %v2090_v13 = vmax.f32 %v1109_v3, 0.0  ;;  %v2092_v6 = vmax.f32 %v1366_v37, 0.0  ;;  %v1111_v51 = vadd.f32 %v1110_v7, %v5896_v63  ;;  %v1368_v14 = vadd.f32 %v1367_v11, %v5900_v2 }
 0x1c3   : > { %v1114_v18 = vpop.f32.mrf.mxu1  ;;  %v1371_v21 = vpop.f32.mrf.mxu0  ;;  %4717 = vmatmul.mubr.msk.f32.gmra.mxu1 %vm885_vm2, %v5732_v8  ;;  %4749 = vmatmul.mubr.msk.f32.gmra.mxu0 %vm885_vm2, %v5732_v8 }
 0x1c4   : > { %2346 = vst [vmem:[%s5915_s22 + $0x280] sm:$0xff] %v2090_v13  ;;  %2348 = vst [vmem:[%s5915_s22 + $0x290] sm:$0xff] %v2092_v6  ;;  %v2091_v22 = vmax.f32 %v1111_v51, 0.0  ;;  %v2093_v5 = vmax.f32 %v1368_v14, 0.0  ;;  %v1115_v30 = vadd.f32 %v1114_v18, %v5887_v52  ;;  %v1372_v4 = vadd.f32 %v1371_v21, %v5891_v58  ;;  %1728 = vmatprep.mubr.f32.mxu1 %v5139_v1  ;;  %v5097_v21 = vld [vmem:[%s5223_s27] sm:$0xff] }
 0x1c5   : > { %1985 = vmatprep.mubr.f32.mxu0 %v5139_v1  ;;  %v1116_v9 = vpop.f32.mrf.mxu1  ;;  %v1373_v40 = vpop.f32.mrf.mxu0 }
 0x1c6   : > { %2347 = vst [vmem:[%s5915_s22 + $0x288] sm:$0xff] %v2091_v22  ;;  %2349 = vst [vmem:[%s5915_s22 + $0x298] sm:$0xff] %v2093_v5  ;;  %v2098_v12 = vmax.f32 %v1115_v30, 0.0  ;;  %v2100_v8 = vmax.f32 %v1372_v4, 0.0  ;;  %v1117_v17 = vadd.f32 %v1116_v9, %v5896_v63  ;;  %v1374_v54 = vadd.f32 %v1373_v40, %v5900_v2  ;;  %v5098_v22 = vld [vmem:[%s5223_s27 + $0x10] sm:$0xff] }
 0x1c7   : > { %v1120_v19 = vpop.f32.mrf.mxu1  ;;  %v1377_v23 = vpop.f32.mrf.mxu0  ;;  %4718 = vmatmul.mubr.msk.f32.gmra.mxu1 %vm885_vm2, %v5742_v15  ;;  %4750 = vmatmul.mubr.msk.f32.gmra.mxu0 %vm885_vm2, %v5742_v15 }
 0x1c8   : > { %2354 = vst [vmem:[%s5915_s22 + $0x2c0] sm:$0xff] %v2098_v12  ;;  %2356 = vst [vmem:[%s5915_s22 + $0x2d0] sm:$0xff] %v2100_v8  ;;  %v2099_v26 = vmax.f32 %v1117_v17, 0.0  ;;  %v2101_v28 = vmax.f32 %v1374_v54, 0.0  ;;  %v1121_v29 = vadd.f32 %v1120_v19, %v5887_v52  ;;  %v1378_v31 = vadd.f32 %v1377_v23, %v5891_v58  ;;  %1734 = vmatprep.mubr.f32.mxu1 %v5139_v1  ;;  %v5099_v17 = vld [vmem:[%s5223_s27 + $0x8] sm:$0xff]  ;;  %v5100_v54 = vld [vmem:[%s5223_s27 + $0x18] sm:$0xff] }
 0x1c9   : > { %1991 = vmatprep.mubr.f32.mxu0 %v5139_v1  ;;  %v1122_v32 = vpop.f32.mrf.mxu1  ;;  %v1379_v34 = vpop.f32.mrf.mxu0 }
 0x1ca   : > { %2355 = vst [vmem:[%s5915_s22 + $0x2c8] sm:$0xff] %v2099_v26  ;;  %2357 = vst [vmem:[%s5915_s22 + $0x2d8] sm:$0xff] %v2101_v28  ;;  %v2106_v35 = vmax.f32 %v1121_v29, 0.0  ;;  %v2108_v15 = vmax.f32 %v1378_v31, 0.0  ;;  %v1123_v45 = vadd.f32 %v1122_v32, %v5896_v63  ;;  %v1380_v36 = vadd.f32 %v1379_v34, %v5900_v2  ;;  %v5101_v29 = vld [vmem:[%s5223_s27 + $0x20] sm:$0xff] }
 0x1cb   : > { %v1126_v59 = vpop.f32.mrf.mxu1  ;;  %v1383_v39 = vpop.f32.mrf.mxu0  ;;  %4719 = vmatmul.mubr.msk.f32.gmra.mxu1 %vm885_vm2, %v5750_v20  ;;  %4751 = vmatmul.mubr.msk.f32.gmra.mxu0 %vm885_vm2, %v5750_v20 }
 0x1cc   : > { %2362 = vst [vmem:[%s5915_s22 + $0x300] sm:$0xff] %v2106_v35  ;;  %2364 = vst [vmem:[%s5915_s22 + $0x310] sm:$0xff] %v2108_v15  ;;  %v2107_v41 = vmax.f32 %v1123_v45, 0.0  ;;  %v2109_v42 = vmax.f32 %v1380_v36, 0.0  ;;  %v1127_v43 = vadd.f32 %v1126_v59, %v5887_v52  ;;  %v1384_v46 = vadd.f32 %v1383_v39, %v5891_v58  ;;  %1740 = vmatprep.mubr.f32.mxu1 %v5139_v1  ;;  %v5102_v39 = vld [vmem:[%s5223_s27 + $0x28] sm:$0xff] }
 0x1cd   : > { %1997 = vmatprep.mubr.f32.mxu0 %v5139_v1  ;;  %v1128_v33 = vpop.f32.mrf.mxu1  ;;  %v1385_v48 = vpop.f32.mrf.mxu0 }
 0x1ce   : > { %2363 = vst [vmem:[%s5915_s22 + $0x308] sm:$0xff] %v2107_v41  ;;  %2365 = vst [vmem:[%s5915_s22 + $0x318] sm:$0xff] %v2109_v42  ;;  %v2114_v49 = vmax.f32 %v1127_v43, 0.0  ;;  %v2116_v20 = vmax.f32 %v1384_v46, 0.0  ;;  %v1129_v50 = vadd.f32 %v1128_v33, %v5896_v63  ;;  %v1386_v53 = vadd.f32 %v1385_v48, %v5900_v2  ;;  %v5103_v33 = vld [vmem:[%s5223_s27 + $0x30] sm:$0xff] }
 0x1cf   : > { %v1132_v47 = vpop.f32.mrf.mxu1  ;;  %v1389_v61 = vpop.f32.mrf.mxu0  ;;  %4720 = vmatmul.mubr.msk.f32.gmra.mxu1 %vm885_vm2, %v5760_v25  ;;  %4752 = vmatmul.mubr.msk.f32.gmra.mxu0 %vm885_vm2, %v5760_v25 }
 0x1d0   : > { %2370 = vst [vmem:[%s5915_s22 + $0x340] sm:$0xff] %v2114_v49  ;;  %2372 = vst [vmem:[%s5915_s22 + $0x350] sm:$0xff] %v2116_v20  ;;  %v2115_v55 = vmax.f32 %v1129_v50, 0.0  ;;  %v2117_v56 = vmax.f32 %v1386_v53, 0.0  ;;  %v1133_v57 = vadd.f32 %v1132_v47, %v5887_v52  ;;  %v1390_v60 = vadd.f32 %v1389_v61, %v5891_v58  ;;  %1746 = vmatprep.mubr.f32.mxu1 %v5139_v1 }
 0x1d1   : > { %2003 = vmatprep.mubr.f32.mxu0 %v5139_v1  ;;  %v1134_v62 = vpop.f32.mrf.mxu1  ;;  %v1391_v0 = vpop.f32.mrf.mxu0 }
 0x1d2   : > { %2371 = vst [vmem:[%s5915_s22 + $0x348] sm:$0xff] %v2115_v55  ;;  %2373 = vst [vmem:[%s5915_s22 + $0x358] sm:$0xff] %v2117_v56  ;;  %v2122_v25 = vmax.f32 %v1133_v57, 0.0  ;;  %v2124_v3 = vmax.f32 %v1390_v60, 0.0  ;;  %v1135_v37 = vadd.f32 %v1134_v62, %v5896_v63  ;;  %v1392_v7 = vadd.f32 %v1391_v0, %v5900_v2  ;;  %v5104_v56 = vld [vmem:[%s5223_s27 + $0x38] sm:$0xff] }
 0x1d3   : > { %v1138_v11 = vpop.f32.mrf.mxu1  ;;  %v1395_v13 = vpop.f32.mrf.mxu0  ;;  %4721 = vmatmul.mubr.msk.f32.gmra.mxu1 %vm885_vm2, %v5768_v27  ;;  %4753 = vmatmul.mubr.msk.f32.gmra.mxu0 %vm885_vm2, %v5768_v27 }
 0x1d4   : > { %2378 = vst [vmem:[%s5915_s22 + $0x380] sm:$0xff] %v2122_v25  ;;  %2380 = vst [vmem:[%s5915_s22 + $0x390] sm:$0xff] %v2124_v3  ;;  %v2123_v6 = vmax.f32 %v1135_v37, 0.0  ;;  %v2125_v51 = vmax.f32 %v1392_v7, 0.0  ;;  %v1139_v14 = vadd.f32 %v1138_v11, %v5887_v52  ;;  %v1396_v18 = vadd.f32 %v1395_v13, %v5891_v58  ;;  %5038 = vmatprep.mubr.msk.f32.mxu0 %vm421_vm1, %v5097_v21  ;;  %v5105_v25 = vld [vmem:[%s5223_s27 + $0x40] sm:$0xff] }
 0x1d5   : > { %5041 = vmatprep.mubr.msk.f32.mxu1 %vm421_vm1, %v5098_v22  ;;  %v1140_v5 = vpop.f32.mrf.mxu1  ;;  %v1397_v27 = vpop.f32.mrf.mxu0 }
 0x1d6   : > { %2379 = vst [vmem:[%s5915_s22 + $0x388] sm:$0xff] %v2123_v6  ;;  %2381 = vst [vmem:[%s5915_s22 + $0x398] sm:$0xff] %v2125_v51  ;;  %v2130_v30 = vmax.f32 %v1139_v14, 0.0  ;;  %v2132_v4 = vmax.f32 %v1396_v18, 0.0  ;;  %v1141_v9 = vadd.f32 %v1140_v5, %v5896_v63  ;;  %v1398_v40 = vadd.f32 %v1397_v27, %v5900_v2  ;;  %v5106_v18 = vld [vmem:[%s5223_s27 + $0x48] sm:$0xff] }
 0x1d7   : > { %v1144_v12 = vpop.f32.mrf.mxu1  ;;  %v1401_v8 = vpop.f32.mrf.mxu0  ;;  %5039 = vmatmul.mubr.msk.f32.vlgmr.msra.gmra.mxu0 %vm421_vm1, %v5099_v17  ;;  %5042 = vmatmul.mubr.msk.f32.vlgmr.msra.gmra.mxu1 %vm421_vm1, %v5100_v54  ;;  %v2801_v54 = vld [vmem:[%s7702_s7 + $0x58] sm:$0xff] }
 0x1d8   : > { %2386 = vst [vmem:[%s5915_s22 + $0x3c0] sm:$0xff] %v2130_v30  ;;  %2388 = vst [vmem:[%s5915_s22 + $0x3d0] sm:$0xff] %v2132_v4  ;;  %v2131_v19 = vmax.f32 %v1141_v9, 0.0  ;;  %v2133_v23 = vmax.f32 %v1398_v40, 0.0  ;;  %v1145_v26 = vadd.f32 %v1144_v12, %v5887_v52  ;;  %v1402_v28 = vadd.f32 %v1401_v8, %v5891_v58  ;;  %5044 = vmatprep.mubr.msk.f32.mxu1 %vm421_vm1, %v5101_v29  ;;  %v5107_v30 = vld [vmem:[%s5223_s27 + $0x50] sm:$0xff] }
 0x1d9   : > { %3009 = vmatprep.mubr.f32.mxu0 %v5139_v1  ;;  %v1146_v31 = vpop.f32.mrf.mxu1  ;;  %v1403_v32 = vpop.f32.mrf.mxu0  ;;  %3230 = vmatprep.subr.mxu1 %v2801_v54 }
 0x1da   : > { %2387 = vst [vmem:[%s5915_s22 + $0x3c8] sm:$0xff] %v2131_v19  ;;  %2389 = vst [vmem:[%s5915_s22 + $0x3d8] sm:$0xff] %v2133_v23  ;;  %v2138_v34 = vmax.f32 %v1145_v26, 0.0  ;;  %v2140_v35 = vmax.f32 %v1402_v28, 0.0  ;;  %v1147_v15 = vadd.f32 %v1146_v31, %v5896_v63  ;;  %v1404_v45 = vadd.f32 %v1403_v32, %v5900_v2  ;;  %v2800_v19 = vld [vmem:[%s7702_s7 + $0x50] sm:$0xff]  ;;  %v5108_v28 = vld [vmem:[%s5223_s27 + $0x58] sm:$0xff] }
 0x1db   : > { %v1150_v36 = vpop.f32.mrf.mxu1  ;;  %v1407_v59 = vpop.f32.mrf.mxu0  ;;  %5045 = vmatmul.mubr.msk.f32.gmra.mxu1 %vm421_vm1, %v5102_v39 }
 0x1dc   : > { %2394 = vst [vmem:[%s5915_s22 + $0x400] sm:$0xff] %v2138_v34  ;;  %2396 = vst [vmem:[%s5915_s22 + $0x410] sm:$0xff] %v2140_v35  ;;  %v2139_v41 = vmax.f32 %v1147_v15, 0.0  ;;  %v2141_v42 = vmax.f32 %v1404_v45, 0.0  ;;  %v1151_v43 = vadd.f32 %v1150_v36, %v5887_v52  ;;  %v1408_v46 = vadd.f32 %v1407_v59, %v5891_v58  ;;  %5047 = vmatprep.mubr.msk.f32.mxu1 %vm421_vm1, %v5103_v33  ;;  %v5109_v35 = vld [vmem:[%s5223_s27 + $0x60] sm:$0xff] }
 0x1dd   : > { %v1152_v48 = vpop.f32.mrf.mxu1  ;;  %v1409_v49 = vpop.f32.mrf.mxu0  ;;  %3231 = vmatpush1.msra.mxu1 %v2800_v19 }
 0x1de   : > { %2395 = vst [vmem:[%s5915_s22 + $0x408] sm:$0xff] %v2139_v41  ;;  %2397 = vst [vmem:[%s5915_s22 + $0x418] sm:$0xff] %v2141_v42  ;;  %v2146_v20 = vmax.f32 %v1151_v43, 0.0  ;;  %v2148_v50 = vmax.f32 %v1408_v46, 0.0  ;;  %v1153_v53 = vadd.f32 %v1152_v48, %v5896_v63  ;;  %v1410_v47 = vadd.f32 %v1409_v49, %v5900_v2  ;;  %v5110_v46 = vld [vmem:[%s5223_s27 + $0x68] sm:$0xff] }
 0x1df   : > { %v1156_v61 = vpop.f32.mrf.mxu1  ;;  %v1413_v55 = vpop.f32.mrf.mxu0  ;;  %5048 = vmatmul.mubr.msk.f32.gmra.mxu1 %vm421_vm1, %v5104_v56 }
 0x1e0   : > { %2402 = vst [vmem:[%s5915_s22 + $0x440] sm:$0xff] %v2146_v20  ;;  %2404 = vst [vmem:[%s5915_s22 + $0x450] sm:$0xff] %v2148_v50  ;;  %v2147_v57 = vmax.f32 %v1153_v53, 0.0  ;;  %v2149_v60 = vmax.f32 %v1410_v47, 0.0  ;;  %v1157_v62 = vadd.f32 %v1156_v61, %v5887_v52  ;;  %v1414_v0 = vadd.f32 %v1413_v55, %v5891_v58  ;;  %5050 = vmatprep.mubr.msk.f32.mxu1 %vm421_vm1, %v5105_v25  ;;  %v5111_v50 = vld [vmem:[%s5223_s27 + $0x70] sm:$0xff] }
 0x1e1   : > { %v1158_v3 = vpop.f32.mrf.mxu1  ;;  %v1415_v37 = vpop.f32.mrf.mxu0 }
 0x1e2   : > { %2403 = vst [vmem:[%s5915_s22 + $0x448] sm:$0xff] %v2147_v57  ;;  %2405 = vst [vmem:[%s5915_s22 + $0x458] sm:$0xff] %v2149_v60  ;;  %v2154_v7 = vmax.f32 %v1157_v62, 0.0  ;;  %v2156_v11 = vmax.f32 %v1414_v0, 0.0  ;;  %v1159_v13 = vadd.f32 %v1158_v3, %v5896_v63  ;;  %v1416_v6 = vadd.f32 %v1415_v37, %v5900_v2  ;;  %v5112_v0 = vld [vmem:[%s5223_s27 + $0x78] sm:$0xff] }
 0x1e3   : > { %v1162_v51 = vpop.f32.mrf.mxu1  ;;  %v1419_v14 = vpop.f32.mrf.mxu0  ;;  %5051 = vmatmul.mubr.msk.f32.gmra.mxu1 %vm421_vm1, %v5106_v18 }
 0x1e4   : > { %2410 = vst [vmem:[%s5915_s22 + $0x480] sm:$0xff] %v2154_v7  ;;  %2412 = vst [vmem:[%s5915_s22 + $0x490] sm:$0xff] %v2156_v11  ;;  %v2155_v21 = vmax.f32 %v1159_v13, 0.0  ;;  %v2157_v22 = vmax.f32 %v1416_v6, 0.0  ;;  %v1163_v5 = vadd.f32 %v1162_v51, %v5887_v52  ;;  %v1420_v27 = vadd.f32 %v1419_v14, %v5891_v58  ;;  %5053 = vmatprep.mubr.msk.f32.mxu1 %vm421_vm1, %v5107_v30  ;;  %v5113_v11 = vld [vmem:[%s5223_s27 + $0x80] sm:$0xff] }
 0x1e5   : > { %v1164_v4 = vpop.f32.mrf.mxu1  ;;  %v1421_v9 = vpop.f32.mrf.mxu0 }
 0x1e6   : > { %2411 = vst [vmem:[%s5915_s22 + $0x488] sm:$0xff] %v2155_v21  ;;  %2413 = vst [vmem:[%s5915_s22 + $0x498] sm:$0xff] %v2157_v22  ;;  %v2162_v40 = vmax.f32 %v1163_v5, 0.0  ;;  %v2164_v12 = vmax.f32 %v1420_v27, 0.0  ;;  %v1165_v8 = vadd.f32 %v1164_v4, %v5896_v63  ;;  %v1422_v17 = vadd.f32 %v1421_v9, %v5900_v2  ;;  %v5114_v27 = vld [vmem:[%s5223_s27 + $0x88] sm:$0xff] }
 0x1e7   : > { %v1168_v23 = vpop.f32.mrf.mxu1  ;;  %v1425_v26 = vpop.f32.mrf.mxu0  ;;  %5054 = vmatmul.mubr.msk.f32.gmra.mxu1 %vm421_vm1, %v5108_v28 }
 0x1e8   : > { %2418 = vst [vmem:[%s5915_s22 + $0x4c0] sm:$0xff] %v2162_v40  ;;  %2420 = vst [vmem:[%s5915_s22 + $0x4d0] sm:$0xff] %v2164_v12  ;;  %v2163_v29 = vmax.f32 %v1165_v8, 0.0  ;;  %v2165_v31 = vmax.f32 %v1422_v17, 0.0  ;;  %v1169_v32 = vadd.f32 %v1168_v23, %v5887_v52  ;;  %v1426_v34 = vadd.f32 %v1425_v26, %v5891_v58  ;;  %5056 = vmatprep.mubr.msk.f32.mxu1 %vm421_vm1, %v5109_v35  ;;  %v5115_v12 = vld [vmem:[%s5223_s27 + $0x90] sm:$0xff] }
 0x1e9   : > { %v1170_v15 = vpop.f32.mrf.mxu1  ;;  %v1427_v45 = vpop.f32.mrf.mxu0 }
 0x1ea   : > { %2419 = vst [vmem:[%s5915_s22 + $0x4c8] sm:$0xff] %v2163_v29  ;;  %2421 = vst [vmem:[%s5915_s22 + $0x4d8] sm:$0xff] %v2165_v31  ;;  %v2170_v36 = vmax.f32 %v1169_v32, 0.0  ;;  %v2172_v59 = vmax.f32 %v1426_v34, 0.0  ;;  %v1171_v39 = vadd.f32 %v1170_v15, %v5896_v63  ;;  %v1428_v41 = vadd.f32 %v1427_v45, %v5900_v2  ;;  %v5116_v31 = vld [vmem:[%s5223_s27 + $0x98] sm:$0xff]  ;;  %v5117_v45 = vld [vmem:[%s5223_s27 + $0xa0] sm:$0xff] }
 0x1eb   : > { %v1174_v42 = vpop.f32.mrf.mxu1  ;;  %v1431_v43 = vpop.f32.mrf.mxu0  ;;  %5057 = vmatmul.mubr.msk.f32.gmra.mxu1 %vm421_vm1, %v5110_v46 }
 0x1ec   : > { %2426 = vst [vmem:[%s5915_s22 + $0x500] sm:$0xff] %v2170_v36  ;;  %2428 = vst [vmem:[%s5915_s22 + $0x510] sm:$0xff] %v2172_v59  ;;  %v2171_v33 = vmax.f32 %v1171_v39, 0.0  ;;  %v2173_v48 = vmax.f32 %v1428_v41, 0.0  ;;  %v1175_v49 = vadd.f32 %v1174_v42, %v5887_v52  ;;  %v1432_v20 = vadd.f32 %v1431_v43, %v5891_v58  ;;  %5059 = vmatprep.mubr.msk.f32.mxu1 %vm421_vm1, %v5111_v50 }
 0x1ed   : > { %v1176_v53 = vpop.f32.mrf.mxu1  ;;  %v1433_v47 = vpop.f32.mrf.mxu0 }
 0x1ee   : > { %2427 = vst [vmem:[%s5915_s22 + $0x508] sm:$0xff] %v2171_v33  ;;  %2429 = vst [vmem:[%s5915_s22 + $0x518] sm:$0xff] %v2173_v48  ;;  %v2178_v61 = vmax.f32 %v1175_v49, 0.0  ;;  %v2180_v55 = vmax.f32 %v1432_v20, 0.0  ;;  %v1177_v56 = vadd.f32 %v1176_v53, %v5896_v63  ;;  %v1434_v57 = vadd.f32 %v1433_v47, %v5900_v2  ;;  %v5118_v48 = vld [vmem:[%s5223_s27 + $0xa8] sm:$0xff]  ;;  %v5119_v47 = vld [vmem:[%s5223_s27 + $0xb0] sm:$0xff] }
 0x1ef   : > { %v1180_v60 = vpop.f32.mrf.mxu1  ;;  %v1437_v62 = vpop.f32.mrf.mxu0  ;;  %5060 = vmatmul.mubr.msk.f32.gmra.mxu1 %vm421_vm1, %v5112_v0 }
 0x1f0   : > { %2434 = vst [vmem:[%s5915_s22 + $0x540] sm:$0xff] %v2178_v61  ;;  %2436 = vst [vmem:[%s5915_s22 + $0x550] sm:$0xff] %v2180_v55  ;;  %v2179_v25 = vmax.f32 %v1177_v56, 0.0  ;;  %v2181_v3 = vmax.f32 %v1434_v57, 0.0  ;;  %v1181_v37 = vadd.f32 %v1180_v60, %v5887_v52  ;;  %v1438_v7 = vadd.f32 %v1437_v62, %v5891_v58  ;;  %5062 = vmatprep.mubr.msk.f32.mxu1 %vm421_vm1, %v5113_v11 }
 0x1f1   : > { %v1182_v13 = vpop.f32.mrf.mxu1  ;;  %v1439_v6 = vpop.f32.mrf.mxu0 }
 0x1f2   : > { %2435 = vst [vmem:[%s5915_s22 + $0x548] sm:$0xff] %v2179_v25  ;;  %2437 = vst [vmem:[%s5915_s22 + $0x558] sm:$0xff] %v2181_v3  ;;  %v2186_v51 = vmax.f32 %v1181_v37, 0.0  ;;  %v2188_v14 = vmax.f32 %v1438_v7, 0.0  ;;  %v1183_v18 = vadd.f32 %v1182_v13, %v5896_v63  ;;  %v1440_v21 = vadd.f32 %v1439_v6, %v5900_v2  ;;  %v5120_v3 = vld [vmem:[%s5223_s27 + $0xb8] sm:$0xff]  ;;  %v5121_v6 = vld [vmem:[%s5223_s27 + $0xc0] sm:$0xff] }
 0x1f3   : > { %v1186_v22 = vpop.f32.mrf.mxu1  ;;  %v1443_v5 = vpop.f32.mrf.mxu0  ;;  %5063 = vmatmul.mubr.msk.f32.gmra.mxu1 %vm421_vm1, %v5114_v27 }
 0x1f4   : > { %2442 = vst [vmem:[%s5915_s22 + $0x580] sm:$0xff] %v2186_v51  ;;  %2444 = vst [vmem:[%s5915_s22 + $0x590] sm:$0xff] %v2188_v14  ;;  %v2187_v30 = vmax.f32 %v1183_v18, 0.0  ;;  %v2189_v4 = vmax.f32 %v1440_v21, 0.0  ;;  %v1187_v9 = vadd.f32 %v1186_v22, %v5887_v52  ;;  %v1444_v40 = vadd.f32 %v1443_v5, %v5891_v58  ;;  %5065 = vmatprep.mubr.msk.f32.mxu1 %vm421_vm1, %v5115_v12 }
 0x1f5   : > { %v1188_v8 = vpop.f32.mrf.mxu1  ;;  %v1445_v17 = vpop.f32.mrf.mxu0 }
 0x1f6   : > { %2443 = vst [vmem:[%s5915_s22 + $0x588] sm:$0xff] %v2187_v30  ;;  %2445 = vst [vmem:[%s5915_s22 + $0x598] sm:$0xff] %v2189_v4  ;;  %v2194_v54 = vmax.f32 %v1187_v9, 0.0  ;;  %v2196_v19 = vmax.f32 %v1444_v40, 0.0  ;;  %v1189_v23 = vadd.f32 %v1188_v8, %v5896_v63  ;;  %v1446_v26 = vadd.f32 %v1445_v17, %v5900_v2  ;;  %v5122_v4 = vld [vmem:[%s5223_s27 + $0xc8] sm:$0xff]  ;;  %v5123_v17 = vld [vmem:[%s5223_s27 + $0xd0] sm:$0xff] }
 0x1f7   : > { %v1192_v28 = vpop.f32.mrf.mxu1  ;;  %v1449_v29 = vpop.f32.mrf.mxu0  ;;  %5066 = vmatmul.mubr.msk.f32.gmra.mxu1 %vm421_vm1, %v5116_v31 }
 0x1f8   : > { %2450 = vst [vmem:[%s5915_s22 + $0x5c0] sm:$0xff] %v2194_v54  ;;  %2452 = vst [vmem:[%s5915_s22 + $0x5d0] sm:$0xff] %v2196_v19  ;;  %v2195_v32 = vmax.f32 %v1189_v23, 0.0  ;;  %v2197_v34 = vmax.f32 %v1446_v26, 0.0  ;;  %v1193_v35 = vadd.f32 %v1192_v28, %v5887_v52  ;;  %v1450_v15 = vadd.f32 %v1449_v29, %v5891_v58  ;;  %5068 = vmatprep.mubr.msk.f32.mxu1 %vm421_vm1, %v5117_v45  ;;  %v2793_v54 = vld [vmem:[%s7702_s7 + $0x18] sm:$0xff]  ;;  %v2792_v19 = vld [vmem:[%s7702_s7 + $0x10] sm:$0xff] }
 0x1f9   : > { %v1194_v36 = vpop.f32.mrf.mxu1  ;;  %v1451_v59 = vpop.f32.mrf.mxu0  ;;  %3232 = vmatprep.subr.mxu1 %v2793_v54 }
 0x1fa   : > { %2451 = vst [vmem:[%s5915_s22 + $0x5c8] sm:$0xff] %v2195_v32  ;;  %2453 = vst [vmem:[%s5915_s22 + $0x5d8] sm:$0xff] %v2197_v34  ;;  %v2202_v39 = vmax.f32 %v1193_v35, 0.0  ;;  %v2204_v41 = vmax.f32 %v1450_v15, 0.0  ;;  %v1195_v42 = vadd.f32 %v1194_v36, %v5896_v63  ;;  %v1452_v43 = vadd.f32 %v1451_v59, %v5900_v2  ;;  %3233 = vmatpush1.msra.mxu1 %v2792_v19  ;;  %v5124_v15 = vld [vmem:[%s5223_s27 + $0xd8] sm:$0xff]  ;;  %v5129_v19 = vld [vmem:[%s7699_s4] sm:$0xff] }
 0x1fb   : > { %v1198_v46 = vpop.f32.mrf.mxu1  ;;  %v1455_v33 = vpop.f32.mrf.mxu0  ;;  %5069 = vmatmul.mubr.msk.f32.gmra.mxu1 %vm421_vm1, %v5118_v48 }
 0x1fc   : > { %2458 = vst [vmem:[%s5915_s22 + $0x600] sm:$0xff] %v2202_v39  ;;  %2460 = vst [vmem:[%s5915_s22 + $0x610] sm:$0xff] %v2204_v41  ;;  %v2203_v49 = vmax.f32 %v1195_v42, 0.0  ;;  %v2205_v20 = vmax.f32 %v1452_v43, 0.0  ;;  %v1199_v50 = vadd.f32 %v1198_v46, %v5887_v52  ;;  %v1456_v53 = vadd.f32 %v1455_v33, %v5891_v58  ;;  %5071 = vmatprep.mubr.msk.f32.mxu1 %vm421_vm1, %v5119_v47  ;;  %v5125_v41 = vld [vmem:[%s5223_s27 + $0xe0] sm:$0xff] }
 0x1fd   : > { %v1200_v61 = vpop.f32.mrf.mxu1  ;;  %v1457_v55 = vpop.f32.mrf.mxu0 }
 0x1fe   : > { %2459 = vst [vmem:[%s5915_s22 + $0x608] sm:$0xff] %v2203_v49  ;;  %2461 = vst [vmem:[%s5915_s22 + $0x618] sm:$0xff] %v2205_v20  ;;  %v2210_v56 = vmax.f32 %v1199_v50, 0.0  ;;  %v2212_v57 = vmax.f32 %v1456_v53, 0.0  ;;  %v1201_v60 = vadd.f32 %v1200_v61, %v5896_v63  ;;  %v1458_v62 = vadd.f32 %v1457_v55, %v5900_v2  ;;  %v5126_v53 = vld [vmem:[%s5223_s27 + $0xe8] sm:$0xff] }
 0x1ff   : > { %v1204_v0 = vpop.f32.mrf.mxu1  ;;  %v1461_v25 = vpop.f32.mrf.mxu0  ;;  %5072 = vmatmul.mubr.msk.f32.gmra.mxu1 %vm421_vm1, %v5120_v3 }
 0x200   : > { %2466 = vst [vmem:[%s5915_s22 + $0x640] sm:$0xff] %v2210_v56  ;;  %2468 = vst [vmem:[%s5915_s22 + $0x650] sm:$0xff] %v2212_v57  ;;  %v2211_v37 = vmax.f32 %v1201_v60, 0.0  ;;  %v2213_v7 = vmax.f32 %v1458_v62, 0.0  ;;  %v1205_v11 = vadd.f32 %v1204_v0, %v5887_v52  ;;  %v1462_v13 = vadd.f32 %v1461_v25, %v5891_v58  ;;  %5074 = vmatprep.mubr.msk.f32.mxu1 %vm421_vm1, %v5121_v6  ;;  %v5127_v57 = vld [vmem:[%s5223_s27 + $0xf0] sm:$0xff] }
 0x201   : > { %v1206_v51 = vpop.f32.mrf.mxu1  ;;  %v1463_v14 = vpop.f32.mrf.mxu0  ;;  %v871_v6 = vsub.s32 6, %v5864_v10 }
 0x202   : > { %2467 = vst [vmem:[%s5915_s22 + $0x648] sm:$0xff] %v2211_v37  ;;  %2469 = vst [vmem:[%s5915_s22 + $0x658] sm:$0xff] %v2213_v7  ;;  %v2218_v18 = vmax.f32 %v1205_v11, 0.0  ;;  %v2220_v21 = vmax.f32 %v1462_v13, 0.0  ;;  %v1207_v22 = vadd.f32 %v1206_v51, %v5896_v63  ;;  %v1464_v5 = vadd.f32 %v1463_v14, %v5900_v2  ;;  %v5128_v51 = vld [vmem:[%s5223_s27 + $0xf8] sm:$0xff] }
 0x203   : > { %v1210_v27 = vpop.f32.mrf.mxu1  ;;  %v1467_v30 = vpop.f32.mrf.mxu0  ;;  %5075 = vmatmul.mubr.msk.f32.gmra.mxu1 %vm421_vm1, %v5122_v4  ;;  %v863_v13 = vsub.s32 4, %v5864_v10  ;;  %v875_v4 = vsub.s32 7, %v5864_v10 }
 0x204   : > { %2474 = vst [vmem:[%s5915_s22 + $0x680] sm:$0xff] %v2218_v18  ;;  %2476 = vst [vmem:[%s5915_s22 + $0x690] sm:$0xff] %v2220_v21  ;;  %v2219_v9 = vmax.f32 %v1207_v22, 0.0  ;;  %v2221_v40 = vmax.f32 %v1464_v5, 0.0  ;;  %v1211_v12 = vadd.f32 %v1210_v27, %v5887_v52  ;;  %v1468_v8 = vadd.f32 %v1467_v30, %v5891_v58  ;;  %5077 = vmatprep.mubr.msk.f32.mxu1 %vm421_vm1, %v5123_v17 }
 0x205   : > { %v1212_v23 = vpop.f32.mrf.mxu1  ;;  %v1469_v26 = vpop.f32.mrf.mxu0  ;;  %v867_v30 = vsub.s32 5, %v5864_v10 }
 0x206   : > { %2475 = vst [vmem:[%s5915_s22 + $0x688] sm:$0xff] %v2219_v9  ;;  %2477 = vst [vmem:[%s5915_s22 + $0x698] sm:$0xff] %v2221_v40  ;;  %v2226_v28 = vmax.f32 %v1211_v12, 0.0  ;;  %v2228_v29 = vmax.f32 %v1468_v8, 0.0  ;;  %v1213_v31 = vadd.f32 %v1212_v23, %v5896_v63  ;;  %v1470_v32 = vadd.f32 %v1469_v26, %v5900_v2 }
 0x207   : > { %v1216_v34 = vpop.f32.mrf.mxu1  ;;  %v1473_v35 = vpop.f32.mrf.mxu0  ;;  %5078 = vmatmul.mubr.msk.f32.gmra.mxu1 %vm421_vm1, %v5124_v15  ;;  %v6334_v23 = vrot.slane %v5129_v19, %v863_v13  ;;  %v6338_v26 = vrot.slane %v5129_v19, %v871_v6  ;;  %v6346_v15 = vrot.slane %v5129_v19, %v867_v30 }
 0x208   : > { %2482 = vst [vmem:[%s5915_s22 + $0x6c0] sm:$0xff] %v2226_v28  ;;  %2484 = vst [vmem:[%s5915_s22 + $0x6d0] sm:$0xff] %v2228_v29  ;;  %v2227_v45 = vmax.f32 %v1213_v31, 0.0  ;;  %v2229_v36 = vmax.f32 %v1470_v32, 0.0  ;;  %v1217_v59 = vadd.f32 %v1216_v34, %v5887_v52  ;;  %v1474_v39 = vadd.f32 %v1473_v35, %v5891_v58  ;;  %5080 = vmatprep.mubr.msk.f32.mxu1 %vm421_vm1, %v5125_v41 }
 0x209   : > { %v1218_v42 = vpop.f32.mrf.mxu1  ;;  %v1475_v43 = vpop.f32.mrf.mxu0 }
 0x20a   : > { %2483 = vst [vmem:[%s5915_s22 + $0x6c8] sm:$0xff] %v2227_v45  ;;  %2485 = vst [vmem:[%s5915_s22 + $0x6d8] sm:$0xff] %v2229_v36  ;;  %v2234_v46 = vmax.f32 %v1217_v59, 0.0  ;;  %v2236_v33 = vmax.f32 %v1474_v39, 0.0  ;;  %v1219_v48 = vadd.f32 %v1218_v42, %v5896_v63  ;;  %v1476_v49 = vadd.f32 %v1475_v43, %v5900_v2 }
 0x20b   : > { %v1222_v20 = vpop.f32.mrf.mxu1  ;;  %v1479_v50 = vpop.f32.mrf.mxu0  ;;  %5081 = vmatmul.mubr.msk.f32.gmra.mxu1 %vm421_vm1, %v5126_v53  ;;  %v6350_v45 = vrot.slane %v5129_v19, %v875_v4 }
 0x20c   : > { %2490 = vst [vmem:[%s5915_s22 + $0x700] sm:$0xff] %v2234_v46  ;;  %2492 = vst [vmem:[%s5915_s22 + $0x710] sm:$0xff] %v2236_v33  ;;  %v2235_v47 = vmax.f32 %v1219_v48, 0.0  ;;  %v2237_v61 = vmax.f32 %v1476_v49, 0.0  ;;  %v1223_v55 = vadd.f32 %v1222_v20, %v5887_v52  ;;  %v1480_v56 = vadd.f32 %v1479_v50, %v5891_v58  ;;  %5083 = vmatprep.mubr.msk.f32.mxu1 %vm421_vm1, %v5127_v57 }
 0x20d   : > { %v1224_v60 = vpop.f32.mrf.mxu1  ;;  %v1481_v62 = vpop.f32.mrf.mxu0 }
 0x20e   : > { %2491 = vst [vmem:[%s5915_s22 + $0x708] sm:$0xff] %v2235_v47  ;;  %2493 = vst [vmem:[%s5915_s22 + $0x718] sm:$0xff] %v2237_v61  ;;  %v2242_v0 = vmax.f32 %v1223_v55, 0.0  ;;  %v2244_v25 = vmax.f32 %v1480_v56, 0.0  ;;  %v1225_v3 = vadd.f32 %v1224_v60, %v5896_v63  ;;  %v1482_v37 = vadd.f32 %v1481_v62, %v5900_v2  ;;  %v2798_v47 = vld [vmem:[%s7702_s7 + $0x40] sm:$0xff]  ;;  %v2791_v56 = vld [vmem:[%s7702_s7 + $0x8] sm:$0xff] }
 0x20f   : > { %v1228_v7 = vpop.f32.mrf.mxu1  ;;  %v1485_v11 = vpop.f32.mrf.mxu0  ;;  %5084 = vmatmul.mubr.msk.f32.gmra.mxu1 %vm421_vm1, %v5128_v51 }
 0x210   : > { %2498 = vst [vmem:[%s5915_s22 + $0x740] sm:$0xff] %v2242_v0  ;;  %2500 = vst [vmem:[%s5915_s22 + $0x750] sm:$0xff] %v2244_v25  ;;  %v2243_v14 = vmax.f32 %v1225_v3, 0.0  ;;  %v2245_v18 = vmax.f32 %v1482_v37, 0.0  ;;  %v1229_v21 = vadd.f32 %v1228_v7, %v5887_v52  ;;  %v1486_v22 = vadd.f32 %v1485_v11, %v5891_v58  ;;  %3266 = vmatprep.mubr.f32.mxu1 %v5139_v1  ;;  %v2790_v25 = vld [vmem:[%s7702_s7] sm:$0xff]  ;;  %v2803_v3 = vld [vmem:[%s7702_s7 + $0x68] sm:$0xff] }
 0x211   : > { %v1230_v5 = vpop.f32.mrf.mxu1  ;;  %v1487_v27 = vpop.f32.mrf.mxu0  ;;  %v2805_v37 = vld [vmem:[%s7702_s7 + $0x78] sm:$0xff] }
 0x212   : > { %2499 = vst [vmem:[%s5915_s22 + $0x748] sm:$0xff] %v2243_v14  ;;  %2501 = vst [vmem:[%s5915_s22 + $0x758] sm:$0xff] %v2245_v18  ;;  %v2250_v9 = vmax.f32 %v1229_v21, 0.0  ;;  %v2252_v40 = vmax.f32 %v1486_v22, 0.0  ;;  %v1231_v12 = vadd.f32 %v1230_v5, %v5896_v63  ;;  %v1488_v8 = vadd.f32 %v1487_v27, %v5900_v2  ;;  %3744 = vmatprep.subr.mxu1 %v2805_v37 }
 0x213   : > { %v1234_v17 = vpop.f32.mrf.mxu1  ;;  %v1491_v54 = vpop.f32.mrf.mxu0 }
 0x214   : > { %2506 = vst [vmem:[%s5915_s22 + $0x780] sm:$0xff] %v2250_v9  ;;  %2508 = vst [vmem:[%s5915_s22 + $0x790] sm:$0xff] %v2252_v40  ;;  %v2251_v28 = vmax.f32 %v1231_v12, 0.0  ;;  %v2253_v29 = vmax.f32 %v1488_v8, 0.0  ;;  %v1235_v31 = vadd.f32 %v1234_v17, %v5887_v52  ;;  %v1492_v32 = vadd.f32 %v1491_v54, %v5891_v58 }
 0x215   : > { %v1236_v34 = vpop.f32.mrf.mxu1  ;;  %v1493_v35 = vpop.f32.mrf.mxu0 }
 0x216   : > { %2507 = vst [vmem:[%s5915_s22 + $0x788] sm:$0xff] %v2251_v28  ;;  %2509 = vst [vmem:[%s5915_s22 + $0x798] sm:$0xff] %v2253_v29  ;;  %v2258_v36 = vmax.f32 %v1235_v31, 0.0  ;;  %v2260_v59 = vmax.f32 %v1492_v32, 0.0  ;;  %v1237_v52 = vadd.f32 %v1236_v34, %v5896_v63  ;;  %v1494_v58 = vadd.f32 %v1493_v35, %v5900_v2  ;;  %v2799_v63 = vld [vmem:[%s7702_s7 + $0x48] sm:$0xff] }
 0x217   : > { %v1562_v39 = vpop.f32.mrf.mxu1  ;;  %v1819_v41 = vpop.f32.mrf.mxu0  ;;  %2973 = vmatprep.subr.mxu0 %v2799_v63 }
 0x218   : > { %2514 = vst [vmem:[%s5915_s22 + $0x7c0] sm:$0xff] %v2258_v36  ;;  %2516 = vst [vmem:[%s5915_s22 + $0x7d0] sm:$0xff] %v2260_v59  ;;  %v2259_v42 = vmax.f32 %v1237_v52, 0.0  ;;  %v2261_v43 = vmax.f32 %v1494_v58, 0.0  ;;  %v1563_v46 = vadd.f32 %v1562_v39, %v6334_v23  ;;  %v1820_v33 = vadd.f32 %v1819_v41, %v6338_v26  ;;  %2974 = vmatpush1.msra.mxu0 %v2798_v47 }
 0x219   : > { %v1564_v48 = vpop.f32.mrf.mxu1  ;;  %v1821_v49 = vpop.f32.mrf.mxu0  ;;  %2975 = vmatprep.subr.mxu0 %v2791_v56 }
 0x21a   : > { %2515 = vst [vmem:[%s5915_s22 + $0x7c8] sm:$0xff] %v2259_v42  ;;  %2517 = vst [vmem:[%s5915_s22 + $0x7d8] sm:$0xff] %v2261_v43  ;;  %v2014_v2 = vmax.f32 %v1563_v46, 0.0  ;;  %v2016_v20 = vmax.f32 %v1820_v33, 0.0  ;;  %v1565_v50 = vadd.f32 %v1564_v48, %v6346_v15  ;;  %v1822_v53 = vadd.f32 %v1821_v49, %v6350_v45  ;;  %2976 = vmatpush1.msra.mxu0 %v2790_v25 }
 0x21b   : > { %v1568_v61 = vpop.f32.mrf.mxu1  ;;  %v1825_v55 = vpop.f32.mrf.mxu0  ;;  %3487 = vmatprep.subr.mxu0 %v2803_v3 }
 0x21c   : > { %2270 = vst [vmem:[%s5915_s22 + $0x20] sm:$0xff] %v2014_v2  ;;  %2272 = vst [vmem:[%s5915_s22 + $0x30] sm:$0xff] %v2016_v20  ;;  %v2015_v57 = vmax.f32 %v1565_v50, 0.0  ;;  %v2017_v60 = vmax.f32 %v1822_v53, 0.0  ;;  %v1569_v62 = vadd.f32 %v1568_v61, %v6334_v23  ;;  %v1826_v0 = vadd.f32 %v1825_v55, %v6338_v26 }
 0x21d   : > { %v1570_v7 = vpop.f32.mrf.mxu1  ;;  %v1827_v11 = vpop.f32.mrf.mxu0 }
 0x21e   : > { %2271 = vst [vmem:[%s5915_s22 + $0x28] sm:$0xff] %v2015_v57  ;;  %2273 = vst [vmem:[%s5915_s22 + $0x38] sm:$0xff] %v2017_v60  ;;  %v2022_v51 = vmax.f32 %v1569_v62, 0.0  ;;  %v2024_v14 = vmax.f32 %v1826_v0, 0.0  ;;  %v1571_v18 = vadd.f32 %v1570_v7, %v6346_v15  ;;  %v1828_v21 = vadd.f32 %v1827_v11, %v6350_v45 }
 0x21f   : > { %v1574_v22 = vpop.f32.mrf.mxu1  ;;  %v1831_v5 = vpop.f32.mrf.mxu0 }
 0x220   : > { %2278 = vst [vmem:[%s5915_s22 + $0x60] sm:$0xff] %v2022_v51  ;;  %2280 = vst [vmem:[%s5915_s22 + $0x70] sm:$0xff] %v2024_v14  ;;  %v2023_v27 = vmax.f32 %v1571_v18, 0.0  ;;  %v2025_v9 = vmax.f32 %v1828_v21, 0.0  ;;  %v1575_v40 = vadd.f32 %v1574_v22, %v6334_v23  ;;  %v1832_v12 = vadd.f32 %v1831_v5, %v6338_v26 }
 0x221   : > { %v1576_v8 = vpop.f32.mrf.mxu1  ;;  %v1833_v17 = vpop.f32.mrf.mxu0 }
 0x222   : > { %2279 = vst [vmem:[%s5915_s22 + $0x68] sm:$0xff] %v2023_v27  ;;  %2281 = vst [vmem:[%s5915_s22 + $0x78] sm:$0xff] %v2025_v9  ;;  %v2030_v54 = vmax.f32 %v1575_v40, 0.0  ;;  %v2032_v19 = vmax.f32 %v1832_v12, 0.0  ;;  %v1577_v28 = vadd.f32 %v1576_v8, %v6346_v15  ;;  %v1834_v29 = vadd.f32 %v1833_v17, %v6350_v45 }
 0x223   : > { %v1580_v31 = vpop.f32.mrf.mxu1  ;;  %v1837_v32 = vpop.f32.mrf.mxu0 }
 0x224   : > { %2286 = vst [vmem:[%s5915_s22 + $0xa0] sm:$0xff] %v2030_v54  ;;  %2288 = vst [vmem:[%s5915_s22 + $0xb0] sm:$0xff] %v2032_v19  ;;  %v2031_v34 = vmax.f32 %v1577_v28, 0.0  ;;  %v2033_v35 = vmax.f32 %v1834_v29, 0.0  ;;  %v1581_v36 = vadd.f32 %v1580_v31, %v6334_v23  ;;  %v1838_v59 = vadd.f32 %v1837_v32, %v6338_v26 }
 0x225   : > { %v1582_v52 = vpop.f32.mrf.mxu1  ;;  %v1839_v58 = vpop.f32.mrf.mxu0 }
 0x226   : > { %2287 = vst [vmem:[%s5915_s22 + $0xa8] sm:$0xff] %v2031_v34  ;;  %2289 = vst [vmem:[%s5915_s22 + $0xb8] sm:$0xff] %v2033_v35  ;;  %v2038_v39 = vmax.f32 %v1581_v36, 0.0  ;;  %v2040_v41 = vmax.f32 %v1838_v59, 0.0  ;;  %v1583_v42 = vadd.f32 %v1582_v52, %v6346_v15  ;;  %v1840_v43 = vadd.f32 %v1839_v58, %v6350_v45 }
 0x227   : > { %v1586_v46 = vpop.f32.mrf.mxu1  ;;  %v1843_v33 = vpop.f32.mrf.mxu0 }
 0x228   : > { %2294 = vst [vmem:[%s5915_s22 + $0xe0] sm:$0xff] %v2038_v39  ;;  %2296 = vst [vmem:[%s5915_s22 + $0xf0] sm:$0xff] %v2040_v41  ;;  %v2039_v48 = vmax.f32 %v1583_v42, 0.0  ;;  %v2041_v49 = vmax.f32 %v1840_v43, 0.0  ;;  %v1587_v63 = vadd.f32 %v1586_v46, %v6334_v23  ;;  %v1844_v2 = vadd.f32 %v1843_v33, %v6338_v26 }
 0x229   : > { %v1588_v20 = vpop.f32.mrf.mxu1  ;;  %v1845_v50 = vpop.f32.mrf.mxu0 }
 0x22a   : > { %2295 = vst [vmem:[%s5915_s22 + $0xe8] sm:$0xff] %v2039_v48  ;;  %2297 = vst [vmem:[%s5915_s22 + $0xf8] sm:$0xff] %v2041_v49  ;;  %v2046_v53 = vmax.f32 %v1587_v63, 0.0  ;;  %v2048_v47 = vmax.f32 %v1844_v2, 0.0  ;;  %v1589_v61 = vadd.f32 %v1588_v20, %v6346_v15  ;;  %v1846_v55 = vadd.f32 %v1845_v50, %v6350_v45 }
 0x22b   : > { %v1592_v56 = vpop.f32.mrf.mxu1  ;;  %v1849_v57 = vpop.f32.mrf.mxu0 }
 0x22c   : > { %2302 = vst [vmem:[%s5915_s22 + $0x120] sm:$0xff] %v2046_v53  ;;  %2304 = vst [vmem:[%s5915_s22 + $0x130] sm:$0xff] %v2048_v47  ;;  %v2047_v60 = vmax.f32 %v1589_v61, 0.0  ;;  %v2049_v62 = vmax.f32 %v1846_v55, 0.0  ;;  %v1593_v0 = vadd.f32 %v1592_v56, %v6334_v23  ;;  %v1850_v25 = vadd.f32 %v1849_v57, %v6338_v26 }
 0x22d   : > { %v1594_v3 = vpop.f32.mrf.mxu1  ;;  %v1851_v37 = vpop.f32.mrf.mxu0 }
 0x22e   : > { %2303 = vst [vmem:[%s5915_s22 + $0x128] sm:$0xff] %v2047_v60  ;;  %2305 = vst [vmem:[%s5915_s22 + $0x138] sm:$0xff] %v2049_v62  ;;  %v2054_v7 = vmax.f32 %v1593_v0, 0.0  ;;  %v2056_v11 = vmax.f32 %v1850_v25, 0.0  ;;  %v1595_v51 = vadd.f32 %v1594_v3, %v6346_v15  ;;  %v1852_v14 = vadd.f32 %v1851_v37, %v6350_v45 }
 0x22f   : > { %v1598_v18 = vpop.f32.mrf.mxu1  ;;  %v1855_v21 = vpop.f32.mrf.mxu0 }
 0x230   : > { %2310 = vst [vmem:[%s5915_s22 + $0x160] sm:$0xff] %v2054_v7  ;;  %2312 = vst [vmem:[%s5915_s22 + $0x170] sm:$0xff] %v2056_v11  ;;  %v2055_v22 = vmax.f32 %v1595_v51, 0.0  ;;  %v2057_v5 = vmax.f32 %v1852_v14, 0.0  ;;  %v1599_v27 = vadd.f32 %v1598_v18, %v6334_v23  ;;  %v1856_v9 = vadd.f32 %v1855_v21, %v6338_v26 }
 0x231   : > { %v1600_v40 = vpop.f32.mrf.mxu1  ;;  %v1857_v12 = vpop.f32.mrf.mxu0 }
 0x232   : > { %2311 = vst [vmem:[%s5915_s22 + $0x168] sm:$0xff] %v2055_v22  ;;  %2313 = vst [vmem:[%s5915_s22 + $0x178] sm:$0xff] %v2057_v5  ;;  %v2062_v8 = vmax.f32 %v1599_v27, 0.0  ;;  %v2064_v17 = vmax.f32 %v1856_v9, 0.0  ;;  %v1601_v54 = vadd.f32 %v1600_v40, %v6346_v15  ;;  %v1858_v19 = vadd.f32 %v1857_v12, %v6350_v45 }
 0x233   : > { %v1604_v28 = vpop.f32.mrf.mxu1  ;;  %v1861_v29 = vpop.f32.mrf.mxu0 }
 0x234   : > { %2318 = vst [vmem:[%s5915_s22 + $0x1a0] sm:$0xff] %v2062_v8  ;;  %2320 = vst [vmem:[%s5915_s22 + $0x1b0] sm:$0xff] %v2064_v17  ;;  %v2063_v31 = vmax.f32 %v1601_v54, 0.0  ;;  %v2065_v32 = vmax.f32 %v1858_v19, 0.0  ;;  %v1605_v34 = vadd.f32 %v1604_v28, %v6334_v23  ;;  %v1862_v35 = vadd.f32 %v1861_v29, %v6338_v26 }
 0x235   : > { %v1606_v36 = vpop.f32.mrf.mxu1  ;;  %v1863_v59 = vpop.f32.mrf.mxu0 }
 0x236   : > { %2319 = vst [vmem:[%s5915_s22 + $0x1a8] sm:$0xff] %v2063_v31  ;;  %2321 = vst [vmem:[%s5915_s22 + $0x1b8] sm:$0xff] %v2065_v32  ;;  %v2070_v52 = vmax.f32 %v1605_v34, 0.0  ;;  %v2072_v58 = vmax.f32 %v1862_v35, 0.0  ;;  %v1607_v39 = vadd.f32 %v1606_v36, %v6346_v15  ;;  %v1864_v41 = vadd.f32 %v1863_v59, %v6350_v45 }
 0x237   : > { %v1610_v42 = vpop.f32.mrf.mxu1  ;;  %v1867_v43 = vpop.f32.mrf.mxu0 }
 0x238   : > { %2326 = vst [vmem:[%s5915_s22 + $0x1e0] sm:$0xff] %v2070_v52  ;;  %2328 = vst [vmem:[%s5915_s22 + $0x1f0] sm:$0xff] %v2072_v58  ;;  %v2071_v46 = vmax.f32 %v1607_v39, 0.0  ;;  %v2073_v33 = vmax.f32 %v1864_v41, 0.0  ;;  %v1611_v48 = vadd.f32 %v1610_v42, %v6334_v23  ;;  %v1868_v49 = vadd.f32 %v1867_v43, %v6338_v26 }
 0x239   : > { %v1612_v63 = vpop.f32.mrf.mxu1  ;;  %v1869_v2 = vpop.f32.mrf.mxu0 }
 0x23a   : > { %2327 = vst [vmem:[%s5915_s22 + $0x1e8] sm:$0xff] %v2071_v46  ;;  %2329 = vst [vmem:[%s5915_s22 + $0x1f8] sm:$0xff] %v2073_v33  ;;  %v2078_v20 = vmax.f32 %v1611_v48, 0.0  ;;  %v2080_v50 = vmax.f32 %v1868_v49, 0.0  ;;  %v1613_v53 = vadd.f32 %v1612_v63, %v6346_v15  ;;  %v1870_v47 = vadd.f32 %v1869_v2, %v6350_v45 }
 0x23b   : > { %v1616_v61 = vpop.f32.mrf.mxu1  ;;  %v1873_v55 = vpop.f32.mrf.mxu0 }
 0x23c   : > { %2334 = vst [vmem:[%s5915_s22 + $0x220] sm:$0xff] %v2078_v20  ;;  %2336 = vst [vmem:[%s5915_s22 + $0x230] sm:$0xff] %v2080_v50  ;;  %v2079_v56 = vmax.f32 %v1613_v53, 0.0  ;;  %v2081_v57 = vmax.f32 %v1870_v47, 0.0  ;;  %v1617_v60 = vadd.f32 %v1616_v61, %v6334_v23  ;;  %v1874_v62 = vadd.f32 %v1873_v55, %v6338_v26 }
 0x23d   : > { %v1618_v0 = vpop.f32.mrf.mxu1  ;;  %v1875_v25 = vpop.f32.mrf.mxu0 }
 0x23e   : > { %2335 = vst [vmem:[%s5915_s22 + $0x228] sm:$0xff] %v2079_v56  ;;  %2337 = vst [vmem:[%s5915_s22 + $0x238] sm:$0xff] %v2081_v57  ;;  %v2086_v3 = vmax.f32 %v1617_v60, 0.0  ;;  %v2088_v37 = vmax.f32 %v1874_v62, 0.0  ;;  %v1619_v7 = vadd.f32 %v1618_v0, %v6346_v15  ;;  %v1876_v11 = vadd.f32 %v1875_v25, %v6350_v45 }
 0x23f   : > { %v1622_v51 = vpop.f32.mrf.mxu1  ;;  %v1879_v14 = vpop.f32.mrf.mxu0 }
 0x240   : > { %2342 = vst [vmem:[%s5915_s22 + $0x260] sm:$0xff] %v2086_v3  ;;  %2344 = vst [vmem:[%s5915_s22 + $0x270] sm:$0xff] %v2088_v37  ;;  %v2087_v18 = vmax.f32 %v1619_v7, 0.0  ;;  %v2089_v21 = vmax.f32 %v1876_v11, 0.0  ;;  %v1623_v22 = vadd.f32 %v1622_v51, %v6334_v23  ;;  %v1880_v5 = vadd.f32 %v1879_v14, %v6338_v26 }
 0x241   : > { %v1624_v27 = vpop.f32.mrf.mxu1  ;;  %v1881_v9 = vpop.f32.mrf.mxu0 }
 0x242   : > { %2343 = vst [vmem:[%s5915_s22 + $0x268] sm:$0xff] %v2087_v18  ;;  %2345 = vst [vmem:[%s5915_s22 + $0x278] sm:$0xff] %v2089_v21  ;;  %v2094_v40 = vmax.f32 %v1623_v22, 0.0  ;;  %v2096_v12 = vmax.f32 %v1880_v5, 0.0  ;;  %v1625_v8 = vadd.f32 %v1624_v27, %v6346_v15  ;;  %v1882_v17 = vadd.f32 %v1881_v9, %v6350_v45 }
 0x243   : > { %v1628_v54 = vpop.f32.mrf.mxu1  ;;  %v1885_v19 = vpop.f32.mrf.mxu0 }
 0x244   : > { %2350 = vst [vmem:[%s5915_s22 + $0x2a0] sm:$0xff] %v2094_v40  ;;  %2352 = vst [vmem:[%s5915_s22 + $0x2b0] sm:$0xff] %v2096_v12  ;;  %v2095_v28 = vmax.f32 %v1625_v8, 0.0  ;;  %v2097_v29 = vmax.f32 %v1882_v17, 0.0  ;;  %v1629_v31 = vadd.f32 %v1628_v54, %v6334_v23  ;;  %v1886_v32 = vadd.f32 %v1885_v19, %v6338_v26 }
 0x245   : > { %v1630_v34 = vpop.f32.mrf.mxu1  ;;  %v1887_v35 = vpop.f32.mrf.mxu0 }
 0x246   : > { %2351 = vst [vmem:[%s5915_s22 + $0x2a8] sm:$0xff] %v2095_v28  ;;  %2353 = vst [vmem:[%s5915_s22 + $0x2b8] sm:$0xff] %v2097_v29  ;;  %v2102_v36 = vmax.f32 %v1629_v31, 0.0  ;;  %v2104_v59 = vmax.f32 %v1886_v32, 0.0  ;;  %v1631_v52 = vadd.f32 %v1630_v34, %v6346_v15  ;;  %v1888_v58 = vadd.f32 %v1887_v35, %v6350_v45 }
 0x247   : > { %v1634_v39 = vpop.f32.mrf.mxu1  ;;  %v1891_v41 = vpop.f32.mrf.mxu0 }
 0x248   : > { %2358 = vst [vmem:[%s5915_s22 + $0x2e0] sm:$0xff] %v2102_v36  ;;  %2360 = vst [vmem:[%s5915_s22 + $0x2f0] sm:$0xff] %v2104_v59  ;;  %v2103_v42 = vmax.f32 %v1631_v52, 0.0  ;;  %v2105_v43 = vmax.f32 %v1888_v58, 0.0  ;;  %v1635_v46 = vadd.f32 %v1634_v39, %v6334_v23  ;;  %v1892_v33 = vadd.f32 %v1891_v41, %v6338_v26 }
 0x249   : > { %v1636_v48 = vpop.f32.mrf.mxu1  ;;  %v1893_v49 = vpop.f32.mrf.mxu0 }
 0x24a   : > { %2359 = vst [vmem:[%s5915_s22 + $0x2e8] sm:$0xff] %v2103_v42  ;;  %2361 = vst [vmem:[%s5915_s22 + $0x2f8] sm:$0xff] %v2105_v43  ;;  %v2110_v63 = vmax.f32 %v1635_v46, 0.0  ;;  %v2112_v2 = vmax.f32 %v1892_v33, 0.0  ;;  %v1637_v20 = vadd.f32 %v1636_v48, %v6346_v15  ;;  %v1894_v50 = vadd.f32 %v1893_v49, %v6350_v45 }
 0x24b   : > { %v1640_v53 = vpop.f32.mrf.mxu1  ;;  %v1897_v47 = vpop.f32.mrf.mxu0 }
 0x24c   : > { %2366 = vst [vmem:[%s5915_s22 + $0x320] sm:$0xff] %v2110_v63  ;;  %2368 = vst [vmem:[%s5915_s22 + $0x330] sm:$0xff] %v2112_v2  ;;  %v2111_v61 = vmax.f32 %v1637_v20, 0.0  ;;  %v2113_v55 = vmax.f32 %v1894_v50, 0.0  ;;  %v1641_v56 = vadd.f32 %v1640_v53, %v6334_v23  ;;  %v1898_v57 = vadd.f32 %v1897_v47, %v6338_v26 }
 0x24d   : > { %v1642_v60 = vpop.f32.mrf.mxu1  ;;  %v1899_v62 = vpop.f32.mrf.mxu0 }
 0x24e   : > { %2367 = vst [vmem:[%s5915_s22 + $0x328] sm:$0xff] %v2111_v61  ;;  %2369 = vst [vmem:[%s5915_s22 + $0x338] sm:$0xff] %v2113_v55  ;;  %v2118_v0 = vmax.f32 %v1641_v56, 0.0  ;;  %v2120_v25 = vmax.f32 %v1898_v57, 0.0  ;;  %v1643_v3 = vadd.f32 %v1642_v60, %v6346_v15  ;;  %v1900_v37 = vadd.f32 %v1899_v62, %v6350_v45 }
 0x24f   : > { %v1646_v7 = vpop.f32.mrf.mxu1  ;;  %v1903_v11 = vpop.f32.mrf.mxu0 }
 0x250   : > { %2374 = vst [vmem:[%s5915_s22 + $0x360] sm:$0xff] %v2118_v0  ;;  %2376 = vst [vmem:[%s5915_s22 + $0x370] sm:$0xff] %v2120_v25  ;;  %v2119_v51 = vmax.f32 %v1643_v3, 0.0  ;;  %v2121_v14 = vmax.f32 %v1900_v37, 0.0  ;;  %v1647_v18 = vadd.f32 %v1646_v7, %v6334_v23  ;;  %v1904_v21 = vadd.f32 %v1903_v11, %v6338_v26 }
 0x251   : > { %v1648_v22 = vpop.f32.mrf.mxu1  ;;  %v1905_v5 = vpop.f32.mrf.mxu0 }
 0x252   : > { %2375 = vst [vmem:[%s5915_s22 + $0x368] sm:$0xff] %v2119_v51  ;;  %2377 = vst [vmem:[%s5915_s22 + $0x378] sm:$0xff] %v2121_v14  ;;  %v2126_v27 = vmax.f32 %v1647_v18, 0.0  ;;  %v2128_v9 = vmax.f32 %v1904_v21, 0.0  ;;  %v1649_v40 = vadd.f32 %v1648_v22, %v6346_v15  ;;  %v1906_v12 = vadd.f32 %v1905_v5, %v6350_v45 }
 0x253   : > { %v1652_v8 = vpop.f32.mrf.mxu1  ;;  %v1909_v17 = vpop.f32.mrf.mxu0 }
 0x254   : > { %2382 = vst [vmem:[%s5915_s22 + $0x3a0] sm:$0xff] %v2126_v27  ;;  %2384 = vst [vmem:[%s5915_s22 + $0x3b0] sm:$0xff] %v2128_v9  ;;  %v2127_v54 = vmax.f32 %v1649_v40, 0.0  ;;  %v2129_v19 = vmax.f32 %v1906_v12, 0.0  ;;  %v1653_v28 = vadd.f32 %v1652_v8, %v6334_v23  ;;  %v1910_v29 = vadd.f32 %v1909_v17, %v6338_v26 }
 0x255   : > { %v1654_v31 = vpop.f32.mrf.mxu1  ;;  %v1911_v32 = vpop.f32.mrf.mxu0 }
 0x256   : > { %2383 = vst [vmem:[%s5915_s22 + $0x3a8] sm:$0xff] %v2127_v54  ;;  %2385 = vst [vmem:[%s5915_s22 + $0x3b8] sm:$0xff] %v2129_v19  ;;  %v2134_v34 = vmax.f32 %v1653_v28, 0.0  ;;  %v2136_v35 = vmax.f32 %v1910_v29, 0.0  ;;  %v1655_v36 = vadd.f32 %v1654_v31, %v6346_v15  ;;  %v1912_v59 = vadd.f32 %v1911_v32, %v6350_v45 }
 0x257   : > { %v1658_v52 = vpop.f32.mrf.mxu1  ;;  %v1915_v58 = vpop.f32.mrf.mxu0 }
 0x258   : > { %2390 = vst [vmem:[%s5915_s22 + $0x3e0] sm:$0xff] %v2134_v34  ;;  %2392 = vst [vmem:[%s5915_s22 + $0x3f0] sm:$0xff] %v2136_v35  ;;  %v2135_v39 = vmax.f32 %v1655_v36, 0.0  ;;  %v2137_v41 = vmax.f32 %v1912_v59, 0.0  ;;  %v1659_v42 = vadd.f32 %v1658_v52, %v6334_v23  ;;  %v1916_v43 = vadd.f32 %v1915_v58, %v6338_v26 }
 0x259   : > { %v1660_v46 = vpop.f32.mrf.mxu1  ;;  %v1917_v33 = vpop.f32.mrf.mxu0 }
 0x25a   : > { %2391 = vst [vmem:[%s5915_s22 + $0x3e8] sm:$0xff] %v2135_v39  ;;  %2393 = vst [vmem:[%s5915_s22 + $0x3f8] sm:$0xff] %v2137_v41  ;;  %v2142_v48 = vmax.f32 %v1659_v42, 0.0  ;;  %v2144_v49 = vmax.f32 %v1916_v43, 0.0  ;;  %v1661_v63 = vadd.f32 %v1660_v46, %v6346_v15  ;;  %v1918_v2 = vadd.f32 %v1917_v33, %v6350_v45 }
 0x25b   : > { %v1664_v20 = vpop.f32.mrf.mxu1  ;;  %v1921_v50 = vpop.f32.mrf.mxu0 }
 0x25c   : > { %2398 = vst [vmem:[%s5915_s22 + $0x420] sm:$0xff] %v2142_v48  ;;  %2400 = vst [vmem:[%s5915_s22 + $0x430] sm:$0xff] %v2144_v49  ;;  %v2143_v53 = vmax.f32 %v1661_v63, 0.0  ;;  %v2145_v47 = vmax.f32 %v1918_v2, 0.0  ;;  %v1665_v61 = vadd.f32 %v1664_v20, %v6334_v23  ;;  %v1922_v55 = vadd.f32 %v1921_v50, %v6338_v26 }
 0x25d   : > { %v1666_v56 = vpop.f32.mrf.mxu1  ;;  %v1923_v57 = vpop.f32.mrf.mxu0 }
 0x25e   : > { %2399 = vst [vmem:[%s5915_s22 + $0x428] sm:$0xff] %v2143_v53  ;;  %2401 = vst [vmem:[%s5915_s22 + $0x438] sm:$0xff] %v2145_v47  ;;  %v2150_v60 = vmax.f32 %v1665_v61, 0.0  ;;  %v2152_v62 = vmax.f32 %v1922_v55, 0.0  ;;  %v1667_v0 = vadd.f32 %v1666_v56, %v6346_v15  ;;  %v1924_v25 = vadd.f32 %v1923_v57, %v6350_v45 }
 0x25f   : > { %v1670_v3 = vpop.f32.mrf.mxu1  ;;  %v1927_v37 = vpop.f32.mrf.mxu0 }
 0x260   : > { %2406 = vst [vmem:[%s5915_s22 + $0x460] sm:$0xff] %v2150_v60  ;;  %2408 = vst [vmem:[%s5915_s22 + $0x470] sm:$0xff] %v2152_v62  ;;  %v2151_v7 = vmax.f32 %v1667_v0, 0.0  ;;  %v2153_v11 = vmax.f32 %v1924_v25, 0.0  ;;  %v1671_v51 = vadd.f32 %v1670_v3, %v6334_v23  ;;  %v1928_v14 = vadd.f32 %v1927_v37, %v6338_v26 }
 0x261   : > { %v1672_v18 = vpop.f32.mrf.mxu1  ;;  %v1929_v21 = vpop.f32.mrf.mxu0 }
 0x262   : > { %2407 = vst [vmem:[%s5915_s22 + $0x468] sm:$0xff] %v2151_v7  ;;  %2409 = vst [vmem:[%s5915_s22 + $0x478] sm:$0xff] %v2153_v11  ;;  %v2158_v22 = vmax.f32 %v1671_v51, 0.0  ;;  %v2160_v5 = vmax.f32 %v1928_v14, 0.0  ;;  %v1673_v27 = vadd.f32 %v1672_v18, %v6346_v15  ;;  %v1930_v9 = vadd.f32 %v1929_v21, %v6350_v45 }
 0x263   : > { %v1676_v40 = vpop.f32.mrf.mxu1  ;;  %v1933_v12 = vpop.f32.mrf.mxu0 }
 0x264   : > { %2414 = vst [vmem:[%s5915_s22 + $0x4a0] sm:$0xff] %v2158_v22  ;;  %2416 = vst [vmem:[%s5915_s22 + $0x4b0] sm:$0xff] %v2160_v5  ;;  %v2159_v8 = vmax.f32 %v1673_v27, 0.0  ;;  %v2161_v17 = vmax.f32 %v1930_v9, 0.0  ;;  %v1677_v54 = vadd.f32 %v1676_v40, %v6334_v23  ;;  %v1934_v19 = vadd.f32 %v1933_v12, %v6338_v26 }
 0x265   : > { %v1678_v28 = vpop.f32.mrf.mxu1  ;;  %v1935_v29 = vpop.f32.mrf.mxu0 }
 0x266   : > { %2415 = vst [vmem:[%s5915_s22 + $0x4a8] sm:$0xff] %v2159_v8  ;;  %2417 = vst [vmem:[%s5915_s22 + $0x4b8] sm:$0xff] %v2161_v17  ;;  %v2166_v31 = vmax.f32 %v1677_v54, 0.0  ;;  %v2168_v32 = vmax.f32 %v1934_v19, 0.0  ;;  %v1679_v34 = vadd.f32 %v1678_v28, %v6346_v15  ;;  %v1936_v35 = vadd.f32 %v1935_v29, %v6350_v45 }
 0x267   : > { %v1682_v36 = vpop.f32.mrf.mxu1  ;;  %v1939_v59 = vpop.f32.mrf.mxu0 }
 0x268   : > { %2422 = vst [vmem:[%s5915_s22 + $0x4e0] sm:$0xff] %v2166_v31  ;;  %2424 = vst [vmem:[%s5915_s22 + $0x4f0] sm:$0xff] %v2168_v32  ;;  %v2167_v52 = vmax.f32 %v1679_v34, 0.0  ;;  %v2169_v58 = vmax.f32 %v1936_v35, 0.0  ;;  %v1683_v39 = vadd.f32 %v1682_v36, %v6334_v23  ;;  %v1940_v41 = vadd.f32 %v1939_v59, %v6338_v26 }
 0x269   : > { %v1684_v42 = vpop.f32.mrf.mxu1  ;;  %v1941_v43 = vpop.f32.mrf.mxu0 }
 0x26a   : > { %2423 = vst [vmem:[%s5915_s22 + $0x4e8] sm:$0xff] %v2167_v52  ;;  %2425 = vst [vmem:[%s5915_s22 + $0x4f8] sm:$0xff] %v2169_v58  ;;  %v2174_v46 = vmax.f32 %v1683_v39, 0.0  ;;  %v2176_v33 = vmax.f32 %v1940_v41, 0.0  ;;  %v1685_v48 = vadd.f32 %v1684_v42, %v6346_v15  ;;  %v1942_v49 = vadd.f32 %v1941_v43, %v6350_v45 }
 0x26b   : > { %v1688_v63 = vpop.f32.mrf.mxu1  ;;  %v1945_v2 = vpop.f32.mrf.mxu0 }
 0x26c   : > { %2430 = vst [vmem:[%s5915_s22 + $0x520] sm:$0xff] %v2174_v46  ;;  %2432 = vst [vmem:[%s5915_s22 + $0x530] sm:$0xff] %v2176_v33  ;;  %v2175_v20 = vmax.f32 %v1685_v48, 0.0  ;;  %v2177_v50 = vmax.f32 %v1942_v49, 0.0  ;;  %v1689_v53 = vadd.f32 %v1688_v63, %v6334_v23  ;;  %v1946_v47 = vadd.f32 %v1945_v2, %v6338_v26 }
 0x26d   : > { %v1690_v61 = vpop.f32.mrf.mxu1  ;;  %v1947_v55 = vpop.f32.mrf.mxu0 }
 0x26e   : > { %2431 = vst [vmem:[%s5915_s22 + $0x528] sm:$0xff] %v2175_v20  ;;  %2433 = vst [vmem:[%s5915_s22 + $0x538] sm:$0xff] %v2177_v50  ;;  %v2182_v56 = vmax.f32 %v1689_v53, 0.0  ;;  %v2184_v57 = vmax.f32 %v1946_v47, 0.0  ;;  %v1691_v60 = vadd.f32 %v1690_v61, %v6346_v15  ;;  %v1948_v62 = vadd.f32 %v1947_v55, %v6350_v45 }
 0x26f   : > { %v1694_v0 = vpop.f32.mrf.mxu1  ;;  %v1951_v25 = vpop.f32.mrf.mxu0 }
 0x270   : > { %2438 = vst [vmem:[%s5915_s22 + $0x560] sm:$0xff] %v2182_v56  ;;  %2440 = vst [vmem:[%s5915_s22 + $0x570] sm:$0xff] %v2184_v57  ;;  %v2183_v3 = vmax.f32 %v1691_v60, 0.0  ;;  %v2185_v37 = vmax.f32 %v1948_v62, 0.0  ;;  %v1695_v7 = vadd.f32 %v1694_v0, %v6334_v23  ;;  %v1952_v11 = vadd.f32 %v1951_v25, %v6338_v26 }
 0x271   : > { %v1696_v51 = vpop.f32.mrf.mxu1  ;;  %v1953_v14 = vpop.f32.mrf.mxu0 }
 0x272   : > { %2439 = vst [vmem:[%s5915_s22 + $0x568] sm:$0xff] %v2183_v3  ;;  %2441 = vst [vmem:[%s5915_s22 + $0x578] sm:$0xff] %v2185_v37  ;;  %v2190_v18 = vmax.f32 %v1695_v7, 0.0  ;;  %v2192_v21 = vmax.f32 %v1952_v11, 0.0  ;;  %v1697_v22 = vadd.f32 %v1696_v51, %v6346_v15  ;;  %v1954_v5 = vadd.f32 %v1953_v14, %v6350_v45 }
 0x273   : > { %v1700_v27 = vpop.f32.mrf.mxu1  ;;  %v1957_v9 = vpop.f32.mrf.mxu0 }
 0x274   : > { %2446 = vst [vmem:[%s5915_s22 + $0x5a0] sm:$0xff] %v2190_v18  ;;  %2448 = vst [vmem:[%s5915_s22 + $0x5b0] sm:$0xff] %v2192_v21  ;;  %v2191_v40 = vmax.f32 %v1697_v22, 0.0  ;;  %v2193_v12 = vmax.f32 %v1954_v5, 0.0  ;;  %v1701_v8 = vadd.f32 %v1700_v27, %v6334_v23  ;;  %v1958_v17 = vadd.f32 %v1957_v9, %v6338_v26 }
 0x275   : > { %v1702_v54 = vpop.f32.mrf.mxu1  ;;  %v1959_v19 = vpop.f32.mrf.mxu0 }
 0x276   : > { %2447 = vst [vmem:[%s5915_s22 + $0x5a8] sm:$0xff] %v2191_v40  ;;  %2449 = vst [vmem:[%s5915_s22 + $0x5b8] sm:$0xff] %v2193_v12  ;;  %v2198_v28 = vmax.f32 %v1701_v8, 0.0  ;;  %v2200_v29 = vmax.f32 %v1958_v17, 0.0  ;;  %v1703_v31 = vadd.f32 %v1702_v54, %v6346_v15  ;;  %v1960_v32 = vadd.f32 %v1959_v19, %v6350_v45 }
 0x277   : > { %v1706_v34 = vpop.f32.mrf.mxu1  ;;  %v1963_v35 = vpop.f32.mrf.mxu0 }
 0x278   : > { %2454 = vst [vmem:[%s5915_s22 + $0x5e0] sm:$0xff] %v2198_v28  ;;  %2456 = vst [vmem:[%s5915_s22 + $0x5f0] sm:$0xff] %v2200_v29  ;;  %v2199_v36 = vmax.f32 %v1703_v31, 0.0  ;;  %v2201_v59 = vmax.f32 %v1960_v32, 0.0  ;;  %v1707_v52 = vadd.f32 %v1706_v34, %v6334_v23  ;;  %v1964_v58 = vadd.f32 %v1963_v35, %v6338_v26 }
 0x279   : > { %v1708_v39 = vpop.f32.mrf.mxu1  ;;  %v1965_v41 = vpop.f32.mrf.mxu0 }
 0x27a   : > { %2455 = vst [vmem:[%s5915_s22 + $0x5e8] sm:$0xff] %v2199_v36  ;;  %2457 = vst [vmem:[%s5915_s22 + $0x5f8] sm:$0xff] %v2201_v59  ;;  %v2206_v42 = vmax.f32 %v1707_v52, 0.0  ;;  %v2208_v43 = vmax.f32 %v1964_v58, 0.0  ;;  %v1709_v46 = vadd.f32 %v1708_v39, %v6346_v15  ;;  %v1966_v33 = vadd.f32 %v1965_v41, %v6350_v45 }
 0x27b   : > { %v1712_v48 = vpop.f32.mrf.mxu1  ;;  %v1969_v49 = vpop.f32.mrf.mxu0 }
 0x27c   : > { %2462 = vst [vmem:[%s5915_s22 + $0x620] sm:$0xff] %v2206_v42  ;;  %2464 = vst [vmem:[%s5915_s22 + $0x630] sm:$0xff] %v2208_v43  ;;  %v2207_v63 = vmax.f32 %v1709_v46, 0.0  ;;  %v2209_v2 = vmax.f32 %v1966_v33, 0.0  ;;  %v1713_v20 = vadd.f32 %v1712_v48, %v6334_v23  ;;  %v1970_v50 = vadd.f32 %v1969_v49, %v6338_v26 }
 0x27d   : > { %v1714_v53 = vpop.f32.mrf.mxu1  ;;  %v1971_v47 = vpop.f32.mrf.mxu0 }
 0x27e   : > { %2463 = vst [vmem:[%s5915_s22 + $0x628] sm:$0xff] %v2207_v63  ;;  %2465 = vst [vmem:[%s5915_s22 + $0x638] sm:$0xff] %v2209_v2  ;;  %v2214_v61 = vmax.f32 %v1713_v20, 0.0  ;;  %v2216_v55 = vmax.f32 %v1970_v50, 0.0  ;;  %v1715_v56 = vadd.f32 %v1714_v53, %v6346_v15  ;;  %v1972_v57 = vadd.f32 %v1971_v47, %v6350_v45 }
 0x27f   : > { %v1718_v60 = vpop.f32.mrf.mxu1  ;;  %v1975_v62 = vpop.f32.mrf.mxu0 }
 0x280   : > { %2470 = vst [vmem:[%s5915_s22 + $0x660] sm:$0xff] %v2214_v61  ;;  %2472 = vst [vmem:[%s5915_s22 + $0x670] sm:$0xff] %v2216_v55  ;;  %v2215_v0 = vmax.f32 %v1715_v56, 0.0  ;;  %v2217_v25 = vmax.f32 %v1972_v57, 0.0  ;;  %v1719_v3 = vadd.f32 %v1718_v60, %v6334_v23  ;;  %v1976_v37 = vadd.f32 %v1975_v62, %v6338_v26 }
 0x281   : > { %v1720_v7 = vpop.f32.mrf.mxu1  ;;  %v1977_v11 = vpop.f32.mrf.mxu0 }
 0x282   : > { %2471 = vst [vmem:[%s5915_s22 + $0x668] sm:$0xff] %v2215_v0  ;;  %2473 = vst [vmem:[%s5915_s22 + $0x678] sm:$0xff] %v2217_v25  ;;  %v2222_v51 = vmax.f32 %v1719_v3, 0.0  ;;  %v2224_v14 = vmax.f32 %v1976_v37, 0.0  ;;  %v1721_v18 = vadd.f32 %v1720_v7, %v6346_v15  ;;  %v1978_v21 = vadd.f32 %v1977_v11, %v6350_v45 }
 0x283   : > { %v1724_v22 = vpop.f32.mrf.mxu1  ;;  %v1981_v5 = vpop.f32.mrf.mxu0 }
 0x284   : > { %2478 = vst [vmem:[%s5915_s22 + $0x6a0] sm:$0xff] %v2222_v51  ;;  %2480 = vst [vmem:[%s5915_s22 + $0x6b0] sm:$0xff] %v2224_v14  ;;  %v2223_v27 = vmax.f32 %v1721_v18, 0.0  ;;  %v2225_v9 = vmax.f32 %v1978_v21, 0.0  ;;  %v1725_v40 = vadd.f32 %v1724_v22, %v6334_v23  ;;  %v1982_v12 = vadd.f32 %v1981_v5, %v6338_v26 }
 0x285   : > { %v1726_v8 = vpop.f32.mrf.mxu1  ;;  %v1983_v17 = vpop.f32.mrf.mxu0 }
 0x286   : > { %2479 = vst [vmem:[%s5915_s22 + $0x6a8] sm:$0xff] %v2223_v27  ;;  %2481 = vst [vmem:[%s5915_s22 + $0x6b8] sm:$0xff] %v2225_v9  ;;  %v2230_v54 = vmax.f32 %v1725_v40, 0.0  ;;  %v2232_v19 = vmax.f32 %v1982_v12, 0.0  ;;  %v1727_v28 = vadd.f32 %v1726_v8, %v6346_v15  ;;  %v1984_v29 = vadd.f32 %v1983_v17, %v6350_v45 }
 0x287   : > { %v1730_v31 = vpop.f32.mrf.mxu1  ;;  %v1987_v32 = vpop.f32.mrf.mxu0 }
 0x288   : > { %2486 = vst [vmem:[%s5915_s22 + $0x6e0] sm:$0xff] %v2230_v54  ;;  %2488 = vst [vmem:[%s5915_s22 + $0x6f0] sm:$0xff] %v2232_v19  ;;  %v2231_v34 = vmax.f32 %v1727_v28, 0.0  ;;  %v2233_v35 = vmax.f32 %v1984_v29, 0.0  ;;  %v1731_v36 = vadd.f32 %v1730_v31, %v6334_v23  ;;  %v1988_v59 = vadd.f32 %v1987_v32, %v6338_v26 }
 0x289   : > { %v1732_v52 = vpop.f32.mrf.mxu1  ;;  %v1989_v58 = vpop.f32.mrf.mxu0 }
 0x28a   : > { %2487 = vst [vmem:[%s5915_s22 + $0x6e8] sm:$0xff] %v2231_v34  ;;  %2489 = vst [vmem:[%s5915_s22 + $0x6f8] sm:$0xff] %v2233_v35  ;;  %v2238_v39 = vmax.f32 %v1731_v36, 0.0  ;;  %v2240_v41 = vmax.f32 %v1988_v59, 0.0  ;;  %v1733_v42 = vadd.f32 %v1732_v52, %v6346_v15  ;;  %v1990_v43 = vadd.f32 %v1989_v58, %v6350_v45  ;;  %v2802_v35 = vld [vmem:[%s7702_s7 + $0x60] sm:$0xff]  ;;  %v2804_v36 = vld [vmem:[%s7702_s7 + $0x70] sm:$0xff] }
 0x28b   : > { %v1736_v46 = vpop.f32.mrf.mxu1  ;;  %v1993_v33 = vpop.f32.mrf.mxu0  ;;  %v2795_v52 = vld [vmem:[%s7702_s7 + $0x28] sm:$0xff]  ;;  %v2797_v58 = vld [vmem:[%s7702_s7 + $0x38] sm:$0xff] }
 0x28c   : > { %2494 = vst [vmem:[%s5915_s22 + $0x720] sm:$0xff] %v2238_v39  ;;  %2496 = vst [vmem:[%s5915_s22 + $0x730] sm:$0xff] %v2240_v41  ;;  %v2239_v48 = vmax.f32 %v1733_v42, 0.0  ;;  %v2241_v49 = vmax.f32 %v1990_v43, 0.0  ;;  %v1737_v63 = vadd.f32 %v1736_v46, %v6334_v23  ;;  %v1994_v2 = vadd.f32 %v1993_v33, %v6338_v26  ;;  %v2794_v43 = vld [vmem:[%s7702_s7 + $0x20] sm:$0xff]  ;;  %v2796_v46 = vld [vmem:[%s7702_s7 + $0x30] sm:$0xff] }
 0x28d   : > { %v1738_v20 = vpop.f32.mrf.mxu1  ;;  %v1995_v50 = vpop.f32.mrf.mxu0 }
 0x28e   : > { %2495 = vst [vmem:[%s5915_s22 + $0x728] sm:$0xff] %v2239_v48  ;;  %2497 = vst [vmem:[%s5915_s22 + $0x738] sm:$0xff] %v2241_v49  ;;  %v2246_v53 = vmax.f32 %v1737_v63, 0.0  ;;  %v2248_v47 = vmax.f32 %v1994_v2, 0.0  ;;  %v1739_v61 = vadd.f32 %v1738_v20, %v6346_v15  ;;  %v1996_v55 = vadd.f32 %v1995_v50, %v6350_v45 }
 0x28f   : > { %v1742_v56 = vpop.f32.mrf.mxu1  ;;  %v1999_v57 = vpop.f32.mrf.mxu0 }
 0x290   : > { %2502 = vst [vmem:[%s5915_s22 + $0x760] sm:$0xff] %v2246_v53  ;;  %2504 = vst [vmem:[%s5915_s22 + $0x770] sm:$0xff] %v2248_v47  ;;  %v2247_v60 = vmax.f32 %v1739_v61, 0.0  ;;  %v2249_v62 = vmax.f32 %v1996_v55, 0.0  ;;  %v1743_v0 = vadd.f32 %v1742_v56, %v6334_v23  ;;  %v2000_v25 = vadd.f32 %v1999_v57, %v6338_v26 }
 0x291   : > { %v1744_v3 = vpop.f32.mrf.mxu1  ;;  %v2001_v37 = vpop.f32.mrf.mxu0 }
 0x292   : > { %2503 = vst [vmem:[%s5915_s22 + $0x768] sm:$0xff] %v2247_v60  ;;  %2505 = vst [vmem:[%s5915_s22 + $0x778] sm:$0xff] %v2249_v62  ;;  %v2254_v7 = vmax.f32 %v1743_v0, 0.0  ;;  %v2256_v11 = vmax.f32 %v2000_v25, 0.0  ;;  %v1745_v51 = vadd.f32 %v1744_v3, %v6346_v15  ;;  %v2002_v14 = vadd.f32 %v2001_v37, %v6350_v45 }
 0x293   : > { %v1748_v18 = vpop.f32.mrf.mxu1  ;;  %v2005_v21 = vpop.f32.mrf.mxu0 }
 0x294   : > { %2510 = vst [vmem:[%s5915_s22 + $0x7a0] sm:$0xff] %v2254_v7  ;;  %2512 = vst [vmem:[%s5915_s22 + $0x7b0] sm:$0xff] %v2256_v11  ;;  %v2255_v22 = vmax.f32 %v1745_v51, 0.0  ;;  %v2257_v5 = vmax.f32 %v2002_v14, 0.0  ;;  %v1749_v27 = vadd.f32 %v1748_v18, %v6334_v23  ;;  %v2006_v9 = vadd.f32 %v2005_v21, %v6338_v26  ;;  %v6635_v23 = vld [vmem:[%s7701_s6] ss:$0 sm:$0xff] }
 0x295   : > { %v1750_v40 = vpop.f32.mrf.mxu1  ;;  %v2007_v12 = vpop.f32.mrf.mxu0 }
 0x296   : > { %2511 = vst [vmem:[%s5915_s22 + $0x7a8] sm:$0xff] %v2255_v22  ;;  %2513 = vst [vmem:[%s5915_s22 + $0x7b8] sm:$0xff] %v2257_v5  ;;  %v2262_v8 = vmax.f32 %v1749_v27, 0.0  ;;  %v2264_v17 = vmax.f32 %v2006_v9, 0.0  ;;  %v1751_v54 = vadd.f32 %v1750_v40, %v6346_v15  ;;  %v2008_v19 = vadd.f32 %v2007_v12, %v6350_v45 }
 0x297   : > { %v5040_v28 = vpop.f32.mrf.mxu0  ;;  %v5043_v32 = vpop.f32.mrf.mxu1 }
 0x298   : > { %2518 = vst [vmem:[%s5915_s22 + $0x7e0] sm:$0xff] %v2262_v8  ;;  %2520 = vst [vmem:[%s5915_s22 + $0x7f0] sm:$0xff] %v2264_v17  ;;  %v2263_v29 = vmax.f32 %v1751_v54, 0.0  ;;  %v2265_v31 = vmax.f32 %v2008_v19, 0.0  ;;  %v2605_v15 = vadd.f32 %v5040_v28, %v6635_v23  ;;  %v2615_v33 = vadd.f32 %v5043_v32, %v6635_v23 }
 0x299   : > { %v2599_v26 = vpop.f32.mrf.mxu0  ;;  %v2609_v59 = vpop.f32.mrf.mxu1 }
 0x29a   : > { %2519 = vst [vmem:[%s5915_s22 + $0x7e8] sm:$0xff] %v2263_v29  ;;  %2521 = vst [vmem:[%s5915_s22 + $0x7f8] sm:$0xff] %v2265_v31  ;;  %v2600_v34 = vadd.f32 %v6635_v23, %v2599_v26  ;;  %v6659_v39 = vmax.f32 %v2605_v15, 0.0  ;;  %v2610_v41 = vadd.f32 %v6635_v23, %v2609_v59  ;;  %v6685_v63 = vmax.f32 %v2615_v33, 0.0 }
 0x29b   : > { %v5046_v42 = vpop.f32.mrf.mxu1 }
 0x29c   : > { %v6641_v45 = vmax.f32 %v2600_v34, 0.0  ;;  %v6677_v48 = vmax.f32 %v2610_v41, 0.0  ;;  %v2625_v50 = vadd.f32 %v5046_v42, %v6635_v23 }
 0x29d   : > { %v2619_v49 = vpop.f32.mrf.mxu1 }
 0x29e   : > { %4788 = vmatmul.mubr.msk.f32.vlgmr.msra.gmra.mxu0 %vm2848_vm3, %v6641_v45  ;;  %4820 = vmatmul.mubr.msk.f32.vlgmr.msra.gmra.mxu1 %vm2848_vm3, %v6641_v45  ;;  %v2620_v2 = vadd.f32 %v6635_v23, %v2619_v49  ;;  %v6703_v61 = vmax.f32 %v2625_v50, 0.0 }
 0x29f   : > { %3488 = vmatpush1.msra.mxu0 %v2802_v35  ;;  %3745 = vmatpush1.msra.mxu1 %v2804_v36  ;;  %v5049_v20 = vpop.f32.mrf.mxu1 }
 0x2a0   : > { %3015 = vmatprep.mubr.f32.mxu0 %v5139_v1  ;;  %3272 = vmatprep.mubr.f32.mxu1 %v5139_v1  ;;  %v6695_v53 = vmax.f32 %v2620_v2, 0.0  ;;  %v2635_v57 = vadd.f32 %v5049_v20, %v6635_v23 }
 0x2a1   : > { %3489 = vmatprep.subr.mxu0 %v2795_v52  ;;  %3746 = vmatprep.subr.mxu1 %v2797_v58  ;;  %v2629_v47 = vpop.f32.mrf.mxu1 }
 0x2a2   : > { %4789 = vmatmul.mubr.msk.f32.gmra.mxu0 %vm2848_vm3, %v6659_v39  ;;  %4821 = vmatmul.mubr.msk.f32.gmra.mxu1 %vm2848_vm3, %v6659_v39  ;;  %v2630_v55 = vadd.f32 %v6635_v23, %v2629_v47  ;;  %v6721_v0 = vmax.f32 %v2635_v57, 0.0 }
 0x2a3   : > { %3021 = vmatprep.mubr.f32.mxu0 %v5139_v1  ;;  %3278 = vmatprep.mubr.f32.mxu1 %v5139_v1  ;;  %v5052_v56 = vpop.f32.mrf.mxu1 }
 0x2a4   : > { %3490 = vmatpush1.msra.mxu0 %v2794_v43  ;;  %3747 = vmatpush1.msra.mxu1 %v2796_v46  ;;  %v6713_v60 = vmax.f32 %v2630_v55, 0.0  ;;  %v2645_v37 = vadd.f32 %v5052_v56, %v6635_v23 }
 0x2a5   : > { %v2639_v62 = vpop.f32.mrf.mxu1 }
 0x2a6   : > { %4790 = vmatmul.mubr.msk.f32.gmra.mxu0 %vm2848_vm3, %v6677_v48  ;;  %4822 = vmatmul.mubr.msk.f32.gmra.mxu1 %vm2848_vm3, %v6677_v48  ;;  %v2640_v25 = vadd.f32 %v6635_v23, %v2639_v62  ;;  %v6739_v51 = vmax.f32 %v2645_v37, 0.0 }
 0x2a7   : > { %3027 = vmatprep.mubr.f32.mxu0 %v5139_v1  ;;  %3284 = vmatprep.mubr.f32.mxu1 %v5139_v1  ;;  %v5055_v3 = vpop.f32.mrf.mxu1 }
 0x2a8   : > { %v6731_v7 = vmax.f32 %v2640_v25, 0.0  ;;  %v2655_v21 = vadd.f32 %v5055_v3, %v6635_v23 }
 0x2a9   : > { %v2649_v11 = vpop.f32.mrf.mxu1 }
 0x2aa   : > { %4791 = vmatmul.mubr.msk.f32.gmra.mxu0 %vm2848_vm3, %v6685_v63  ;;  %4823 = vmatmul.mubr.msk.f32.gmra.mxu1 %vm2848_vm3, %v6685_v63  ;;  %v2650_v14 = vadd.f32 %v6635_v23, %v2649_v11  ;;  %v6757_v27 = vmax.f32 %v2655_v21, 0.0 }
 0x2ab   : > { %3033 = vmatprep.mubr.f32.mxu0 %v5139_v1  ;;  %3290 = vmatprep.mubr.f32.mxu1 %v5139_v1  ;;  %v5058_v18 = vpop.f32.mrf.mxu1 }
 0x2ac   : > { %v6749_v22 = vmax.f32 %v2650_v14, 0.0  ;;  %v2665_v12 = vadd.f32 %v5058_v18, %v6635_v23 }
 0x2ad   : > { %v2659_v5 = vpop.f32.mrf.mxu1 }
 0x2ae   : > { %4792 = vmatmul.mubr.msk.f32.gmra.mxu0 %vm2848_vm3, %v6695_v53  ;;  %4824 = vmatmul.mubr.msk.f32.gmra.mxu1 %vm2848_vm3, %v6695_v53  ;;  %v2660_v9 = vadd.f32 %v6635_v23, %v2659_v5  ;;  %v6775_v54 = vmax.f32 %v2665_v12, 0.0 }
 0x2af   : > { %3039 = vmatprep.mubr.f32.mxu0 %v5139_v1  ;;  %3296 = vmatprep.mubr.f32.mxu1 %v5139_v1  ;;  %v5061_v40 = vpop.f32.mrf.mxu1 }
 0x2b0   : > { %v6767_v8 = vmax.f32 %v2660_v9, 0.0  ;;  %v2675_v29 = vadd.f32 %v5061_v40, %v6635_v23 }
 0x2b1   : > { %v2669_v17 = vpop.f32.mrf.mxu1 }
 0x2b2   : > { %4793 = vmatmul.mubr.msk.f32.gmra.mxu0 %vm2848_vm3, %v6703_v61  ;;  %4825 = vmatmul.mubr.msk.f32.gmra.mxu1 %vm2848_vm3, %v6703_v61  ;;  %v2670_v19 = vadd.f32 %v6635_v23, %v2669_v17  ;;  %v6793_v32 = vmax.f32 %v2675_v29, 0.0 }
 0x2b3   : > { %3045 = vmatprep.mubr.f32.mxu0 %v5139_v1  ;;  %3302 = vmatprep.mubr.f32.mxu1 %v5139_v1  ;;  %v5064_v28 = vpop.f32.mrf.mxu1 }
 0x2b4   : > { %v6785_v31 = vmax.f32 %v2670_v19, 0.0  ;;  %v2685_v35 = vadd.f32 %v5064_v28, %v6635_v23 }
 0x2b5   : > { %v2679_v26 = vpop.f32.mrf.mxu1 }
 0x2b6   : > { %4794 = vmatmul.mubr.msk.f32.gmra.mxu0 %vm2848_vm3, %v6713_v60  ;;  %4826 = vmatmul.mubr.msk.f32.gmra.mxu1 %vm2848_vm3, %v6713_v60  ;;  %v2680_v34 = vadd.f32 %v6635_v23, %v2679_v26  ;;  %v6811_v52 = vmax.f32 %v2685_v35, 0.0 }
 0x2b7   : > { %3051 = vmatprep.mubr.f32.mxu0 %v5139_v1  ;;  %3308 = vmatprep.mubr.f32.mxu1 %v5139_v1  ;;  %v5067_v15 = vpop.f32.mrf.mxu1 }
 0x2b8   : > { %v6803_v36 = vmax.f32 %v2680_v34, 0.0  ;;  %v2695_v42 = vadd.f32 %v5067_v15, %v6635_v23 }
 0x2b9   : > { %v2689_v59 = vpop.f32.mrf.mxu1 }
 0x2ba   : > { %4795 = vmatmul.mubr.msk.f32.gmra.mxu0 %vm2848_vm3, %v6721_v0  ;;  %4827 = vmatmul.mubr.msk.f32.gmra.mxu1 %vm2848_vm3, %v6721_v0  ;;  %v2690_v58 = vadd.f32 %v6635_v23, %v2689_v59  ;;  %v6829_v33 = vmax.f32 %v2695_v42, 0.0 }
 0x2bb   : > { %3057 = vmatprep.mubr.f32.mxu0 %v5139_v1  ;;  %3314 = vmatprep.mubr.f32.mxu1 %v5139_v1  ;;  %v5070_v41 = vpop.f32.mrf.mxu1 }
 0x2bc   : > { %v6821_v43 = vmax.f32 %v2690_v58, 0.0  ;;  %v2705_v20 = vadd.f32 %v5070_v41, %v6635_v23 }
 0x2bd   : > { %v2699_v46 = vpop.f32.mrf.mxu1 }
 0x2be   : > { %4796 = vmatmul.mubr.msk.f32.gmra.mxu0 %vm2848_vm3, %v6731_v7  ;;  %4828 = vmatmul.mubr.msk.f32.gmra.mxu1 %vm2848_vm3, %v6731_v7  ;;  %v2700_v49 = vadd.f32 %v6635_v23, %v2699_v46  ;;  %v6847_v55 = vmax.f32 %v2705_v20, 0.0 }
 0x2bf   : > { %3063 = vmatprep.mubr.f32.mxu0 %v5139_v1  ;;  %3320 = vmatprep.mubr.f32.mxu1 %v5139_v1  ;;  %v5073_v2 = vpop.f32.mrf.mxu1 }
 0x2c0   : > { %v6839_v50 = vmax.f32 %v2700_v49, 0.0  ;;  %v2715_v62 = vadd.f32 %v5073_v2, %v6635_v23 }
 0x2c1   : > { %v2709_v47 = vpop.f32.mrf.mxu1 }
 0x2c2   : > { %4797 = vmatmul.mubr.msk.f32.gmra.mxu0 %vm2848_vm3, %v6739_v51  ;;  %4829 = vmatmul.mubr.msk.f32.gmra.mxu1 %vm2848_vm3, %v6739_v51  ;;  %v2710_v56 = vadd.f32 %v6635_v23, %v2709_v47  ;;  %v6865_v37 = vmax.f32 %v2715_v62, 0.0 }
 0x2c3   : > { %3069 = vmatprep.mubr.f32.mxu0 %v5139_v1  ;;  %3326 = vmatprep.mubr.f32.mxu1 %v5139_v1  ;;  %v5076_v57 = vpop.f32.mrf.mxu1 }
 0x2c4   : > { %v6857_v25 = vmax.f32 %v2710_v56, 0.0  ;;  %v2725_v18 = vadd.f32 %v5076_v57, %v6635_v23 }
 0x2c5   : > { %v2719_v3 = vpop.f32.mrf.mxu1 }
 0x2c6   : > { %4798 = vmatmul.mubr.msk.f32.gmra.mxu0 %vm2848_vm3, %v6749_v22  ;;  %4830 = vmatmul.mubr.msk.f32.gmra.mxu1 %vm2848_vm3, %v6749_v22  ;;  %v2720_v11 = vadd.f32 %v6635_v23, %v2719_v3  ;;  %v6883_v9 = vmax.f32 %v2725_v18, 0.0 }
 0x2c7   : > { %3075 = vmatprep.mubr.f32.mxu0 %v5139_v1  ;;  %3332 = vmatprep.mubr.f32.mxu1 %v5139_v1  ;;  %v5079_v14 = vpop.f32.mrf.mxu1 }
 0x2c8   : > { %v6875_v21 = vmax.f32 %v2720_v11, 0.0  ;;  %v2735_v17 = vadd.f32 %v5079_v14, %v6635_v23 }
 0x2c9   : > { %v2729_v5 = vpop.f32.mrf.mxu1 }
 0x2ca   : > { %4799 = vmatmul.mubr.msk.f32.gmra.mxu0 %vm2848_vm3, %v6757_v27  ;;  %4831 = vmatmul.mubr.msk.f32.gmra.mxu1 %vm2848_vm3, %v6757_v27  ;;  %v2730_v40 = vadd.f32 %v6635_v23, %v2729_v5  ;;  %v6901_v29 = vmax.f32 %v2735_v17, 0.0 }
 0x2cb   : > { %3081 = vmatprep.mubr.f32.mxu0 %v5139_v1  ;;  %3338 = vmatprep.mubr.f32.mxu1 %v5139_v1  ;;  %v5082_v12 = vpop.f32.mrf.mxu1 }
 0x2cc   : > { %v6893_v19 = vmax.f32 %v2730_v40, 0.0  ;;  %v2745_v15 = vadd.f32 %v5082_v12, %v6635_v23 }
 0x2cd   : > { %v2739_v28 = vpop.f32.mrf.mxu1 }
 0x2ce   : > { %4800 = vmatmul.mubr.msk.f32.gmra.mxu0 %vm2848_vm3, %v6767_v8  ;;  %4832 = vmatmul.mubr.msk.f32.gmra.mxu1 %vm2848_vm3, %v6767_v8  ;;  %v2740_v26 = vadd.f32 %v6635_v23, %v2739_v28  ;;  %v6919_v58 = vmax.f32 %v2745_v15, 0.0 }
 0x2cf   : > { %3087 = vmatprep.mubr.f32.mxu0 %v5139_v1  ;;  %3344 = vmatprep.mubr.f32.mxu1 %v5139_v1  ;;  %v5085_v34 = vpop.f32.mrf.mxu1 }
 0x2d0   : > { %v6911_v35 = vmax.f32 %v2740_v26, 0.0  ;;  %v2755_v42 = vadd.f32 %v5085_v34, %v6635_v23 }
 0x2d1   : > { %v2749_v59 = vpop.f32.mrf.mxu1 }
 0x2d2   : > { %4801 = vmatmul.mubr.msk.f32.gmra.mxu0 %vm2848_vm3, %v6775_v54  ;;  %4833 = vmatmul.mubr.msk.f32.gmra.mxu1 %vm2848_vm3, %v6775_v54  ;;  %v2750_v41 = vadd.f32 %v6635_v23, %v2749_v59  ;;  %v6937_v49 = vmax.f32 %v2755_v42, 0.0  ;;  %v2806_v23 = vld [vmem:[%s7703_s8] sm:$0xff] }
 0x2d3   : > { %3093 = vmatprep.mubr.f32.mxu0 %v5139_v1  ;;  %3350 = vmatprep.mubr.f32.mxu1 %v5139_v1 }
 0x2d4   : > { %v6929_v46 = vmax.f32 %v2750_v41, 0.0 }
 0x2d6   : > { %4802 = vmatmul.mubr.msk.f32.gmra.mxu0 %vm2848_vm3, %v6785_v31  ;;  %4834 = vmatmul.mubr.msk.f32.gmra.mxu1 %vm2848_vm3, %v6785_v31 }
 0x2d7   : > { %3099 = vmatprep.mubr.f32.mxu0 %v5139_v1  ;;  %3356 = vmatprep.mubr.f32.mxu1 %v5139_v1 }
 0x2da   : > { %4803 = vmatmul.mubr.msk.f32.gmra.mxu0 %vm2848_vm3, %v6793_v32  ;;  %4835 = vmatmul.mubr.msk.f32.gmra.mxu1 %vm2848_vm3, %v6793_v32 }
 0x2db   : > { %3105 = vmatprep.mubr.f32.mxu0 %v5139_v1  ;;  %3362 = vmatprep.mubr.f32.mxu1 %v5139_v1 }
 0x2de   : > { %4804 = vmatmul.mubr.msk.f32.gmra.mxu0 %vm2848_vm3, %v6803_v36  ;;  %4836 = vmatmul.mubr.msk.f32.gmra.mxu1 %vm2848_vm3, %v6803_v36 }
 0x2df   : > { %3111 = vmatprep.mubr.f32.mxu0 %v5139_v1  ;;  %3368 = vmatprep.mubr.f32.mxu1 %v5139_v1 }
 0x2e2   : > { %4805 = vmatmul.mubr.msk.f32.gmra.mxu0 %vm2848_vm3, %v6811_v52  ;;  %4837 = vmatmul.mubr.msk.f32.gmra.mxu1 %vm2848_vm3, %v6811_v52 }
 0x2e3   : > { %3117 = vmatprep.mubr.f32.mxu0 %v5139_v1  ;;  %3374 = vmatprep.mubr.f32.mxu1 %v5139_v1 }
 0x2e6   : > { %4806 = vmatmul.mubr.msk.f32.gmra.mxu0 %vm2848_vm3, %v6821_v43  ;;  %4838 = vmatmul.mubr.msk.f32.gmra.mxu1 %vm2848_vm3, %v6821_v43 }
 0x2e7   : > { %3123 = vmatprep.mubr.f32.mxu0 %v5139_v1  ;;  %3380 = vmatprep.mubr.f32.mxu1 %v5139_v1 }
 0x2ea   : > { %4807 = vmatmul.mubr.msk.f32.gmra.mxu0 %vm2848_vm3, %v6829_v33  ;;  %4839 = vmatmul.mubr.msk.f32.gmra.mxu1 %vm2848_vm3, %v6829_v33 }
 0x2eb   : > { %3129 = vmatprep.mubr.f32.mxu0 %v5139_v1  ;;  %3386 = vmatprep.mubr.f32.mxu1 %v5139_v1 }
 0x2ee   : > { %4808 = vmatmul.mubr.msk.f32.gmra.mxu0 %vm2848_vm3, %v6839_v50  ;;  %4840 = vmatmul.mubr.msk.f32.gmra.mxu1 %vm2848_vm3, %v6839_v50 }
 0x2ef   : > { %3135 = vmatprep.mubr.f32.mxu0 %v5139_v1  ;;  %3392 = vmatprep.mubr.f32.mxu1 %v5139_v1 }
 0x2f2   : > { %4809 = vmatmul.mubr.msk.f32.gmra.mxu0 %vm2848_vm3, %v6847_v55  ;;  %4841 = vmatmul.mubr.msk.f32.gmra.mxu1 %vm2848_vm3, %v6847_v55 }
 0x2f3   : > { %3141 = vmatprep.mubr.f32.mxu0 %v5139_v1  ;;  %3398 = vmatprep.mubr.f32.mxu1 %v5139_v1 }
 0x2f6   : > { %4810 = vmatmul.mubr.msk.f32.gmra.mxu0 %vm2848_vm3, %v6857_v25  ;;  %4842 = vmatmul.mubr.msk.f32.gmra.mxu1 %vm2848_vm3, %v6857_v25 }
 0x2f7   : > { %3147 = vmatprep.mubr.f32.mxu0 %v5139_v1  ;;  %3404 = vmatprep.mubr.f32.mxu1 %v5139_v1 }
 0x2fa   : > { %4811 = vmatmul.mubr.msk.f32.gmra.mxu0 %vm2848_vm3, %v6865_v37  ;;  %4843 = vmatmul.mubr.msk.f32.gmra.mxu1 %vm2848_vm3, %v6865_v37 }
 0x2fb   : > { %3153 = vmatprep.mubr.f32.mxu0 %v5139_v1  ;;  %3410 = vmatprep.mubr.f32.mxu1 %v5139_v1 }
 0x2fe   : > { %4812 = vmatmul.mubr.msk.f32.gmra.mxu0 %vm2848_vm3, %v6875_v21  ;;  %4844 = vmatmul.mubr.msk.f32.gmra.mxu1 %vm2848_vm3, %v6875_v21 }
 0x2ff   : > { %3159 = vmatprep.mubr.f32.mxu0 %v5139_v1  ;;  %3416 = vmatprep.mubr.f32.mxu1 %v5139_v1 }
 0x302   : > { %4813 = vmatmul.mubr.msk.f32.gmra.mxu0 %vm2848_vm3, %v6883_v9  ;;  %4845 = vmatmul.mubr.msk.f32.gmra.mxu1 %vm2848_vm3, %v6883_v9 }
 0x303   : > { %3165 = vmatprep.mubr.f32.mxu0 %v5139_v1  ;;  %3422 = vmatprep.mubr.f32.mxu1 %v5139_v1 }
 0x306   : > { %4814 = vmatmul.mubr.msk.f32.gmra.mxu0 %vm2848_vm3, %v6893_v19  ;;  %4846 = vmatmul.mubr.msk.f32.gmra.mxu1 %vm2848_vm3, %v6893_v19 }
 0x307   : > { %3171 = vmatprep.mubr.f32.mxu0 %v5139_v1  ;;  %3428 = vmatprep.mubr.f32.mxu1 %v5139_v1 }
 0x30a   : > { %4815 = vmatmul.mubr.msk.f32.gmra.mxu0 %vm2848_vm3, %v6901_v29  ;;  %4847 = vmatmul.mubr.msk.f32.gmra.mxu1 %vm2848_vm3, %v6901_v29 }
 0x30b   : > { %3177 = vmatprep.mubr.f32.mxu0 %v5139_v1  ;;  %3434 = vmatprep.mubr.f32.mxu1 %v5139_v1 }
 0x30e   : > { %4816 = vmatmul.mubr.msk.f32.gmra.mxu0 %vm2848_vm3, %v6911_v35  ;;  %4848 = vmatmul.mubr.msk.f32.gmra.mxu1 %vm2848_vm3, %v6911_v35 }
 0x30f   : > { %3183 = vmatprep.mubr.f32.mxu0 %v5139_v1  ;;  %3440 = vmatprep.mubr.f32.mxu1 %v5139_v1 }
 0x312   : > { %4817 = vmatmul.mubr.msk.f32.gmra.mxu0 %vm2848_vm3, %v6919_v58  ;;  %4849 = vmatmul.mubr.msk.f32.gmra.mxu1 %vm2848_vm3, %v6919_v58 }
 0x313   : > { %3189 = vmatprep.mubr.f32.mxu0 %v5139_v1  ;;  %3446 = vmatprep.mubr.f32.mxu1 %v5139_v1 }
 0x316   : > { %4818 = vmatmul.mubr.msk.f32.gmra.mxu0 %vm2848_vm3, %v6929_v46  ;;  %4850 = vmatmul.mubr.msk.f32.gmra.mxu1 %vm2848_vm3, %v6929_v46 }
 0x317   : > { %3195 = vmatprep.mubr.f32.mxu0 %v5139_v1  ;;  %3452 = vmatprep.mubr.f32.mxu1 %v5139_v1 }
 0x31a   : > { %4819 = vmatmul.mubr.msk.f32.gmra.mxu0 %vm2848_vm3, %v6937_v49  ;;  %4851 = vmatmul.mubr.msk.f32.gmra.mxu1 %vm2848_vm3, %v6937_v49 }
 0x31b   : > { %3523 = vmatprep.mubr.f32.mxu0 %v5139_v1  ;;  %3780 = vmatprep.mubr.f32.mxu1 %v5139_v1 }
 0x31e   : > { %4852 = vmatmul.mubr.msk.f32.vlgmr.msra.gmra.mxu0 %vm2848_vm3, %v6641_v45  ;;  %4884 = vmatmul.mubr.msk.f32.vlgmr.msra.gmra.mxu1 %vm2848_vm3, %v6641_v45  ;;  %v7046_v45 = vrot.slane %v2806_v23, %v847_v16 }
 0x31f   : > { %3529 = vmatprep.mubr.f32.mxu0 %v5139_v1  ;;  %3786 = vmatprep.mubr.f32.mxu1 %v5139_v1 }
 0x322   : > { %4853 = vmatmul.mubr.msk.f32.gmra.mxu0 %vm2848_vm3, %v6659_v39  ;;  %4885 = vmatmul.mubr.msk.f32.gmra.mxu1 %vm2848_vm3, %v6659_v39  ;;  %v7050_v39 = vrot.slane %v2806_v23, %v855_v24 }
 0x323   : > { %3535 = vmatprep.mubr.f32.mxu0 %v5139_v1  ;;  %3792 = vmatprep.mubr.f32.mxu1 %v5139_v1 }
 0x326   : > { %4854 = vmatmul.mubr.msk.f32.gmra.mxu0 %vm2848_vm3, %v6677_v48  ;;  %4886 = vmatmul.mubr.msk.f32.gmra.mxu1 %vm2848_vm3, %v6677_v48  ;;  %v7054_v48 = vrot.slane %v2806_v23, %v851_v38 }
 0x327   : > { %3541 = vmatprep.mubr.f32.mxu0 %v5139_v1  ;;  %3798 = vmatprep.mubr.f32.mxu1 %v5139_v1 }
 0x32a   : > { %4855 = vmatmul.mubr.msk.f32.gmra.mxu0 %vm2848_vm3, %v6685_v63  ;;  %4887 = vmatmul.mubr.msk.f32.gmra.mxu1 %vm2848_vm3, %v6685_v63  ;;  %v7058_v63 = vrot.slane %v2806_v23, %v859_v44 }
 0x32b   : > { %3547 = vmatprep.mubr.f32.mxu0 %v5139_v1  ;;  %3804 = vmatprep.mubr.f32.mxu1 %v5139_v1 }
 0x32e   : > { %4856 = vmatmul.mubr.msk.f32.gmra.mxu0 %vm2848_vm3, %v6695_v53  ;;  %4888 = vmatmul.mubr.msk.f32.gmra.mxu1 %vm2848_vm3, %v6695_v53 }
 0x32f   : > { %3553 = vmatprep.mubr.f32.mxu0 %v5139_v1  ;;  %3810 = vmatprep.mubr.f32.mxu1 %v5139_v1 }
 0x332   : > { %4857 = vmatmul.mubr.msk.f32.gmra.mxu0 %vm2848_vm3, %v6703_v61  ;;  %4889 = vmatmul.mubr.msk.f32.gmra.mxu1 %vm2848_vm3, %v6703_v61 }
 0x333   : > { %3559 = vmatprep.mubr.f32.mxu0 %v5139_v1  ;;  %3816 = vmatprep.mubr.f32.mxu1 %v5139_v1 }
 0x336   : > { %4858 = vmatmul.mubr.msk.f32.gmra.mxu0 %vm2848_vm3, %v6713_v60  ;;  %4890 = vmatmul.mubr.msk.f32.gmra.mxu1 %vm2848_vm3, %v6713_v60 }
 0x337   : > { %3565 = vmatprep.mubr.f32.mxu0 %v5139_v1  ;;  %3822 = vmatprep.mubr.f32.mxu1 %v5139_v1 }
 0x33a   : > { %4859 = vmatmul.mubr.msk.f32.gmra.mxu0 %vm2848_vm3, %v6721_v0  ;;  %4891 = vmatmul.mubr.msk.f32.gmra.mxu1 %vm2848_vm3, %v6721_v0 }
 0x33b   : > { %3571 = vmatprep.mubr.f32.mxu0 %v5139_v1  ;;  %3828 = vmatprep.mubr.f32.mxu1 %v5139_v1 }
 0x33e   : > { %4860 = vmatmul.mubr.msk.f32.gmra.mxu0 %vm2848_vm3, %v6731_v7  ;;  %4892 = vmatmul.mubr.msk.f32.gmra.mxu1 %vm2848_vm3, %v6731_v7 }
 0x33f   : > { %3577 = vmatprep.mubr.f32.mxu0 %v5139_v1  ;;  %3834 = vmatprep.mubr.f32.mxu1 %v5139_v1 }
 0x342   : > { %4861 = vmatmul.mubr.msk.f32.gmra.mxu0 %vm2848_vm3, %v6739_v51  ;;  %4893 = vmatmul.mubr.msk.f32.gmra.mxu1 %vm2848_vm3, %v6739_v51 }
 0x343   : > { %3583 = vmatprep.mubr.f32.mxu0 %v5139_v1  ;;  %3840 = vmatprep.mubr.f32.mxu1 %v5139_v1 }
 0x346   : > { %4862 = vmatmul.mubr.msk.f32.gmra.mxu0 %vm2848_vm3, %v6749_v22  ;;  %4894 = vmatmul.mubr.msk.f32.gmra.mxu1 %vm2848_vm3, %v6749_v22 }
 0x347   : > { %3589 = vmatprep.mubr.f32.mxu0 %v5139_v1  ;;  %3846 = vmatprep.mubr.f32.mxu1 %v5139_v1 }
 0x34a   : > { %4863 = vmatmul.mubr.msk.f32.gmra.mxu0 %vm2848_vm3, %v6757_v27  ;;  %4895 = vmatmul.mubr.msk.f32.gmra.mxu1 %vm2848_vm3, %v6757_v27 }
 0x34b   : > { %3595 = vmatprep.mubr.f32.mxu0 %v5139_v1  ;;  %3852 = vmatprep.mubr.f32.mxu1 %v5139_v1 }
 0x34e   : > { %4864 = vmatmul.mubr.msk.f32.gmra.mxu0 %vm2848_vm3, %v6767_v8  ;;  %4896 = vmatmul.mubr.msk.f32.gmra.mxu1 %vm2848_vm3, %v6767_v8 }
 0x34f   : > { %3601 = vmatprep.mubr.f32.mxu0 %v5139_v1  ;;  %3858 = vmatprep.mubr.f32.mxu1 %v5139_v1 }
 0x352   : > { %4865 = vmatmul.mubr.msk.f32.gmra.mxu0 %vm2848_vm3, %v6775_v54  ;;  %4897 = vmatmul.mubr.msk.f32.gmra.mxu1 %vm2848_vm3, %v6775_v54 }
 0x353   : > { %3607 = vmatprep.mubr.f32.mxu0 %v5139_v1  ;;  %3864 = vmatprep.mubr.f32.mxu1 %v5139_v1 }
 0x356   : > { %4866 = vmatmul.mubr.msk.f32.gmra.mxu0 %vm2848_vm3, %v6785_v31  ;;  %4898 = vmatmul.mubr.msk.f32.gmra.mxu1 %vm2848_vm3, %v6785_v31 }
 0x357   : > { %3613 = vmatprep.mubr.f32.mxu0 %v5139_v1  ;;  %3870 = vmatprep.mubr.f32.mxu1 %v5139_v1 }
 0x35a   : > { %4867 = vmatmul.mubr.msk.f32.gmra.mxu0 %vm2848_vm3, %v6793_v32  ;;  %4899 = vmatmul.mubr.msk.f32.gmra.mxu1 %vm2848_vm3, %v6793_v32 }
 0x35b   : > { %3619 = vmatprep.mubr.f32.mxu0 %v5139_v1  ;;  %3876 = vmatprep.mubr.f32.mxu1 %v5139_v1 }
 0x35e   : > { %v3011_v53 = vpop.f32.mrf.mxu0  ;;  %v3268_v61 = vpop.f32.mrf.mxu1  ;;  %4868 = vmatmul.mubr.msk.f32.gmra.mxu0 %vm2848_vm3, %v6803_v36  ;;  %4900 = vmatmul.mubr.msk.f32.gmra.mxu1 %vm2848_vm3, %v6803_v36 }
 0x35f   : > { %v3012_v16 = vadd.f32 %v3011_v53, %v7046_v45  ;;  %v3269_v24 = vadd.f32 %v3268_v61, %v7050_v39  ;;  %3625 = vmatprep.mubr.f32.mxu0 %v5139_v1  ;;  %3882 = vmatprep.mubr.f32.mxu1 %v5139_v1 }
 0x360   : > { %v3013_v38 = vpop.f32.mrf.mxu0  ;;  %v3270_v44 = vpop.f32.mrf.mxu1 }
 0x361   : > { %v3973_v60 = vmax.f32 %v3012_v16, 0.0  ;;  %v3975_v0 = vmax.f32 %v3269_v24, 0.0  ;;  %v3014_v7 = vadd.f32 %v3013_v38, %v7054_v48  ;;  %v3271_v51 = vadd.f32 %v3270_v44, %v7058_v63 }
 0x362   : > { %v3017_v22 = vpop.f32.mrf.mxu0  ;;  %v3274_v27 = vpop.f32.mrf.mxu1  ;;  %4869 = vmatmul.mubr.msk.f32.gmra.mxu0 %vm2848_vm3, %v6811_v52  ;;  %4901 = vmatmul.mubr.msk.f32.gmra.mxu1 %vm2848_vm3, %v6811_v52 }
 0x363   : > { %4229 = vst [vmem:[%s7073_s11] sm:$0xff] %v3973_v60  ;;  %4231 = vst [vmem:[%s7073_s11 + $0x10] sm:$0xff] %v3975_v0  ;;  %v3974_v8 = vmax.f32 %v3014_v7, 0.0  ;;  %v3976_v54 = vmax.f32 %v3271_v51, 0.0  ;;  %v3018_v31 = vadd.f32 %v3017_v22, %v7046_v45  ;;  %v3275_v32 = vadd.f32 %v3274_v27, %v7050_v39  ;;  %3631 = vmatprep.mubr.f32.mxu0 %v5139_v1 }
 0x364   : > { %3888 = vmatprep.mubr.f32.mxu1 %v5139_v1  ;;  %v3019_v36 = vpop.f32.mrf.mxu0  ;;  %v3276_v2 = vpop.f32.mrf.mxu1 }
 0x365   : > { %4230 = vst [vmem:[%s7073_s11 + $0x8] sm:$0xff] %v3974_v8  ;;  %4232 = vst [vmem:[%s7073_s11 + $0x18] sm:$0xff] %v3976_v54  ;;  %v3981_v20 = vmax.f32 %v3018_v31, 0.0  ;;  %v3983_v52 = vmax.f32 %v3275_v32, 0.0  ;;  %v3020_v47 = vadd.f32 %v3019_v36, %v7054_v48  ;;  %v3277_v56 = vadd.f32 %v3276_v2, %v7058_v63 }
 0x366   : > { %v3023_v57 = vpop.f32.mrf.mxu0  ;;  %v3280_v62 = vpop.f32.mrf.mxu1  ;;  %4870 = vmatmul.mubr.msk.f32.gmra.mxu0 %vm2848_vm3, %v6821_v43  ;;  %4902 = vmatmul.mubr.msk.f32.gmra.mxu1 %vm2848_vm3, %v6821_v43 }
 0x367   : > { %4237 = vst [vmem:[%s7073_s11 + $0x40] sm:$0xff] %v3981_v20  ;;  %4239 = vst [vmem:[%s7073_s11 + $0x50] sm:$0xff] %v3983_v52  ;;  %v3982_v3 = vmax.f32 %v3020_v47, 0.0  ;;  %v3984_v11 = vmax.f32 %v3277_v56, 0.0  ;;  %v3024_v14 = vadd.f32 %v3023_v57, %v7046_v45  ;;  %v3281_v18 = vadd.f32 %v3280_v62, %v7050_v39  ;;  %3637 = vmatprep.mubr.f32.mxu0 %v5139_v1 }
 0x368   : > { %3894 = vmatprep.mubr.f32.mxu1 %v5139_v1  ;;  %v3025_v5 = vpop.f32.mrf.mxu0  ;;  %v3282_v40 = vpop.f32.mrf.mxu1 }
 0x369   : > { %4238 = vst [vmem:[%s7073_s11 + $0x48] sm:$0xff] %v3982_v3  ;;  %4240 = vst [vmem:[%s7073_s11 + $0x58] sm:$0xff] %v3984_v11  ;;  %v3989_v12 = vmax.f32 %v3024_v14, 0.0  ;;  %v3991_v43 = vmax.f32 %v3281_v18, 0.0  ;;  %v3026_v17 = vadd.f32 %v3025_v5, %v7054_v48  ;;  %v3283_v28 = vadd.f32 %v3282_v40, %v7058_v63 }
 0x36a   : > { %v3029_v26 = vpop.f32.mrf.mxu0  ;;  %v3286_v34 = vpop.f32.mrf.mxu1  ;;  %4871 = vmatmul.mubr.msk.f32.gmra.mxu0 %vm2848_vm3, %v6829_v33  ;;  %4903 = vmatmul.mubr.msk.f32.gmra.mxu1 %vm2848_vm3, %v6829_v33 }
 0x36b   : > { %4245 = vst [vmem:[%s7073_s11 + $0x80] sm:$0xff] %v3989_v12  ;;  %4247 = vst [vmem:[%s7073_s11 + $0x90] sm:$0xff] %v3991_v43  ;;  %v3990_v15 = vmax.f32 %v3026_v17, 0.0  ;;  %v3992_v59 = vmax.f32 %v3283_v28, 0.0  ;;  %v3030_v41 = vadd.f32 %v3029_v26, %v7046_v45  ;;  %v3287_v42 = vadd.f32 %v3286_v34, %v7050_v39  ;;  %3643 = vmatprep.mubr.f32.mxu0 %v5139_v1 }
 0x36c   : > { %3900 = vmatprep.mubr.f32.mxu1 %v5139_v1  ;;  %v3031_v23 = vpop.f32.mrf.mxu0  ;;  %v3288_v53 = vpop.f32.mrf.mxu1 }
 0x36d   : > { %4246 = vst [vmem:[%s7073_s11 + $0x88] sm:$0xff] %v3990_v15  ;;  %4248 = vst [vmem:[%s7073_s11 + $0x98] sm:$0xff] %v3992_v59  ;;  %v3997_v61 = vmax.f32 %v3030_v41, 0.0  ;;  %v3999_v33 = vmax.f32 %v3287_v42, 0.0  ;;  %v3032_v16 = vadd.f32 %v3031_v23, %v7054_v48  ;;  %v3289_v24 = vadd.f32 %v3288_v53, %v7058_v63 }
 0x36e   : > { %v3035_v38 = vpop.f32.mrf.mxu0  ;;  %v3292_v44 = vpop.f32.mrf.mxu1  ;;  %4872 = vmatmul.mubr.msk.f32.gmra.mxu0 %vm2848_vm3, %v6839_v50  ;;  %4904 = vmatmul.mubr.msk.f32.gmra.mxu1 %vm2848_vm3, %v6839_v50 }
 0x36f   : > { %4253 = vst [vmem:[%s7073_s11 + $0xc0] sm:$0xff] %v3997_v61  ;;  %4255 = vst [vmem:[%s7073_s11 + $0xd0] sm:$0xff] %v3999_v33  ;;  %v3998_v60 = vmax.f32 %v3032_v16, 0.0  ;;  %v4000_v0 = vmax.f32 %v3289_v24, 0.0  ;;  %v3036_v7 = vadd.f32 %v3035_v38, %v7046_v45  ;;  %v3293_v51 = vadd.f32 %v3292_v44, %v7050_v39  ;;  %3649 = vmatprep.mubr.f32.mxu0 %v5139_v1 }
 0x370   : > { %3906 = vmatprep.mubr.f32.mxu1 %v5139_v1  ;;  %v3037_v22 = vpop.f32.mrf.mxu0  ;;  %v3294_v27 = vpop.f32.mrf.mxu1 }
 0x371   : > { %4254 = vst [vmem:[%s7073_s11 + $0xc8] sm:$0xff] %v3998_v60  ;;  %4256 = vst [vmem:[%s7073_s11 + $0xd8] sm:$0xff] %v4000_v0  ;;  %v4005_v8 = vmax.f32 %v3036_v7, 0.0  ;;  %v4007_v50 = vmax.f32 %v3293_v51, 0.0  ;;  %v3038_v54 = vadd.f32 %v3037_v22, %v7054_v48  ;;  %v3295_v31 = vadd.f32 %v3294_v27, %v7058_v63 }
 0x372   : > { %v3041_v32 = vpop.f32.mrf.mxu0  ;;  %v3298_v36 = vpop.f32.mrf.mxu1  ;;  %4873 = vmatmul.mubr.msk.f32.gmra.mxu0 %vm2848_vm3, %v6847_v55  ;;  %4905 = vmatmul.mubr.msk.f32.gmra.mxu1 %vm2848_vm3, %v6847_v55 }
 0x373   : > { %4261 = vst [vmem:[%s7073_s11 + $0x100] sm:$0xff] %v4005_v8  ;;  %4263 = vst [vmem:[%s7073_s11 + $0x110] sm:$0xff] %v4007_v50  ;;  %v4006_v2 = vmax.f32 %v3038_v54, 0.0  ;;  %v4008_v20 = vmax.f32 %v3295_v31, 0.0  ;;  %v3042_v52 = vadd.f32 %v3041_v32, %v7046_v45  ;;  %v3299_v47 = vadd.f32 %v3298_v36, %v7050_v39  ;;  %3655 = vmatprep.mubr.f32.mxu0 %v5139_v1 }
 0x374   : > { %3912 = vmatprep.mubr.f32.mxu1 %v5139_v1  ;;  %v3043_v56 = vpop.f32.mrf.mxu0  ;;  %v3300_v57 = vpop.f32.mrf.mxu1 }
 0x375   : > { %4262 = vst [vmem:[%s7073_s11 + $0x108] sm:$0xff] %v4006_v2  ;;  %4264 = vst [vmem:[%s7073_s11 + $0x118] sm:$0xff] %v4008_v20  ;;  %v4013_v62 = vmax.f32 %v3042_v52, 0.0  ;;  %v4015_v55 = vmax.f32 %v3299_v47, 0.0  ;;  %v3044_v3 = vadd.f32 %v3043_v56, %v7054_v48  ;;  %v3301_v11 = vadd.f32 %v3300_v57, %v7058_v63 }
 0x376   : > { %v3047_v14 = vpop.f32.mrf.mxu0  ;;  %v3304_v18 = vpop.f32.mrf.mxu1  ;;  %4874 = vmatmul.mubr.msk.f32.gmra.mxu0 %vm2848_vm3, %v6857_v25  ;;  %4906 = vmatmul.mubr.msk.f32.gmra.mxu1 %vm2848_vm3, %v6857_v25 }
 0x377   : > { %4269 = vst [vmem:[%s7073_s11 + $0x140] sm:$0xff] %v4013_v62  ;;  %4271 = vst [vmem:[%s7073_s11 + $0x150] sm:$0xff] %v4015_v55  ;;  %v4014_v5 = vmax.f32 %v3044_v3, 0.0  ;;  %v4016_v40 = vmax.f32 %v3301_v11, 0.0  ;;  %v3048_v12 = vadd.f32 %v3047_v14, %v7046_v45  ;;  %v3305_v43 = vadd.f32 %v3304_v18, %v7050_v39  ;;  %3661 = vmatprep.mubr.f32.mxu0 %v5139_v1 }
 0x378   : > { %3918 = vmatprep.mubr.f32.mxu1 %v5139_v1  ;;  %v3049_v17 = vpop.f32.mrf.mxu0  ;;  %v3306_v28 = vpop.f32.mrf.mxu1 }
 0x379   : > { %4270 = vst [vmem:[%s7073_s11 + $0x148] sm:$0xff] %v4014_v5  ;;  %4272 = vst [vmem:[%s7073_s11 + $0x158] sm:$0xff] %v4016_v40  ;;  %v4021_v26 = vmax.f32 %v3048_v12, 0.0  ;;  %v4023_v25 = vmax.f32 %v3305_v43, 0.0  ;;  %v3050_v34 = vadd.f32 %v3049_v17, %v7054_v48  ;;  %v3307_v15 = vadd.f32 %v3306_v28, %v7058_v63 }
 0x37a   : > { %v3053_v59 = vpop.f32.mrf.mxu0  ;;  %v3310_v41 = vpop.f32.mrf.mxu1  ;;  %4875 = vmatmul.mubr.msk.f32.gmra.mxu0 %vm2848_vm3, %v6865_v37  ;;  %4907 = vmatmul.mubr.msk.f32.gmra.mxu1 %vm2848_vm3, %v6865_v37 }
 0x37b   : > { %4277 = vst [vmem:[%s7073_s11 + $0x180] sm:$0xff] %v4021_v26  ;;  %4279 = vst [vmem:[%s7073_s11 + $0x190] sm:$0xff] %v4023_v25  ;;  %v4022_v42 = vmax.f32 %v3050_v34, 0.0  ;;  %v4024_v23 = vmax.f32 %v3307_v15, 0.0  ;;  %v3054_v53 = vadd.f32 %v3053_v59, %v7046_v45  ;;  %v3311_v61 = vadd.f32 %v3310_v41, %v7050_v39  ;;  %3667 = vmatprep.mubr.f32.mxu0 %v5139_v1 }
 0x37c   : > { %3924 = vmatprep.mubr.f32.mxu1 %v5139_v1  ;;  %v3055_v33 = vpop.f32.mrf.mxu0  ;;  %v3312_v16 = vpop.f32.mrf.mxu1 }
 0x37d   : > { %4278 = vst [vmem:[%s7073_s11 + $0x188] sm:$0xff] %v4022_v42  ;;  %4280 = vst [vmem:[%s7073_s11 + $0x198] sm:$0xff] %v4024_v23  ;;  %v4029_v24 = vmax.f32 %v3054_v53, 0.0  ;;  %v4031_v37 = vmax.f32 %v3311_v61, 0.0  ;;  %v3056_v38 = vadd.f32 %v3055_v33, %v7054_v48  ;;  %v3313_v44 = vadd.f32 %v3312_v16, %v7058_v63 }
 0x37e   : > { %v3059_v60 = vpop.f32.mrf.mxu0  ;;  %v3316_v0 = vpop.f32.mrf.mxu1  ;;  %4876 = vmatmul.mubr.msk.f32.gmra.mxu0 %vm2848_vm3, %v6875_v21  ;;  %4908 = vmatmul.mubr.msk.f32.gmra.mxu1 %vm2848_vm3, %v6875_v21 }
 0x37f   : > { %4285 = vst [vmem:[%s7073_s11 + $0x1c0] sm:$0xff] %v4029_v24  ;;  %4287 = vst [vmem:[%s7073_s11 + $0x1d0] sm:$0xff] %v4031_v37  ;;  %v4030_v7 = vmax.f32 %v3056_v38, 0.0  ;;  %v4032_v51 = vmax.f32 %v3313_v44, 0.0  ;;  %v3060_v22 = vadd.f32 %v3059_v60, %v7046_v45  ;;  %v3317_v27 = vadd.f32 %v3316_v0, %v7050_v39  ;;  %3673 = vmatprep.mubr.f32.mxu0 %v5139_v1 }
 0x380   : > { %3930 = vmatprep.mubr.f32.mxu1 %v5139_v1  ;;  %v3061_v8 = vpop.f32.mrf.mxu0  ;;  %v3318_v50 = vpop.f32.mrf.mxu1 }
 0x381   : > { %4286 = vst [vmem:[%s7073_s11 + $0x1c8] sm:$0xff] %v4030_v7  ;;  %4288 = vst [vmem:[%s7073_s11 + $0x1d8] sm:$0xff] %v4032_v51  ;;  %v4037_v54 = vmax.f32 %v3060_v22, 0.0  ;;  %v4039_v21 = vmax.f32 %v3317_v27, 0.0  ;;  %v3062_v31 = vadd.f32 %v3061_v8, %v7054_v48  ;;  %v3319_v32 = vadd.f32 %v3318_v50, %v7058_v63 }
 0x382   : > { %v3065_v36 = vpop.f32.mrf.mxu0  ;;  %v3322_v2 = vpop.f32.mrf.mxu1  ;;  %4877 = vmatmul.mubr.msk.f32.gmra.mxu0 %vm2848_vm3, %v6883_v9  ;;  %4909 = vmatmul.mubr.msk.f32.gmra.mxu1 %vm2848_vm3, %v6883_v9 }
 0x383   : > { %4293 = vst [vmem:[%s7073_s11 + $0x200] sm:$0xff] %v4037_v54  ;;  %4295 = vst [vmem:[%s7073_s11 + $0x210] sm:$0xff] %v4039_v21  ;;  %v4038_v20 = vmax.f32 %v3062_v31, 0.0  ;;  %v4040_v52 = vmax.f32 %v3319_v32, 0.0  ;;  %v3066_v47 = vadd.f32 %v3065_v36, %v7046_v45  ;;  %v3323_v56 = vadd.f32 %v3322_v2, %v7050_v39  ;;  %3679 = vmatprep.mubr.f32.mxu0 %v5139_v1 }
 0x384   : > { %3936 = vmatprep.mubr.f32.mxu1 %v5139_v1  ;;  %v3067_v57 = vpop.f32.mrf.mxu0  ;;  %v3324_v62 = vpop.f32.mrf.mxu1 }
 0x385   : > { %4294 = vst [vmem:[%s7073_s11 + $0x208] sm:$0xff] %v4038_v20  ;;  %4296 = vst [vmem:[%s7073_s11 + $0x218] sm:$0xff] %v4040_v52  ;;  %v4045_v55 = vmax.f32 %v3066_v47, 0.0  ;;  %v4047_v9 = vmax.f32 %v3323_v56, 0.0  ;;  %v3068_v3 = vadd.f32 %v3067_v57, %v7054_v48  ;;  %v3325_v11 = vadd.f32 %v3324_v62, %v7058_v63 }
 0x386   : > { %v3071_v14 = vpop.f32.mrf.mxu0  ;;  %v3328_v18 = vpop.f32.mrf.mxu1  ;;  %4878 = vmatmul.mubr.msk.f32.gmra.mxu0 %vm2848_vm3, %v6893_v19  ;;  %4910 = vmatmul.mubr.msk.f32.gmra.mxu1 %vm2848_vm3, %v6893_v19 }
 0x387   : > { %4301 = vst [vmem:[%s7073_s11 + $0x240] sm:$0xff] %v4045_v55  ;;  %4303 = vst [vmem:[%s7073_s11 + $0x250] sm:$0xff] %v4047_v9  ;;  %v4046_v5 = vmax.f32 %v3068_v3, 0.0  ;;  %v4048_v40 = vmax.f32 %v3325_v11, 0.0  ;;  %v3072_v12 = vadd.f32 %v3071_v14, %v7046_v45  ;;  %v3329_v43 = vadd.f32 %v3328_v18, %v7050_v39  ;;  %3685 = vmatprep.mubr.f32.mxu0 %v5139_v1 }
 0x388   : > { %3942 = vmatprep.mubr.f32.mxu1 %v5139_v1  ;;  %v3073_v17 = vpop.f32.mrf.mxu0  ;;  %v3330_v28 = vpop.f32.mrf.mxu1 }
 0x389   : > { %4302 = vst [vmem:[%s7073_s11 + $0x248] sm:$0xff] %v4046_v5  ;;  %4304 = vst [vmem:[%s7073_s11 + $0x258] sm:$0xff] %v4048_v40  ;;  %v4053_v26 = vmax.f32 %v3072_v12, 0.0  ;;  %v4055_v19 = vmax.f32 %v3329_v43, 0.0  ;;  %v3074_v25 = vadd.f32 %v3073_v17, %v7054_v48  ;;  %v3331_v34 = vadd.f32 %v3330_v28, %v7058_v63 }
 0x38a   : > { %v3077_v15 = vpop.f32.mrf.mxu0  ;;  %v3334_v59 = vpop.f32.mrf.mxu1  ;;  %4879 = vmatmul.mubr.msk.f32.gmra.mxu0 %vm2848_vm3, %v6901_v29  ;;  %4911 = vmatmul.mubr.msk.f32.gmra.mxu1 %vm2848_vm3, %v6901_v29 }
 0x38b   : > { %4309 = vst [vmem:[%s7073_s11 + $0x280] sm:$0xff] %v4053_v26  ;;  %4311 = vst [vmem:[%s7073_s11 + $0x290] sm:$0xff] %v4055_v19  ;;  %v4054_v41 = vmax.f32 %v3074_v25, 0.0  ;;  %v4056_v42 = vmax.f32 %v3331_v34, 0.0  ;;  %v3078_v23 = vadd.f32 %v3077_v15, %v7046_v45  ;;  %v3335_v53 = vadd.f32 %v3334_v59, %v7050_v39  ;;  %3691 = vmatprep.mubr.f32.mxu0 %v5139_v1 }
 0x38c   : > { %3948 = vmatprep.mubr.f32.mxu1 %v5139_v1  ;;  %v3079_v61 = vpop.f32.mrf.mxu0  ;;  %v3336_v33 = vpop.f32.mrf.mxu1 }
 0x38d   : > { %4310 = vst [vmem:[%s7073_s11 + $0x288] sm:$0xff] %v4054_v41  ;;  %4312 = vst [vmem:[%s7073_s11 + $0x298] sm:$0xff] %v4056_v42  ;;  %v4061_v16 = vmax.f32 %v3078_v23, 0.0  ;;  %v4063_v29 = vmax.f32 %v3335_v53, 0.0  ;;  %v3080_v24 = vadd.f32 %v3079_v61, %v7054_v48  ;;  %v3337_v37 = vadd.f32 %v3336_v33, %v7058_v63 }
 0x38e   : > { %v3083_v38 = vpop.f32.mrf.mxu0  ;;  %v3340_v44 = vpop.f32.mrf.mxu1  ;;  %4880 = vmatmul.mubr.msk.f32.gmra.mxu0 %vm2848_vm3, %v6911_v35  ;;  %4912 = vmatmul.mubr.msk.f32.gmra.mxu1 %vm2848_vm3, %v6911_v35 }
 0x38f   : > { %4317 = vst [vmem:[%s7073_s11 + $0x2c0] sm:$0xff] %v4061_v16  ;;  %4319 = vst [vmem:[%s7073_s11 + $0x2d0] sm:$0xff] %v4063_v29  ;;  %v4062_v60 = vmax.f32 %v3080_v24, 0.0  ;;  %v4064_v0 = vmax.f32 %v3337_v37, 0.0  ;;  %v3084_v7 = vadd.f32 %v3083_v38, %v7046_v45  ;;  %v3341_v51 = vadd.f32 %v3340_v44, %v7050_v39  ;;  %3697 = vmatprep.mubr.f32.mxu0 %v5139_v1 }
 0x390   : > { %3954 = vmatprep.mubr.f32.mxu1 %v5139_v1  ;;  %v3085_v22 = vpop.f32.mrf.mxu0  ;;  %v3342_v27 = vpop.f32.mrf.mxu1 }
 0x391   : > { %4318 = vst [vmem:[%s7073_s11 + $0x2c8] sm:$0xff] %v4062_v60  ;;  %4320 = vst [vmem:[%s7073_s11 + $0x2d8] sm:$0xff] %v4064_v0  ;;  %v4069_v8 = vmax.f32 %v3084_v7, 0.0  ;;  %v4071_v35 = vmax.f32 %v3341_v51, 0.0  ;;  %v3086_v50 = vadd.f32 %v3085_v22, %v7054_v48  ;;  %v3343_v54 = vadd.f32 %v3342_v27, %v7058_v63 }
 0x392   : > { %v3089_v21 = vpop.f32.mrf.mxu0  ;;  %v3346_v31 = vpop.f32.mrf.mxu1  ;;  %4881 = vmatmul.mubr.msk.f32.gmra.mxu0 %vm2848_vm3, %v6919_v58  ;;  %4913 = vmatmul.mubr.msk.f32.gmra.mxu1 %vm2848_vm3, %v6919_v58 }
 0x393   : > { %4325 = vst [vmem:[%s7073_s11 + $0x300] sm:$0xff] %v4069_v8  ;;  %4327 = vst [vmem:[%s7073_s11 + $0x310] sm:$0xff] %v4071_v35  ;;  %v4070_v32 = vmax.f32 %v3086_v50, 0.0  ;;  %v4072_v36 = vmax.f32 %v3343_v54, 0.0  ;;  %v3090_v2 = vadd.f32 %v3089_v21, %v7046_v45  ;;  %v3347_v20 = vadd.f32 %v3346_v31, %v7050_v39  ;;  %3703 = vmatprep.mubr.f32.mxu0 %v5139_v1 }
 0x394   : > { %3960 = vmatprep.mubr.f32.mxu1 %v5139_v1  ;;  %v3091_v52 = vpop.f32.mrf.mxu0  ;;  %v3348_v47 = vpop.f32.mrf.mxu1 }
 0x395   : > { %4326 = vst [vmem:[%s7073_s11 + $0x308] sm:$0xff] %v4070_v32  ;;  %4328 = vst [vmem:[%s7073_s11 + $0x318] sm:$0xff] %v4072_v36  ;;  %v4077_v56 = vmax.f32 %v3090_v2, 0.0  ;;  %v4079_v58 = vmax.f32 %v3347_v20, 0.0  ;;  %v3092_v57 = vadd.f32 %v3091_v52, %v7054_v48  ;;  %v3349_v62 = vadd.f32 %v3348_v47, %v7058_v63 }
 0x396   : > { %v3095_v55 = vpop.f32.mrf.mxu0  ;;  %v3352_v9 = vpop.f32.mrf.mxu1  ;;  %4882 = vmatmul.mubr.msk.f32.gmra.mxu0 %vm2848_vm3, %v6929_v46  ;;  %4914 = vmatmul.mubr.msk.f32.gmra.mxu1 %vm2848_vm3, %v6929_v46 }
 0x397   : > { %4333 = vst [vmem:[%s7073_s11 + $0x340] sm:$0xff] %v4077_v56  ;;  %4335 = vst [vmem:[%s7073_s11 + $0x350] sm:$0xff] %v4079_v58  ;;  %v4078_v3 = vmax.f32 %v3092_v57, 0.0  ;;  %v4080_v11 = vmax.f32 %v3349_v62, 0.0  ;;  %v3096_v14 = vadd.f32 %v3095_v55, %v7046_v45  ;;  %v3353_v18 = vadd.f32 %v3352_v9, %v7050_v39  ;;  %3709 = vmatprep.mubr.f32.mxu0 %v5139_v1 }
 0x398   : > { %3966 = vmatprep.mubr.f32.mxu1 %v5139_v1  ;;  %v3097_v5 = vpop.f32.mrf.mxu0  ;;  %v3354_v40 = vpop.f32.mrf.mxu1 }
 0x399   : > { %4334 = vst [vmem:[%s7073_s11 + $0x348] sm:$0xff] %v4078_v3  ;;  %4336 = vst [vmem:[%s7073_s11 + $0x358] sm:$0xff] %v4080_v11  ;;  %v4085_v12 = vmax.f32 %v3096_v14, 0.0  ;;  %v4087_v46 = vmax.f32 %v3353_v18, 0.0  ;;  %v3098_v43 = vadd.f32 %v3097_v5, %v7054_v48  ;;  %v3355_v17 = vadd.f32 %v3354_v40, %v7058_v63 }
 0x39a   : > { %v3101_v28 = vpop.f32.mrf.mxu0  ;;  %v3358_v26 = vpop.f32.mrf.mxu1  ;;  %4883 = vmatmul.mubr.msk.f32.gmra.mxu0 %vm2848_vm3, %v6937_v49  ;;  %4915 = vmatmul.mubr.msk.f32.gmra.mxu1 %vm2848_vm3, %v6937_v49 }
 0x39b   : > { %4341 = vst [vmem:[%s7073_s11 + $0x380] sm:$0xff] %v4085_v12  ;;  %4343 = vst [vmem:[%s7073_s11 + $0x390] sm:$0xff] %v4087_v46  ;;  %v4086_v1 = vmax.f32 %v3098_v43, 0.0  ;;  %v4088_v19 = vmax.f32 %v3355_v17, 0.0  ;;  %v3102_v25 = vadd.f32 %v3101_v28, %v7046_v45  ;;  %v3359_v34 = vadd.f32 %v3358_v26, %v7050_v39 }
 0x39c   : > { %v3103_v15 = vpop.f32.mrf.mxu0  ;;  %v3360_v59 = vpop.f32.mrf.mxu1 }
 0x39d   : > { %4342 = vst [vmem:[%s7073_s11 + $0x388] sm:$0xff] %v4086_v1  ;;  %4344 = vst [vmem:[%s7073_s11 + $0x398] sm:$0xff] %v4088_v19  ;;  %v4093_v41 = vmax.f32 %v3102_v25, 0.0  ;;  %v4095_v42 = vmax.f32 %v3359_v34, 0.0  ;;  %v3104_v49 = vadd.f32 %v3103_v15, %v7054_v48  ;;  %v3361_v23 = vadd.f32 %v3360_v59, %v7058_v63 }
 0x39e   : > { %v3107_v53 = vpop.f32.mrf.mxu0  ;;  %v3364_v61 = vpop.f32.mrf.mxu1 }
 0x39f   : > { %4349 = vst [vmem:[%s7073_s11 + $0x3c0] sm:$0xff] %v4093_v41  ;;  %4351 = vst [vmem:[%s7073_s11 + $0x3d0] sm:$0xff] %v4095_v42  ;;  %v4094_v33 = vmax.f32 %v3104_v49, 0.0  ;;  %v4096_v16 = vmax.f32 %v3361_v23, 0.0  ;;  %v3108_v29 = vadd.f32 %v3107_v53, %v7046_v45  ;;  %v3365_v24 = vadd.f32 %v3364_v61, %v7050_v39 }
 0x3a0   : > { %v3109_v37 = vpop.f32.mrf.mxu0  ;;  %v3366_v38 = vpop.f32.mrf.mxu1 }
 0x3a1   : > { %4350 = vst [vmem:[%s7073_s11 + $0x3c8] sm:$0xff] %v4094_v33  ;;  %4352 = vst [vmem:[%s7073_s11 + $0x3d8] sm:$0xff] %v4096_v16  ;;  %v4101_v44 = vmax.f32 %v3108_v29, 0.0  ;;  %v4103_v60 = vmax.f32 %v3365_v24, 0.0  ;;  %v3110_v0 = vadd.f32 %v3109_v37, %v7054_v48  ;;  %v3367_v7 = vadd.f32 %v3366_v38, %v7058_v63 }
 0x3a2   : > { %v3113_v51 = vpop.f32.mrf.mxu0  ;;  %v3370_v22 = vpop.f32.mrf.mxu1 }
 0x3a3   : > { %4357 = vst [vmem:[%s7073_s11 + $0x400] sm:$0xff] %v4101_v44  ;;  %4359 = vst [vmem:[%s7073_s11 + $0x410] sm:$0xff] %v4103_v60  ;;  %v4102_v27 = vmax.f32 %v3110_v0, 0.0  ;;  %v4104_v8 = vmax.f32 %v3367_v7, 0.0  ;;  %v3114_v35 = vadd.f32 %v3113_v51, %v7046_v45  ;;  %v3371_v50 = vadd.f32 %v3370_v22, %v7050_v39 }
 0x3a4   : > { %v3115_v54 = vpop.f32.mrf.mxu0  ;;  %v3372_v21 = vpop.f32.mrf.mxu1 }
 0x3a5   : > { %4358 = vst [vmem:[%s7073_s11 + $0x408] sm:$0xff] %v4102_v27  ;;  %4360 = vst [vmem:[%s7073_s11 + $0x418] sm:$0xff] %v4104_v8  ;;  %v4109_v31 = vmax.f32 %v3114_v35, 0.0  ;;  %v4111_v32 = vmax.f32 %v3371_v50, 0.0  ;;  %v3116_v36 = vadd.f32 %v3115_v54, %v7054_v48  ;;  %v3373_v2 = vadd.f32 %v3372_v21, %v7058_v63 }
 0x3a6   : > { %v3119_v20 = vpop.f32.mrf.mxu0  ;;  %v3376_v52 = vpop.f32.mrf.mxu1 }
 0x3a7   : > { %4365 = vst [vmem:[%s7073_s11 + $0x440] sm:$0xff] %v4109_v31  ;;  %4367 = vst [vmem:[%s7073_s11 + $0x450] sm:$0xff] %v4111_v32  ;;  %v4110_v47 = vmax.f32 %v3116_v36, 0.0  ;;  %v4112_v56 = vmax.f32 %v3373_v2, 0.0  ;;  %v3120_v58 = vadd.f32 %v3119_v20, %v7046_v45  ;;  %v3377_v57 = vadd.f32 %v3376_v52, %v7050_v39 }
 0x3a8   : > { %v3121_v62 = vpop.f32.mrf.mxu0  ;;  %v3378_v55 = vpop.f32.mrf.mxu1 }
 0x3a9   : > { %4366 = vst [vmem:[%s7073_s11 + $0x448] sm:$0xff] %v4110_v47  ;;  %4368 = vst [vmem:[%s7073_s11 + $0x458] sm:$0xff] %v4112_v56  ;;  %v4117_v9 = vmax.f32 %v3120_v58, 0.0  ;;  %v4119_v3 = vmax.f32 %v3377_v57, 0.0  ;;  %v3122_v11 = vadd.f32 %v3121_v62, %v7054_v48  ;;  %v3379_v14 = vadd.f32 %v3378_v55, %v7058_v63 }
 0x3aa   : > { %v3125_v18 = vpop.f32.mrf.mxu0  ;;  %v3382_v5 = vpop.f32.mrf.mxu1 }
 0x3ab   : > { %4373 = vst [vmem:[%s7073_s11 + $0x480] sm:$0xff] %v4117_v9  ;;  %4375 = vst [vmem:[%s7073_s11 + $0x490] sm:$0xff] %v4119_v3  ;;  %v4118_v40 = vmax.f32 %v3122_v11, 0.0  ;;  %v4120_v12 = vmax.f32 %v3379_v14, 0.0  ;;  %v3126_v46 = vadd.f32 %v3125_v18, %v7046_v45  ;;  %v3383_v43 = vadd.f32 %v3382_v5, %v7050_v39 }
 0x3ac   : > { %v3127_v17 = vpop.f32.mrf.mxu0  ;;  %v3384_v28 = vpop.f32.mrf.mxu1 }
 0x3ad   : > { %4374 = vst [vmem:[%s7073_s11 + $0x488] sm:$0xff] %v4118_v40  ;;  %4376 = vst [vmem:[%s7073_s11 + $0x498] sm:$0xff] %v4120_v12  ;;  %v4125_v26 = vmax.f32 %v3126_v46, 0.0  ;;  %v4127_v1 = vmax.f32 %v3383_v43, 0.0  ;;  %v3128_v19 = vadd.f32 %v3127_v17, %v7054_v48  ;;  %v3385_v25 = vadd.f32 %v3384_v28, %v7058_v63 }
 0x3ae   : > { %v3131_v34 = vpop.f32.mrf.mxu0  ;;  %v3388_v15 = vpop.f32.mrf.mxu1 }
 0x3af   : > { %4381 = vst [vmem:[%s7073_s11 + $0x4c0] sm:$0xff] %v4125_v26  ;;  %4383 = vst [vmem:[%s7073_s11 + $0x4d0] sm:$0xff] %v4127_v1  ;;  %v4126_v59 = vmax.f32 %v3128_v19, 0.0  ;;  %v4128_v41 = vmax.f32 %v3385_v25, 0.0  ;;  %v3132_v42 = vadd.f32 %v3131_v34, %v7046_v45  ;;  %v3389_v49 = vadd.f32 %v3388_v15, %v7050_v39 }
 0x3b0   : > { %v3133_v23 = vpop.f32.mrf.mxu0  ;;  %v3390_v53 = vpop.f32.mrf.mxu1 }
 0x3b1   : > { %4382 = vst [vmem:[%s7073_s11 + $0x4c8] sm:$0xff] %v4126_v59  ;;  %4384 = vst [vmem:[%s7073_s11 + $0x4d8] sm:$0xff] %v4128_v41  ;;  %v4133_v61 = vmax.f32 %v3132_v42, 0.0  ;;  %v4135_v33 = vmax.f32 %v3389_v49, 0.0  ;;  %v3134_v16 = vadd.f32 %v3133_v23, %v7054_v48  ;;  %v3391_v29 = vadd.f32 %v3390_v53, %v7058_v63 }
 0x3b2   : > { %v3137_v24 = vpop.f32.mrf.mxu0  ;;  %v3394_v37 = vpop.f32.mrf.mxu1 }
 0x3b3   : > { %4389 = vst [vmem:[%s7073_s11 + $0x500] sm:$0xff] %v4133_v61  ;;  %4391 = vst [vmem:[%s7073_s11 + $0x510] sm:$0xff] %v4135_v33  ;;  %v4134_v38 = vmax.f32 %v3134_v16, 0.0  ;;  %v4136_v44 = vmax.f32 %v3391_v29, 0.0  ;;  %v3138_v60 = vadd.f32 %v3137_v24, %v7046_v45  ;;  %v3395_v0 = vadd.f32 %v3394_v37, %v7050_v39 }
 0x3b4   : > { %v3139_v7 = vpop.f32.mrf.mxu0  ;;  %v3396_v51 = vpop.f32.mrf.mxu1 }
 0x3b5   : > { %4390 = vst [vmem:[%s7073_s11 + $0x508] sm:$0xff] %v4134_v38  ;;  %4392 = vst [vmem:[%s7073_s11 + $0x518] sm:$0xff] %v4136_v44  ;;  %v4141_v22 = vmax.f32 %v3138_v60, 0.0  ;;  %v4143_v27 = vmax.f32 %v3395_v0, 0.0  ;;  %v3140_v8 = vadd.f32 %v3139_v7, %v7054_v48  ;;  %v3397_v35 = vadd.f32 %v3396_v51, %v7058_v63 }
 0x3b6   : > { %v3143_v50 = vpop.f32.mrf.mxu0  ;;  %v3400_v54 = vpop.f32.mrf.mxu1 }
 0x3b7   : > { %4397 = vst [vmem:[%s7073_s11 + $0x540] sm:$0xff] %v4141_v22  ;;  %4399 = vst [vmem:[%s7073_s11 + $0x550] sm:$0xff] %v4143_v27  ;;  %v4142_v21 = vmax.f32 %v3140_v8, 0.0  ;;  %v4144_v31 = vmax.f32 %v3397_v35, 0.0  ;;  %v3144_v32 = vadd.f32 %v3143_v50, %v7046_v45  ;;  %v3401_v36 = vadd.f32 %v3400_v54, %v7050_v39 }
 0x3b8   : > { %v3145_v2 = vpop.f32.mrf.mxu0  ;;  %v3402_v20 = vpop.f32.mrf.mxu1 }
 0x3b9   : > { %4398 = vst [vmem:[%s7073_s11 + $0x548] sm:$0xff] %v4142_v21  ;;  %4400 = vst [vmem:[%s7073_s11 + $0x558] sm:$0xff] %v4144_v31  ;;  %v4149_v52 = vmax.f32 %v3144_v32, 0.0  ;;  %v4151_v47 = vmax.f32 %v3401_v36, 0.0  ;;  %v3146_v56 = vadd.f32 %v3145_v2, %v7054_v48  ;;  %v3403_v58 = vadd.f32 %v3402_v20, %v7058_v63 }
 0x3ba   : > { %v3149_v57 = vpop.f32.mrf.mxu0  ;;  %v3406_v62 = vpop.f32.mrf.mxu1 }
 0x3bb   : > { %4405 = vst [vmem:[%s7073_s11 + $0x580] sm:$0xff] %v4149_v52  ;;  %4407 = vst [vmem:[%s7073_s11 + $0x590] sm:$0xff] %v4151_v47  ;;  %v4150_v55 = vmax.f32 %v3146_v56, 0.0  ;;  %v4152_v9 = vmax.f32 %v3403_v58, 0.0  ;;  %v3150_v3 = vadd.f32 %v3149_v57, %v7046_v45  ;;  %v3407_v11 = vadd.f32 %v3406_v62, %v7050_v39 }
 0x3bc   : > { %v3151_v14 = vpop.f32.mrf.mxu0  ;;  %v3408_v18 = vpop.f32.mrf.mxu1 }
 0x3bd   : > { %4406 = vst [vmem:[%s7073_s11 + $0x588] sm:$0xff] %v4150_v55  ;;  %4408 = vst [vmem:[%s7073_s11 + $0x598] sm:$0xff] %v4152_v9  ;;  %v4157_v5 = vmax.f32 %v3150_v3, 0.0  ;;  %v4159_v40 = vmax.f32 %v3407_v11, 0.0  ;;  %v3152_v12 = vadd.f32 %v3151_v14, %v7054_v48  ;;  %v3409_v46 = vadd.f32 %v3408_v18, %v7058_v63 }
 0x3be   : > { %v3155_v43 = vpop.f32.mrf.mxu0  ;;  %v3412_v17 = vpop.f32.mrf.mxu1 }
 0x3bf   : > { %4413 = vst [vmem:[%s7073_s11 + $0x5c0] sm:$0xff] %v4157_v5  ;;  %4415 = vst [vmem:[%s7073_s11 + $0x5d0] sm:$0xff] %v4159_v40  ;;  %v4158_v28 = vmax.f32 %v3152_v12, 0.0  ;;  %v4160_v26 = vmax.f32 %v3409_v46, 0.0  ;;  %v3156_v1 = vadd.f32 %v3155_v43, %v7046_v45  ;;  %v3413_v19 = vadd.f32 %v3412_v17, %v7050_v39 }
 0x3c0   : > { %v3157_v25 = vpop.f32.mrf.mxu0  ;;  %v3414_v34 = vpop.f32.mrf.mxu1 }
 0x3c1   : > { %4414 = vst [vmem:[%s7073_s11 + $0x5c8] sm:$0xff] %v4158_v28  ;;  %4416 = vst [vmem:[%s7073_s11 + $0x5d8] sm:$0xff] %v4160_v26  ;;  %v4165_v15 = vmax.f32 %v3156_v1, 0.0  ;;  %v4167_v59 = vmax.f32 %v3413_v19, 0.0  ;;  %v3158_v41 = vadd.f32 %v3157_v25, %v7054_v48  ;;  %v3415_v42 = vadd.f32 %v3414_v34, %v7058_v63 }
 0x3c2   : > { %v3161_v49 = vpop.f32.mrf.mxu0  ;;  %v3418_v23 = vpop.f32.mrf.mxu1 }
 0x3c3   : > { %4421 = vst [vmem:[%s7073_s11 + $0x600] sm:$0xff] %v4165_v15  ;;  %4423 = vst [vmem:[%s7073_s11 + $0x610] sm:$0xff] %v4167_v59  ;;  %v4166_v53 = vmax.f32 %v3158_v41, 0.0  ;;  %v4168_v61 = vmax.f32 %v3415_v42, 0.0  ;;  %v3162_v33 = vadd.f32 %v3161_v49, %v7046_v45  ;;  %v3419_v16 = vadd.f32 %v3418_v23, %v7050_v39 }
 0x3c4   : > { %v3163_v29 = vpop.f32.mrf.mxu0  ;;  %v3420_v24 = vpop.f32.mrf.mxu1 }
 0x3c5   : > { %4422 = vst [vmem:[%s7073_s11 + $0x608] sm:$0xff] %v4166_v53  ;;  %4424 = vst [vmem:[%s7073_s11 + $0x618] sm:$0xff] %v4168_v61  ;;  %v4173_v37 = vmax.f32 %v3162_v33, 0.0  ;;  %v4175_v38 = vmax.f32 %v3419_v16, 0.0  ;;  %v3164_v44 = vadd.f32 %v3163_v29, %v7054_v48  ;;  %v3421_v60 = vadd.f32 %v3420_v24, %v7058_v63 }
 0x3c6   : > { %v3167_v0 = vpop.f32.mrf.mxu0  ;;  %v3424_v7 = vpop.f32.mrf.mxu1 }
 0x3c7   : > { %4429 = vst [vmem:[%s7073_s11 + $0x640] sm:$0xff] %v4173_v37  ;;  %4431 = vst [vmem:[%s7073_s11 + $0x650] sm:$0xff] %v4175_v38  ;;  %v4174_v51 = vmax.f32 %v3164_v44, 0.0  ;;  %v4176_v22 = vmax.f32 %v3421_v60, 0.0  ;;  %v3168_v27 = vadd.f32 %v3167_v0, %v7046_v45  ;;  %v3425_v8 = vadd.f32 %v3424_v7, %v7050_v39 }
 0x3c8   : > { %v3169_v35 = vpop.f32.mrf.mxu0  ;;  %v3426_v50 = vpop.f32.mrf.mxu1 }
 0x3c9   : > { %4430 = vst [vmem:[%s7073_s11 + $0x648] sm:$0xff] %v4174_v51  ;;  %4432 = vst [vmem:[%s7073_s11 + $0x658] sm:$0xff] %v4176_v22  ;;  %v4181_v54 = vmax.f32 %v3168_v27, 0.0  ;;  %v4183_v21 = vmax.f32 %v3425_v8, 0.0  ;;  %v3170_v31 = vadd.f32 %v3169_v35, %v7054_v48  ;;  %v3427_v32 = vadd.f32 %v3426_v50, %v7058_v63  ;;  %v5130_v50 = vld [vmem:[%s7703_s8] sm:$0xff] }
 0x3ca   : > { %v3173_v36 = vpop.f32.mrf.mxu0  ;;  %v3430_v2 = vpop.f32.mrf.mxu1 }
 0x3cb   : > { %4437 = vst [vmem:[%s7073_s11 + $0x680] sm:$0xff] %v4181_v54  ;;  %4439 = vst [vmem:[%s7073_s11 + $0x690] sm:$0xff] %v4183_v21  ;;  %v4182_v20 = vmax.f32 %v3170_v31, 0.0  ;;  %v4184_v52 = vmax.f32 %v3427_v32, 0.0  ;;  %v3174_v47 = vadd.f32 %v3173_v36, %v7046_v45  ;;  %v3431_v56 = vadd.f32 %v3430_v2, %v7050_v39 }
 0x3cc   : > { %v3175_v58 = vpop.f32.mrf.mxu0  ;;  %v3432_v57 = vpop.f32.mrf.mxu1  ;;  %v7410_v54 = vrot.slane %v5130_v50, %v863_v13  ;;  %v7414_v21 = vrot.slane %v5130_v50, %v871_v6  ;;  %v7422_v13 = vrot.slane %v5130_v50, %v867_v30  ;;  %v7426_v6 = vrot.slane %v5130_v50, %v875_v4 }
 0x3cd   : > { %4438 = vst [vmem:[%s7073_s11 + $0x688] sm:$0xff] %v4182_v20  ;;  %4440 = vst [vmem:[%s7073_s11 + $0x698] sm:$0xff] %v4184_v52  ;;  %v4189_v62 = vmax.f32 %v3174_v47, 0.0  ;;  %v4191_v55 = vmax.f32 %v3431_v56, 0.0  ;;  %v3176_v9 = vadd.f32 %v3175_v58, %v7054_v48  ;;  %v3433_v3 = vadd.f32 %v3432_v57, %v7058_v63 }
 0x3ce   : > { %v3179_v11 = vpop.f32.mrf.mxu0  ;;  %v3436_v14 = vpop.f32.mrf.mxu1 }
 0x3cf   : > { %4445 = vst [vmem:[%s7073_s11 + $0x6c0] sm:$0xff] %v4189_v62  ;;  %4447 = vst [vmem:[%s7073_s11 + $0x6d0] sm:$0xff] %v4191_v55  ;;  %v4190_v18 = vmax.f32 %v3176_v9, 0.0  ;;  %v4192_v5 = vmax.f32 %v3433_v3, 0.0  ;;  %v3180_v40 = vadd.f32 %v3179_v11, %v7046_v45  ;;  %v3437_v12 = vadd.f32 %v3436_v14, %v7050_v39 }
 0x3d0   : > { %v3181_v46 = vpop.f32.mrf.mxu0  ;;  %v3438_v43 = vpop.f32.mrf.mxu1 }
 0x3d1   : > { %4446 = vst [vmem:[%s7073_s11 + $0x6c8] sm:$0xff] %v4190_v18  ;;  %4448 = vst [vmem:[%s7073_s11 + $0x6d8] sm:$0xff] %v4192_v5  ;;  %v4197_v17 = vmax.f32 %v3180_v40, 0.0  ;;  %v4199_v28 = vmax.f32 %v3437_v12, 0.0  ;;  %v3182_v26 = vadd.f32 %v3181_v46, %v7054_v48  ;;  %v3439_v1 = vadd.f32 %v3438_v43, %v7058_v63 }
 0x3d2   : > { %v3185_v19 = vpop.f32.mrf.mxu0  ;;  %v3442_v25 = vpop.f32.mrf.mxu1 }
 0x3d3   : > { %4453 = vst [vmem:[%s7073_s11 + $0x700] sm:$0xff] %v4197_v17  ;;  %4455 = vst [vmem:[%s7073_s11 + $0x710] sm:$0xff] %v4199_v28  ;;  %v4198_v34 = vmax.f32 %v3182_v26, 0.0  ;;  %v4200_v15 = vmax.f32 %v3439_v1, 0.0  ;;  %v3186_v59 = vadd.f32 %v3185_v19, %v7046_v45  ;;  %v3443_v41 = vadd.f32 %v3442_v25, %v7050_v39 }
 0x3d4   : > { %v3187_v42 = vpop.f32.mrf.mxu0  ;;  %v3444_v49 = vpop.f32.mrf.mxu1 }
 0x3d5   : > { %4454 = vst [vmem:[%s7073_s11 + $0x708] sm:$0xff] %v4198_v34  ;;  %4456 = vst [vmem:[%s7073_s11 + $0x718] sm:$0xff] %v4200_v15  ;;  %v4205_v23 = vmax.f32 %v3186_v59, 0.0  ;;  %v4207_v53 = vmax.f32 %v3443_v41, 0.0  ;;  %v3188_v61 = vadd.f32 %v3187_v42, %v7054_v48  ;;  %v3445_v33 = vadd.f32 %v3444_v49, %v7058_v63 }
 0x3d6   : > { %v3191_v16 = vpop.f32.mrf.mxu0  ;;  %v3448_v29 = vpop.f32.mrf.mxu1 }
 0x3d7   : > { %4461 = vst [vmem:[%s7073_s11 + $0x740] sm:$0xff] %v4205_v23  ;;  %4463 = vst [vmem:[%s7073_s11 + $0x750] sm:$0xff] %v4207_v53  ;;  %v4206_v24 = vmax.f32 %v3188_v61, 0.0  ;;  %v4208_v37 = vmax.f32 %v3445_v33, 0.0  ;;  %v3192_v38 = vadd.f32 %v3191_v16, %v7046_v45  ;;  %v3449_v44 = vadd.f32 %v3448_v29, %v7050_v39 }
 0x3d8   : > { %v3193_v60 = vpop.f32.mrf.mxu0  ;;  %v3450_v0 = vpop.f32.mrf.mxu1 }
 0x3d9   : > { %4462 = vst [vmem:[%s7073_s11 + $0x748] sm:$0xff] %v4206_v24  ;;  %4464 = vst [vmem:[%s7073_s11 + $0x758] sm:$0xff] %v4208_v37  ;;  %v4213_v7 = vmax.f32 %v3192_v38, 0.0  ;;  %v4215_v51 = vmax.f32 %v3449_v44, 0.0  ;;  %v3194_v22 = vadd.f32 %v3193_v60, %v7054_v48  ;;  %v3451_v27 = vadd.f32 %v3450_v0, %v7058_v63 }
 0x3da   : > { %v3197_v8 = vpop.f32.mrf.mxu0  ;;  %v3454_v35 = vpop.f32.mrf.mxu1 }
 0x3db   : > { %4469 = vst [vmem:[%s7073_s11 + $0x780] sm:$0xff] %v4213_v7  ;;  %4471 = vst [vmem:[%s7073_s11 + $0x790] sm:$0xff] %v4215_v51  ;;  %v4214_v31 = vmax.f32 %v3194_v22, 0.0  ;;  %v4216_v32 = vmax.f32 %v3451_v27, 0.0  ;;  %v3198_v36 = vadd.f32 %v3197_v8, %v7046_v45  ;;  %v3455_v2 = vadd.f32 %v3454_v35, %v7050_v39 }
 0x3dc   : > { %v3199_v20 = vpop.f32.mrf.mxu0  ;;  %v3456_v52 = vpop.f32.mrf.mxu1 }
 0x3dd   : > { %4470 = vst [vmem:[%s7073_s11 + $0x788] sm:$0xff] %v4214_v31  ;;  %4472 = vst [vmem:[%s7073_s11 + $0x798] sm:$0xff] %v4216_v32  ;;  %v4221_v47 = vmax.f32 %v3198_v36, 0.0  ;;  %v4223_v56 = vmax.f32 %v3455_v2, 0.0  ;;  %v3200_v45 = vadd.f32 %v3199_v20, %v7054_v48  ;;  %v3457_v39 = vadd.f32 %v3456_v52, %v7058_v63 }
 0x3de   : > { %v3525_v58 = vpop.f32.mrf.mxu0  ;;  %v3782_v57 = vpop.f32.mrf.mxu1 }
 0x3df   : > { %4477 = vst [vmem:[%s7073_s11 + $0x7c0] sm:$0xff] %v4221_v47  ;;  %4479 = vst [vmem:[%s7073_s11 + $0x7d0] sm:$0xff] %v4223_v56  ;;  %v4222_v30 = vmax.f32 %v3200_v45, 0.0  ;;  %v4224_v10 = vmax.f32 %v3457_v39, 0.0  ;;  %v3526_v4 = vadd.f32 %v3525_v58, %v7410_v54  ;;  %v3783_v62 = vadd.f32 %v3782_v57, %v7414_v21 }
 0x3e0   : > { %v3527_v55 = vpop.f32.mrf.mxu0  ;;  %v3784_v9 = vpop.f32.mrf.mxu1 }
 0x3e1   : > { %4478 = vst [vmem:[%s7073_s11 + $0x7c8] sm:$0xff] %v4222_v30  ;;  %4480 = vst [vmem:[%s7073_s11 + $0x7d8] sm:$0xff] %v4224_v10  ;;  %v3977_v48 = vmax.f32 %v3526_v4, 0.0  ;;  %v3979_v63 = vmax.f32 %v3783_v62, 0.0  ;;  %v3528_v3 = vadd.f32 %v3527_v55, %v7422_v13  ;;  %v3785_v11 = vadd.f32 %v3784_v9, %v7426_v6 }
 0x3e2   : > { %v3531_v14 = vpop.f32.mrf.mxu0  ;;  %v3788_v18 = vpop.f32.mrf.mxu1 }
 0x3e3   : > { %4233 = vst [vmem:[%s7073_s11 + $0x20] sm:$0xff] %v3977_v48  ;;  %4235 = vst [vmem:[%s7073_s11 + $0x30] sm:$0xff] %v3979_v63  ;;  %v3978_v5 = vmax.f32 %v3528_v3, 0.0  ;;  %v3980_v40 = vmax.f32 %v3785_v11, 0.0  ;;  %v3532_v12 = vadd.f32 %v3531_v14, %v7410_v54  ;;  %v3789_v46 = vadd.f32 %v3788_v18, %v7414_v21 }
 0x3e4   : > { %v3533_v43 = vpop.f32.mrf.mxu0  ;;  %v3790_v17 = vpop.f32.mrf.mxu1 }
 0x3e5   : > { %4234 = vst [vmem:[%s7073_s11 + $0x28] sm:$0xff] %v3978_v5  ;;  %4236 = vst [vmem:[%s7073_s11 + $0x38] sm:$0xff] %v3980_v40  ;;  %v3985_v28 = vmax.f32 %v3532_v12, 0.0  ;;  %v3987_v26 = vmax.f32 %v3789_v46, 0.0  ;;  %v3534_v1 = vadd.f32 %v3533_v43, %v7422_v13  ;;  %v3791_v19 = vadd.f32 %v3790_v17, %v7426_v6 }
 0x3e6   : > { %v3537_v25 = vpop.f32.mrf.mxu0  ;;  %v3794_v34 = vpop.f32.mrf.mxu1 }
 0x3e7   : > { %4241 = vst [vmem:[%s7073_s11 + $0x60] sm:$0xff] %v3985_v28  ;;  %4243 = vst [vmem:[%s7073_s11 + $0x70] sm:$0xff] %v3987_v26  ;;  %v3986_v15 = vmax.f32 %v3534_v1, 0.0  ;;  %v3988_v59 = vmax.f32 %v3791_v19, 0.0  ;;  %v3538_v41 = vadd.f32 %v3537_v25, %v7410_v54  ;;  %v3795_v42 = vadd.f32 %v3794_v34, %v7414_v21 }
 0x3e8   : > { %v3539_v49 = vpop.f32.mrf.mxu0  ;;  %v3796_v23 = vpop.f32.mrf.mxu1 }
 0x3e9   : > { %4242 = vst [vmem:[%s7073_s11 + $0x68] sm:$0xff] %v3986_v15  ;;  %4244 = vst [vmem:[%s7073_s11 + $0x78] sm:$0xff] %v3988_v59  ;;  %v3993_v53 = vmax.f32 %v3538_v41, 0.0  ;;  %v3995_v61 = vmax.f32 %v3795_v42, 0.0  ;;  %v3540_v33 = vadd.f32 %v3539_v49, %v7422_v13  ;;  %v3797_v16 = vadd.f32 %v3796_v23, %v7426_v6 }
 0x3ea   : > { %v3543_v29 = vpop.f32.mrf.mxu0  ;;  %v3800_v24 = vpop.f32.mrf.mxu1 }
 0x3eb   : > { %4249 = vst [vmem:[%s7073_s11 + $0xa0] sm:$0xff] %v3993_v53  ;;  %4251 = vst [vmem:[%s7073_s11 + $0xb0] sm:$0xff] %v3995_v61  ;;  %v3994_v37 = vmax.f32 %v3540_v33, 0.0  ;;  %v3996_v38 = vmax.f32 %v3797_v16, 0.0  ;;  %v3544_v44 = vadd.f32 %v3543_v29, %v7410_v54  ;;  %v3801_v60 = vadd.f32 %v3800_v24, %v7414_v21 }
 0x3ec   : > { %v3545_v0 = vpop.f32.mrf.mxu0  ;;  %v3802_v7 = vpop.f32.mrf.mxu1 }
 0x3ed   : > { %4250 = vst [vmem:[%s7073_s11 + $0xa8] sm:$0xff] %v3994_v37  ;;  %4252 = vst [vmem:[%s7073_s11 + $0xb8] sm:$0xff] %v3996_v38  ;;  %v4001_v51 = vmax.f32 %v3544_v44, 0.0  ;;  %v4003_v22 = vmax.f32 %v3801_v60, 0.0  ;;  %v3546_v27 = vadd.f32 %v3545_v0, %v7422_v13  ;;  %v3803_v8 = vadd.f32 %v3802_v7, %v7426_v6 }
 0x3ee   : > { %v3549_v35 = vpop.f32.mrf.mxu0  ;;  %v3806_v50 = vpop.f32.mrf.mxu1 }
 0x3ef   : > { %4257 = vst [vmem:[%s7073_s11 + $0xe0] sm:$0xff] %v4001_v51  ;;  %4259 = vst [vmem:[%s7073_s11 + $0xf0] sm:$0xff] %v4003_v22  ;;  %v4002_v31 = vmax.f32 %v3546_v27, 0.0  ;;  %v4004_v32 = vmax.f32 %v3803_v8, 0.0  ;;  %v3550_v36 = vadd.f32 %v3549_v35, %v7410_v54  ;;  %v3807_v2 = vadd.f32 %v3806_v50, %v7414_v21 }
 0x3f0   : > { %v3551_v20 = vpop.f32.mrf.mxu0  ;;  %v3808_v52 = vpop.f32.mrf.mxu1 }
 0x3f1   : > { %4258 = vst [vmem:[%s7073_s11 + $0xe8] sm:$0xff] %v4002_v31  ;;  %4260 = vst [vmem:[%s7073_s11 + $0xf8] sm:$0xff] %v4004_v32  ;;  %v4009_v47 = vmax.f32 %v3550_v36, 0.0  ;;  %v4011_v56 = vmax.f32 %v3807_v2, 0.0  ;;  %v3552_v45 = vadd.f32 %v3551_v20, %v7422_v13  ;;  %v3809_v39 = vadd.f32 %v3808_v52, %v7426_v6 }
 0x3f2   : > { %v3555_v58 = vpop.f32.mrf.mxu0  ;;  %v3812_v57 = vpop.f32.mrf.mxu1 }
 0x3f3   : > { %4265 = vst [vmem:[%s7073_s11 + $0x120] sm:$0xff] %v4009_v47  ;;  %4267 = vst [vmem:[%s7073_s11 + $0x130] sm:$0xff] %v4011_v56  ;;  %v4010_v30 = vmax.f32 %v3552_v45, 0.0  ;;  %v4012_v10 = vmax.f32 %v3809_v39, 0.0  ;;  %v3556_v4 = vadd.f32 %v3555_v58, %v7410_v54  ;;  %v3813_v62 = vadd.f32 %v3812_v57, %v7414_v21 }
 0x3f4   : > { %v3557_v55 = vpop.f32.mrf.mxu0  ;;  %v3814_v9 = vpop.f32.mrf.mxu1 }
 0x3f5   : > { %4266 = vst [vmem:[%s7073_s11 + $0x128] sm:$0xff] %v4010_v30  ;;  %4268 = vst [vmem:[%s7073_s11 + $0x138] sm:$0xff] %v4012_v10  ;;  %v4017_v48 = vmax.f32 %v3556_v4, 0.0  ;;  %v4019_v63 = vmax.f32 %v3813_v62, 0.0  ;;  %v3558_v3 = vadd.f32 %v3557_v55, %v7422_v13  ;;  %v3815_v11 = vadd.f32 %v3814_v9, %v7426_v6 }
 0x3f6   : > { %v3561_v14 = vpop.f32.mrf.mxu0  ;;  %v3818_v18 = vpop.f32.mrf.mxu1 }
 0x3f7   : > { %4273 = vst [vmem:[%s7073_s11 + $0x160] sm:$0xff] %v4017_v48  ;;  %4275 = vst [vmem:[%s7073_s11 + $0x170] sm:$0xff] %v4019_v63  ;;  %v4018_v5 = vmax.f32 %v3558_v3, 0.0  ;;  %v4020_v40 = vmax.f32 %v3815_v11, 0.0  ;;  %v3562_v12 = vadd.f32 %v3561_v14, %v7410_v54  ;;  %v3819_v46 = vadd.f32 %v3818_v18, %v7414_v21 }
 0x3f8   : > { %v3563_v43 = vpop.f32.mrf.mxu0  ;;  %v3820_v17 = vpop.f32.mrf.mxu1 }
 0x3f9   : > { %4274 = vst [vmem:[%s7073_s11 + $0x168] sm:$0xff] %v4018_v5  ;;  %4276 = vst [vmem:[%s7073_s11 + $0x178] sm:$0xff] %v4020_v40  ;;  %v4025_v28 = vmax.f32 %v3562_v12, 0.0  ;;  %v4027_v26 = vmax.f32 %v3819_v46, 0.0  ;;  %v3564_v1 = vadd.f32 %v3563_v43, %v7422_v13  ;;  %v3821_v19 = vadd.f32 %v3820_v17, %v7426_v6 }
 0x3fa   : > { %v3567_v25 = vpop.f32.mrf.mxu0  ;;  %v3824_v34 = vpop.f32.mrf.mxu1 }
 0x3fb   : > { %4281 = vst [vmem:[%s7073_s11 + $0x1a0] sm:$0xff] %v4025_v28  ;;  %4283 = vst [vmem:[%s7073_s11 + $0x1b0] sm:$0xff] %v4027_v26  ;;  %v4026_v15 = vmax.f32 %v3564_v1, 0.0  ;;  %v4028_v59 = vmax.f32 %v3821_v19, 0.0  ;;  %v3568_v41 = vadd.f32 %v3567_v25, %v7410_v54  ;;  %v3825_v42 = vadd.f32 %v3824_v34, %v7414_v21 }
 0x3fc   : > { %v3569_v49 = vpop.f32.mrf.mxu0  ;;  %v3826_v23 = vpop.f32.mrf.mxu1 }
 0x3fd   : > { %4282 = vst [vmem:[%s7073_s11 + $0x1a8] sm:$0xff] %v4026_v15  ;;  %4284 = vst [vmem:[%s7073_s11 + $0x1b8] sm:$0xff] %v4028_v59  ;;  %v4033_v53 = vmax.f32 %v3568_v41, 0.0  ;;  %v4035_v61 = vmax.f32 %v3825_v42, 0.0  ;;  %v3570_v33 = vadd.f32 %v3569_v49, %v7422_v13  ;;  %v3827_v16 = vadd.f32 %v3826_v23, %v7426_v6 }
 0x3fe   : > { %v3573_v29 = vpop.f32.mrf.mxu0  ;;  %v3830_v24 = vpop.f32.mrf.mxu1 }
 0x3ff   : > { %4289 = vst [vmem:[%s7073_s11 + $0x1e0] sm:$0xff] %v4033_v53  ;;  %4291 = vst [vmem:[%s7073_s11 + $0x1f0] sm:$0xff] %v4035_v61  ;;  %v4034_v37 = vmax.f32 %v3570_v33, 0.0  ;;  %v4036_v38 = vmax.f32 %v3827_v16, 0.0  ;;  %v3574_v44 = vadd.f32 %v3573_v29, %v7410_v54  ;;  %v3831_v60 = vadd.f32 %v3830_v24, %v7414_v21 }
 0x400   : > { %v3575_v0 = vpop.f32.mrf.mxu0  ;;  %v3832_v7 = vpop.f32.mrf.mxu1 }
 0x401   : > { %4290 = vst [vmem:[%s7073_s11 + $0x1e8] sm:$0xff] %v4034_v37  ;;  %4292 = vst [vmem:[%s7073_s11 + $0x1f8] sm:$0xff] %v4036_v38  ;;  %v4041_v51 = vmax.f32 %v3574_v44, 0.0  ;;  %v4043_v22 = vmax.f32 %v3831_v60, 0.0  ;;  %v3576_v27 = vadd.f32 %v3575_v0, %v7422_v13  ;;  %v3833_v8 = vadd.f32 %v3832_v7, %v7426_v6 }
 0x402   : > { %v3579_v35 = vpop.f32.mrf.mxu0  ;;  %v3836_v50 = vpop.f32.mrf.mxu1 }
 0x403   : > { %4297 = vst [vmem:[%s7073_s11 + $0x220] sm:$0xff] %v4041_v51  ;;  %4299 = vst [vmem:[%s7073_s11 + $0x230] sm:$0xff] %v4043_v22  ;;  %v4042_v31 = vmax.f32 %v3576_v27, 0.0  ;;  %v4044_v32 = vmax.f32 %v3833_v8, 0.0  ;;  %v3580_v36 = vadd.f32 %v3579_v35, %v7410_v54  ;;  %v3837_v2 = vadd.f32 %v3836_v50, %v7414_v21 }
 0x404   : > { %v3581_v20 = vpop.f32.mrf.mxu0  ;;  %v3838_v52 = vpop.f32.mrf.mxu1 }
 0x405   : > { %4298 = vst [vmem:[%s7073_s11 + $0x228] sm:$0xff] %v4042_v31  ;;  %4300 = vst [vmem:[%s7073_s11 + $0x238] sm:$0xff] %v4044_v32  ;;  %v4049_v47 = vmax.f32 %v3580_v36, 0.0  ;;  %v4051_v56 = vmax.f32 %v3837_v2, 0.0  ;;  %v3582_v45 = vadd.f32 %v3581_v20, %v7422_v13  ;;  %v3839_v39 = vadd.f32 %v3838_v52, %v7426_v6 }
 0x406   : > { %v3585_v58 = vpop.f32.mrf.mxu0  ;;  %v3842_v57 = vpop.f32.mrf.mxu1 }
 0x407   : > { %4305 = vst [vmem:[%s7073_s11 + $0x260] sm:$0xff] %v4049_v47  ;;  %4307 = vst [vmem:[%s7073_s11 + $0x270] sm:$0xff] %v4051_v56  ;;  %v4050_v30 = vmax.f32 %v3582_v45, 0.0  ;;  %v4052_v10 = vmax.f32 %v3839_v39, 0.0  ;;  %v3586_v4 = vadd.f32 %v3585_v58, %v7410_v54  ;;  %v3843_v62 = vadd.f32 %v3842_v57, %v7414_v21 }
 0x408   : > { %v3587_v55 = vpop.f32.mrf.mxu0  ;;  %v3844_v9 = vpop.f32.mrf.mxu1 }
 0x409   : > { %4306 = vst [vmem:[%s7073_s11 + $0x268] sm:$0xff] %v4050_v30  ;;  %4308 = vst [vmem:[%s7073_s11 + $0x278] sm:$0xff] %v4052_v10  ;;  %v4057_v48 = vmax.f32 %v3586_v4, 0.0  ;;  %v4059_v63 = vmax.f32 %v3843_v62, 0.0  ;;  %v3588_v3 = vadd.f32 %v3587_v55, %v7422_v13  ;;  %v3845_v11 = vadd.f32 %v3844_v9, %v7426_v6 }
 0x40a   : > { %v3591_v14 = vpop.f32.mrf.mxu0  ;;  %v3848_v18 = vpop.f32.mrf.mxu1 }
 0x40b   : > { %4313 = vst [vmem:[%s7073_s11 + $0x2a0] sm:$0xff] %v4057_v48  ;;  %4315 = vst [vmem:[%s7073_s11 + $0x2b0] sm:$0xff] %v4059_v63  ;;  %v4058_v5 = vmax.f32 %v3588_v3, 0.0  ;;  %v4060_v40 = vmax.f32 %v3845_v11, 0.0  ;;  %v3592_v12 = vadd.f32 %v3591_v14, %v7410_v54  ;;  %v3849_v46 = vadd.f32 %v3848_v18, %v7414_v21 }
 0x40c   : > { %v3593_v43 = vpop.f32.mrf.mxu0  ;;  %v3850_v17 = vpop.f32.mrf.mxu1 }
 0x40d   : > { %4314 = vst [vmem:[%s7073_s11 + $0x2a8] sm:$0xff] %v4058_v5  ;;  %4316 = vst [vmem:[%s7073_s11 + $0x2b8] sm:$0xff] %v4060_v40  ;;  %v4065_v28 = vmax.f32 %v3592_v12, 0.0  ;;  %v4067_v26 = vmax.f32 %v3849_v46, 0.0  ;;  %v3594_v1 = vadd.f32 %v3593_v43, %v7422_v13  ;;  %v3851_v19 = vadd.f32 %v3850_v17, %v7426_v6 }
 0x40e   : > { %v3597_v25 = vpop.f32.mrf.mxu0  ;;  %v3854_v34 = vpop.f32.mrf.mxu1 }
 0x40f   : > { %4321 = vst [vmem:[%s7073_s11 + $0x2e0] sm:$0xff] %v4065_v28  ;;  %4323 = vst [vmem:[%s7073_s11 + $0x2f0] sm:$0xff] %v4067_v26  ;;  %v4066_v15 = vmax.f32 %v3594_v1, 0.0  ;;  %v4068_v59 = vmax.f32 %v3851_v19, 0.0  ;;  %v3598_v41 = vadd.f32 %v3597_v25, %v7410_v54  ;;  %v3855_v42 = vadd.f32 %v3854_v34, %v7414_v21 }
 0x410   : > { %v3599_v49 = vpop.f32.mrf.mxu0  ;;  %v3856_v23 = vpop.f32.mrf.mxu1 }
 0x411   : > { %4322 = vst [vmem:[%s7073_s11 + $0x2e8] sm:$0xff] %v4066_v15  ;;  %4324 = vst [vmem:[%s7073_s11 + $0x2f8] sm:$0xff] %v4068_v59  ;;  %v4073_v53 = vmax.f32 %v3598_v41, 0.0  ;;  %v4075_v61 = vmax.f32 %v3855_v42, 0.0  ;;  %v3600_v33 = vadd.f32 %v3599_v49, %v7422_v13  ;;  %v3857_v16 = vadd.f32 %v3856_v23, %v7426_v6 }
 0x412   : > { %v3603_v29 = vpop.f32.mrf.mxu0  ;;  %v3860_v24 = vpop.f32.mrf.mxu1 }
 0x413   : > { %4329 = vst [vmem:[%s7073_s11 + $0x320] sm:$0xff] %v4073_v53  ;;  %4331 = vst [vmem:[%s7073_s11 + $0x330] sm:$0xff] %v4075_v61  ;;  %v4074_v37 = vmax.f32 %v3600_v33, 0.0  ;;  %v4076_v38 = vmax.f32 %v3857_v16, 0.0  ;;  %v3604_v44 = vadd.f32 %v3603_v29, %v7410_v54  ;;  %v3861_v60 = vadd.f32 %v3860_v24, %v7414_v21 }
 0x414   : > { %v3605_v0 = vpop.f32.mrf.mxu0  ;;  %v3862_v7 = vpop.f32.mrf.mxu1 }
 0x415   : > { %4330 = vst [vmem:[%s7073_s11 + $0x328] sm:$0xff] %v4074_v37  ;;  %4332 = vst [vmem:[%s7073_s11 + $0x338] sm:$0xff] %v4076_v38  ;;  %v4081_v51 = vmax.f32 %v3604_v44, 0.0  ;;  %v4083_v22 = vmax.f32 %v3861_v60, 0.0  ;;  %v3606_v27 = vadd.f32 %v3605_v0, %v7422_v13  ;;  %v3863_v8 = vadd.f32 %v3862_v7, %v7426_v6 }
 0x416   : > { %v3609_v35 = vpop.f32.mrf.mxu0  ;;  %v3866_v50 = vpop.f32.mrf.mxu1 }
 0x417   : > { %4337 = vst [vmem:[%s7073_s11 + $0x360] sm:$0xff] %v4081_v51  ;;  %4339 = vst [vmem:[%s7073_s11 + $0x370] sm:$0xff] %v4083_v22  ;;  %v4082_v31 = vmax.f32 %v3606_v27, 0.0  ;;  %v4084_v32 = vmax.f32 %v3863_v8, 0.0  ;;  %v3610_v36 = vadd.f32 %v3609_v35, %v7410_v54  ;;  %v3867_v2 = vadd.f32 %v3866_v50, %v7414_v21 }
 0x418   : > { %v3611_v20 = vpop.f32.mrf.mxu0  ;;  %v3868_v52 = vpop.f32.mrf.mxu1 }
 0x419   : > { %4338 = vst [vmem:[%s7073_s11 + $0x368] sm:$0xff] %v4082_v31  ;;  %4340 = vst [vmem:[%s7073_s11 + $0x378] sm:$0xff] %v4084_v32  ;;  %v4089_v47 = vmax.f32 %v3610_v36, 0.0  ;;  %v4091_v56 = vmax.f32 %v3867_v2, 0.0  ;;  %v3612_v45 = vadd.f32 %v3611_v20, %v7422_v13  ;;  %v3869_v39 = vadd.f32 %v3868_v52, %v7426_v6 }
 0x41a   : > { %v3615_v58 = vpop.f32.mrf.mxu0  ;;  %v3872_v57 = vpop.f32.mrf.mxu1 }
 0x41b   : > { %4345 = vst [vmem:[%s7073_s11 + $0x3a0] sm:$0xff] %v4089_v47  ;;  %4347 = vst [vmem:[%s7073_s11 + $0x3b0] sm:$0xff] %v4091_v56  ;;  %v4090_v30 = vmax.f32 %v3612_v45, 0.0  ;;  %v4092_v10 = vmax.f32 %v3869_v39, 0.0  ;;  %v3616_v4 = vadd.f32 %v3615_v58, %v7410_v54  ;;  %v3873_v62 = vadd.f32 %v3872_v57, %v7414_v21 }
 0x41c   : > { %v3617_v55 = vpop.f32.mrf.mxu0  ;;  %v3874_v9 = vpop.f32.mrf.mxu1 }
 0x41d   : > { %4346 = vst [vmem:[%s7073_s11 + $0x3a8] sm:$0xff] %v4090_v30  ;;  %4348 = vst [vmem:[%s7073_s11 + $0x3b8] sm:$0xff] %v4092_v10  ;;  %v4097_v48 = vmax.f32 %v3616_v4, 0.0  ;;  %v4099_v63 = vmax.f32 %v3873_v62, 0.0  ;;  %v3618_v3 = vadd.f32 %v3617_v55, %v7422_v13  ;;  %v3875_v11 = vadd.f32 %v3874_v9, %v7426_v6 }
 0x41e   : > { %v3621_v14 = vpop.f32.mrf.mxu0  ;;  %v3878_v18 = vpop.f32.mrf.mxu1 }
 0x41f   : > { %4353 = vst [vmem:[%s7073_s11 + $0x3e0] sm:$0xff] %v4097_v48  ;;  %4355 = vst [vmem:[%s7073_s11 + $0x3f0] sm:$0xff] %v4099_v63  ;;  %v4098_v5 = vmax.f32 %v3618_v3, 0.0  ;;  %v4100_v40 = vmax.f32 %v3875_v11, 0.0  ;;  %v3622_v12 = vadd.f32 %v3621_v14, %v7410_v54  ;;  %v3879_v46 = vadd.f32 %v3878_v18, %v7414_v21 }
 0x420   : > { %v3623_v43 = vpop.f32.mrf.mxu0  ;;  %v3880_v17 = vpop.f32.mrf.mxu1 }
 0x421   : > { %4354 = vst [vmem:[%s7073_s11 + $0x3e8] sm:$0xff] %v4098_v5  ;;  %4356 = vst [vmem:[%s7073_s11 + $0x3f8] sm:$0xff] %v4100_v40  ;;  %v4105_v28 = vmax.f32 %v3622_v12, 0.0  ;;  %v4107_v26 = vmax.f32 %v3879_v46, 0.0  ;;  %v3624_v1 = vadd.f32 %v3623_v43, %v7422_v13  ;;  %v3881_v19 = vadd.f32 %v3880_v17, %v7426_v6 }
 0x422   : > { %v3627_v25 = vpop.f32.mrf.mxu0  ;;  %v3884_v34 = vpop.f32.mrf.mxu1 }
 0x423   : > { %4361 = vst [vmem:[%s7073_s11 + $0x420] sm:$0xff] %v4105_v28  ;;  %4363 = vst [vmem:[%s7073_s11 + $0x430] sm:$0xff] %v4107_v26  ;;  %v4106_v15 = vmax.f32 %v3624_v1, 0.0  ;;  %v4108_v59 = vmax.f32 %v3881_v19, 0.0  ;;  %v3628_v41 = vadd.f32 %v3627_v25, %v7410_v54  ;;  %v3885_v42 = vadd.f32 %v3884_v34, %v7414_v21 }
 0x424   : > { %v3629_v49 = vpop.f32.mrf.mxu0  ;;  %v3886_v23 = vpop.f32.mrf.mxu1 }
 0x425   : > { %4362 = vst [vmem:[%s7073_s11 + $0x428] sm:$0xff] %v4106_v15  ;;  %4364 = vst [vmem:[%s7073_s11 + $0x438] sm:$0xff] %v4108_v59  ;;  %v4113_v53 = vmax.f32 %v3628_v41, 0.0  ;;  %v4115_v61 = vmax.f32 %v3885_v42, 0.0  ;;  %v3630_v33 = vadd.f32 %v3629_v49, %v7422_v13  ;;  %v3887_v16 = vadd.f32 %v3886_v23, %v7426_v6 }
 0x426   : > { %v3633_v29 = vpop.f32.mrf.mxu0  ;;  %v3890_v24 = vpop.f32.mrf.mxu1 }
 0x427   : > { %4369 = vst [vmem:[%s7073_s11 + $0x460] sm:$0xff] %v4113_v53  ;;  %4371 = vst [vmem:[%s7073_s11 + $0x470] sm:$0xff] %v4115_v61  ;;  %v4114_v37 = vmax.f32 %v3630_v33, 0.0  ;;  %v4116_v38 = vmax.f32 %v3887_v16, 0.0  ;;  %v3634_v44 = vadd.f32 %v3633_v29, %v7410_v54  ;;  %v3891_v60 = vadd.f32 %v3890_v24, %v7414_v21 }
 0x428   : > { %v3635_v0 = vpop.f32.mrf.mxu0  ;;  %v3892_v7 = vpop.f32.mrf.mxu1 }
 0x429   : > { %4370 = vst [vmem:[%s7073_s11 + $0x468] sm:$0xff] %v4114_v37  ;;  %4372 = vst [vmem:[%s7073_s11 + $0x478] sm:$0xff] %v4116_v38  ;;  %v4121_v51 = vmax.f32 %v3634_v44, 0.0  ;;  %v4123_v22 = vmax.f32 %v3891_v60, 0.0  ;;  %v3636_v27 = vadd.f32 %v3635_v0, %v7422_v13  ;;  %v3893_v8 = vadd.f32 %v3892_v7, %v7426_v6 }
 0x42a   : > { %v3639_v35 = vpop.f32.mrf.mxu0  ;;  %v3896_v50 = vpop.f32.mrf.mxu1 }
 0x42b   : > { %4377 = vst [vmem:[%s7073_s11 + $0x4a0] sm:$0xff] %v4121_v51  ;;  %4379 = vst [vmem:[%s7073_s11 + $0x4b0] sm:$0xff] %v4123_v22  ;;  %v4122_v31 = vmax.f32 %v3636_v27, 0.0  ;;  %v4124_v32 = vmax.f32 %v3893_v8, 0.0  ;;  %v3640_v36 = vadd.f32 %v3639_v35, %v7410_v54  ;;  %v3897_v2 = vadd.f32 %v3896_v50, %v7414_v21 }
 0x42c   : > { %v3641_v20 = vpop.f32.mrf.mxu0  ;;  %v3898_v52 = vpop.f32.mrf.mxu1 }
 0x42d   : > { %4378 = vst [vmem:[%s7073_s11 + $0x4a8] sm:$0xff] %v4122_v31  ;;  %4380 = vst [vmem:[%s7073_s11 + $0x4b8] sm:$0xff] %v4124_v32  ;;  %v4129_v47 = vmax.f32 %v3640_v36, 0.0  ;;  %v4131_v56 = vmax.f32 %v3897_v2, 0.0  ;;  %v3642_v45 = vadd.f32 %v3641_v20, %v7422_v13  ;;  %v3899_v39 = vadd.f32 %v3898_v52, %v7426_v6 }
 0x42e   : > { %v3645_v58 = vpop.f32.mrf.mxu0  ;;  %v3902_v57 = vpop.f32.mrf.mxu1 }
 0x42f   : > { %4385 = vst [vmem:[%s7073_s11 + $0x4e0] sm:$0xff] %v4129_v47  ;;  %4387 = vst [vmem:[%s7073_s11 + $0x4f0] sm:$0xff] %v4131_v56  ;;  %v4130_v30 = vmax.f32 %v3642_v45, 0.0  ;;  %v4132_v10 = vmax.f32 %v3899_v39, 0.0  ;;  %v3646_v4 = vadd.f32 %v3645_v58, %v7410_v54  ;;  %v3903_v62 = vadd.f32 %v3902_v57, %v7414_v21 }
 0x430   : > { %v3647_v55 = vpop.f32.mrf.mxu0  ;;  %v3904_v9 = vpop.f32.mrf.mxu1 }
 0x431   : > { %4386 = vst [vmem:[%s7073_s11 + $0x4e8] sm:$0xff] %v4130_v30  ;;  %4388 = vst [vmem:[%s7073_s11 + $0x4f8] sm:$0xff] %v4132_v10  ;;  %v4137_v48 = vmax.f32 %v3646_v4, 0.0  ;;  %v4139_v63 = vmax.f32 %v3903_v62, 0.0  ;;  %v3648_v3 = vadd.f32 %v3647_v55, %v7422_v13  ;;  %v3905_v11 = vadd.f32 %v3904_v9, %v7426_v6 }
 0x432   : > { %v3651_v14 = vpop.f32.mrf.mxu0  ;;  %v3908_v18 = vpop.f32.mrf.mxu1 }
 0x433   : > { %4393 = vst [vmem:[%s7073_s11 + $0x520] sm:$0xff] %v4137_v48  ;;  %4395 = vst [vmem:[%s7073_s11 + $0x530] sm:$0xff] %v4139_v63  ;;  %v4138_v5 = vmax.f32 %v3648_v3, 0.0  ;;  %v4140_v40 = vmax.f32 %v3905_v11, 0.0  ;;  %v3652_v12 = vadd.f32 %v3651_v14, %v7410_v54  ;;  %v3909_v46 = vadd.f32 %v3908_v18, %v7414_v21 }
 0x434   : > { %v3653_v43 = vpop.f32.mrf.mxu0  ;;  %v3910_v17 = vpop.f32.mrf.mxu1 }
 0x435   : > { %4394 = vst [vmem:[%s7073_s11 + $0x528] sm:$0xff] %v4138_v5  ;;  %4396 = vst [vmem:[%s7073_s11 + $0x538] sm:$0xff] %v4140_v40  ;;  %v4145_v28 = vmax.f32 %v3652_v12, 0.0  ;;  %v4147_v26 = vmax.f32 %v3909_v46, 0.0  ;;  %v3654_v1 = vadd.f32 %v3653_v43, %v7422_v13  ;;  %v3911_v19 = vadd.f32 %v3910_v17, %v7426_v6 }
 0x436   : > { %v3657_v25 = vpop.f32.mrf.mxu0  ;;  %v3914_v34 = vpop.f32.mrf.mxu1 }
 0x437   : > { %4401 = vst [vmem:[%s7073_s11 + $0x560] sm:$0xff] %v4145_v28  ;;  %4403 = vst [vmem:[%s7073_s11 + $0x570] sm:$0xff] %v4147_v26  ;;  %v4146_v15 = vmax.f32 %v3654_v1, 0.0  ;;  %v4148_v59 = vmax.f32 %v3911_v19, 0.0  ;;  %v3658_v41 = vadd.f32 %v3657_v25, %v7410_v54  ;;  %v3915_v42 = vadd.f32 %v3914_v34, %v7414_v21 }
 0x438   : > { %v3659_v49 = vpop.f32.mrf.mxu0  ;;  %v3916_v23 = vpop.f32.mrf.mxu1 }
 0x439   : > { %4402 = vst [vmem:[%s7073_s11 + $0x568] sm:$0xff] %v4146_v15  ;;  %4404 = vst [vmem:[%s7073_s11 + $0x578] sm:$0xff] %v4148_v59  ;;  %v4153_v53 = vmax.f32 %v3658_v41, 0.0  ;;  %v4155_v61 = vmax.f32 %v3915_v42, 0.0  ;;  %v3660_v33 = vadd.f32 %v3659_v49, %v7422_v13  ;;  %v3917_v16 = vadd.f32 %v3916_v23, %v7426_v6 }
 0x43a   : > { %v3663_v29 = vpop.f32.mrf.mxu0  ;;  %v3920_v24 = vpop.f32.mrf.mxu1 }
 0x43b   : > { %4409 = vst [vmem:[%s7073_s11 + $0x5a0] sm:$0xff] %v4153_v53  ;;  %4411 = vst [vmem:[%s7073_s11 + $0x5b0] sm:$0xff] %v4155_v61  ;;  %v4154_v37 = vmax.f32 %v3660_v33, 0.0  ;;  %v4156_v38 = vmax.f32 %v3917_v16, 0.0  ;;  %v3664_v44 = vadd.f32 %v3663_v29, %v7410_v54  ;;  %v3921_v60 = vadd.f32 %v3920_v24, %v7414_v21 }
 0x43c   : > { %v3665_v0 = vpop.f32.mrf.mxu0  ;;  %v3922_v7 = vpop.f32.mrf.mxu1 }
 0x43d   : > { %4410 = vst [vmem:[%s7073_s11 + $0x5a8] sm:$0xff] %v4154_v37  ;;  %4412 = vst [vmem:[%s7073_s11 + $0x5b8] sm:$0xff] %v4156_v38  ;;  %v4161_v51 = vmax.f32 %v3664_v44, 0.0  ;;  %v4163_v22 = vmax.f32 %v3921_v60, 0.0  ;;  %v3666_v27 = vadd.f32 %v3665_v0, %v7422_v13  ;;  %v3923_v8 = vadd.f32 %v3922_v7, %v7426_v6 }
 0x43e   : > { %v3669_v35 = vpop.f32.mrf.mxu0  ;;  %v3926_v50 = vpop.f32.mrf.mxu1 }
 0x43f   : > { %4417 = vst [vmem:[%s7073_s11 + $0x5e0] sm:$0xff] %v4161_v51  ;;  %4419 = vst [vmem:[%s7073_s11 + $0x5f0] sm:$0xff] %v4163_v22  ;;  %v4162_v31 = vmax.f32 %v3666_v27, 0.0  ;;  %v4164_v32 = vmax.f32 %v3923_v8, 0.0  ;;  %v3670_v36 = vadd.f32 %v3669_v35, %v7410_v54  ;;  %v3927_v2 = vadd.f32 %v3926_v50, %v7414_v21 }
 0x440   : > { %v3671_v20 = vpop.f32.mrf.mxu0  ;;  %v3928_v52 = vpop.f32.mrf.mxu1 }
 0x441   : > { %4418 = vst [vmem:[%s7073_s11 + $0x5e8] sm:$0xff] %v4162_v31  ;;  %4420 = vst [vmem:[%s7073_s11 + $0x5f8] sm:$0xff] %v4164_v32  ;;  %v4169_v47 = vmax.f32 %v3670_v36, 0.0  ;;  %v4171_v56 = vmax.f32 %v3927_v2, 0.0  ;;  %v3672_v45 = vadd.f32 %v3671_v20, %v7422_v13  ;;  %v3929_v39 = vadd.f32 %v3928_v52, %v7426_v6 }
 0x442   : > { %v3675_v58 = vpop.f32.mrf.mxu0  ;;  %v3932_v57 = vpop.f32.mrf.mxu1 }
 0x443   : > { %4425 = vst [vmem:[%s7073_s11 + $0x620] sm:$0xff] %v4169_v47  ;;  %4427 = vst [vmem:[%s7073_s11 + $0x630] sm:$0xff] %v4171_v56  ;;  %v4170_v30 = vmax.f32 %v3672_v45, 0.0  ;;  %v4172_v10 = vmax.f32 %v3929_v39, 0.0  ;;  %v3676_v4 = vadd.f32 %v3675_v58, %v7410_v54  ;;  %v3933_v62 = vadd.f32 %v3932_v57, %v7414_v21 }
 0x444   : > { %v3677_v55 = vpop.f32.mrf.mxu0  ;;  %v3934_v9 = vpop.f32.mrf.mxu1 }
 0x445   : > { %4426 = vst [vmem:[%s7073_s11 + $0x628] sm:$0xff] %v4170_v30  ;;  %4428 = vst [vmem:[%s7073_s11 + $0x638] sm:$0xff] %v4172_v10  ;;  %v4177_v48 = vmax.f32 %v3676_v4, 0.0  ;;  %v4179_v63 = vmax.f32 %v3933_v62, 0.0  ;;  %v3678_v3 = vadd.f32 %v3677_v55, %v7422_v13  ;;  %v3935_v11 = vadd.f32 %v3934_v9, %v7426_v6 }
 0x446   : > { %v3681_v14 = vpop.f32.mrf.mxu0  ;;  %v3938_v18 = vpop.f32.mrf.mxu1 }
 0x447   : > { %4433 = vst [vmem:[%s7073_s11 + $0x660] sm:$0xff] %v4177_v48  ;;  %4435 = vst [vmem:[%s7073_s11 + $0x670] sm:$0xff] %v4179_v63  ;;  %v4178_v5 = vmax.f32 %v3678_v3, 0.0  ;;  %v4180_v40 = vmax.f32 %v3935_v11, 0.0  ;;  %v3682_v12 = vadd.f32 %v3681_v14, %v7410_v54  ;;  %v3939_v46 = vadd.f32 %v3938_v18, %v7414_v21 }
 0x448   : > { %v3683_v43 = vpop.f32.mrf.mxu0  ;;  %v3940_v17 = vpop.f32.mrf.mxu1 }
 0x449   : > { %4434 = vst [vmem:[%s7073_s11 + $0x668] sm:$0xff] %v4178_v5  ;;  %4436 = vst [vmem:[%s7073_s11 + $0x678] sm:$0xff] %v4180_v40  ;;  %v4185_v28 = vmax.f32 %v3682_v12, 0.0  ;;  %v4187_v26 = vmax.f32 %v3939_v46, 0.0  ;;  %v3684_v1 = vadd.f32 %v3683_v43, %v7422_v13  ;;  %v3941_v19 = vadd.f32 %v3940_v17, %v7426_v6 }
 0x44a   : > { %v3687_v25 = vpop.f32.mrf.mxu0  ;;  %v3944_v34 = vpop.f32.mrf.mxu1 }
 0x44b   : > { %4441 = vst [vmem:[%s7073_s11 + $0x6a0] sm:$0xff] %v4185_v28  ;;  %4443 = vst [vmem:[%s7073_s11 + $0x6b0] sm:$0xff] %v4187_v26  ;;  %v4186_v15 = vmax.f32 %v3684_v1, 0.0  ;;  %v4188_v59 = vmax.f32 %v3941_v19, 0.0  ;;  %v3688_v41 = vadd.f32 %v3687_v25, %v7410_v54  ;;  %v3945_v42 = vadd.f32 %v3944_v34, %v7414_v21 }
 0x44c   : > { %v3689_v49 = vpop.f32.mrf.mxu0  ;;  %v3946_v23 = vpop.f32.mrf.mxu1 }
 0x44d   : > { %4442 = vst [vmem:[%s7073_s11 + $0x6a8] sm:$0xff] %v4186_v15  ;;  %4444 = vst [vmem:[%s7073_s11 + $0x6b8] sm:$0xff] %v4188_v59  ;;  %v4193_v53 = vmax.f32 %v3688_v41, 0.0  ;;  %v4195_v61 = vmax.f32 %v3945_v42, 0.0  ;;  %v3690_v33 = vadd.f32 %v3689_v49, %v7422_v13  ;;  %v3947_v16 = vadd.f32 %v3946_v23, %v7426_v6 }
 0x44e   : > { %v3693_v29 = vpop.f32.mrf.mxu0  ;;  %v3950_v24 = vpop.f32.mrf.mxu1 }
 0x44f   : > { %4449 = vst [vmem:[%s7073_s11 + $0x6e0] sm:$0xff] %v4193_v53  ;;  %4451 = vst [vmem:[%s7073_s11 + $0x6f0] sm:$0xff] %v4195_v61  ;;  %v4194_v37 = vmax.f32 %v3690_v33, 0.0  ;;  %v4196_v38 = vmax.f32 %v3947_v16, 0.0  ;;  %v3694_v44 = vadd.f32 %v3693_v29, %v7410_v54  ;;  %v3951_v60 = vadd.f32 %v3950_v24, %v7414_v21 }
 0x450   : > { %v3695_v0 = vpop.f32.mrf.mxu0  ;;  %v3952_v7 = vpop.f32.mrf.mxu1 }
 0x451   : > { %4450 = vst [vmem:[%s7073_s11 + $0x6e8] sm:$0xff] %v4194_v37  ;;  %4452 = vst [vmem:[%s7073_s11 + $0x6f8] sm:$0xff] %v4196_v38  ;;  %v4201_v51 = vmax.f32 %v3694_v44, 0.0  ;;  %v4203_v22 = vmax.f32 %v3951_v60, 0.0  ;;  %v3696_v27 = vadd.f32 %v3695_v0, %v7422_v13  ;;  %v3953_v8 = vadd.f32 %v3952_v7, %v7426_v6 }
 0x452   : > { %v3699_v35 = vpop.f32.mrf.mxu0  ;;  %v3956_v50 = vpop.f32.mrf.mxu1 }
 0x453   : > { %4457 = vst [vmem:[%s7073_s11 + $0x720] sm:$0xff] %v4201_v51  ;;  %4459 = vst [vmem:[%s7073_s11 + $0x730] sm:$0xff] %v4203_v22  ;;  %v4202_v31 = vmax.f32 %v3696_v27, 0.0  ;;  %v4204_v32 = vmax.f32 %v3953_v8, 0.0  ;;  %v3700_v36 = vadd.f32 %v3699_v35, %v7410_v54  ;;  %v3957_v2 = vadd.f32 %v3956_v50, %v7414_v21 }
 0x454   : > { %v3701_v20 = vpop.f32.mrf.mxu0  ;;  %v3958_v52 = vpop.f32.mrf.mxu1 }
 0x455   : > { %4458 = vst [vmem:[%s7073_s11 + $0x728] sm:$0xff] %v4202_v31  ;;  %4460 = vst [vmem:[%s7073_s11 + $0x738] sm:$0xff] %v4204_v32  ;;  %v4209_v47 = vmax.f32 %v3700_v36, 0.0  ;;  %v4211_v56 = vmax.f32 %v3957_v2, 0.0  ;;  %v3702_v45 = vadd.f32 %v3701_v20, %v7422_v13  ;;  %v3959_v39 = vadd.f32 %v3958_v52, %v7426_v6 }
 0x456   : > { %v3705_v58 = vpop.f32.mrf.mxu0  ;;  %v3962_v57 = vpop.f32.mrf.mxu1 }
 0x457   : > { %4465 = vst [vmem:[%s7073_s11 + $0x760] sm:$0xff] %v4209_v47  ;;  %4467 = vst [vmem:[%s7073_s11 + $0x770] sm:$0xff] %v4211_v56  ;;  %v4210_v30 = vmax.f32 %v3702_v45, 0.0  ;;  %v4212_v10 = vmax.f32 %v3959_v39, 0.0  ;;  %v3706_v4 = vadd.f32 %v3705_v58, %v7410_v54  ;;  %v3963_v62 = vadd.f32 %v3962_v57, %v7414_v21 }
 0x458   : > { %v3707_v55 = vpop.f32.mrf.mxu0  ;;  %v3964_v9 = vpop.f32.mrf.mxu1 }
 0x459   : > { %4466 = vst [vmem:[%s7073_s11 + $0x768] sm:$0xff] %v4210_v30  ;;  %4468 = vst [vmem:[%s7073_s11 + $0x778] sm:$0xff] %v4212_v10  ;;  %v4217_v48 = vmax.f32 %v3706_v4, 0.0  ;;  %v4219_v63 = vmax.f32 %v3963_v62, 0.0  ;;  %v3708_v3 = vadd.f32 %v3707_v55, %v7422_v13  ;;  %v3965_v11 = vadd.f32 %v3964_v9, %v7426_v6 }
 0x45a   : > { %v3711_v14 = vpop.f32.mrf.mxu0  ;;  %v3968_v18 = vpop.f32.mrf.mxu1 }
 0x45b   : > { %4473 = vst [vmem:[%s7073_s11 + $0x7a0] sm:$0xff] %v4217_v48  ;;  %4475 = vst [vmem:[%s7073_s11 + $0x7b0] sm:$0xff] %v4219_v63  ;;  %v4218_v5 = vmax.f32 %v3708_v3, 0.0  ;;  %v4220_v40 = vmax.f32 %v3965_v11, 0.0  ;;  %v3712_v12 = vadd.f32 %v3711_v14, %v7410_v54  ;;  %v3969_v46 = vadd.f32 %v3968_v18, %v7414_v21 }
 0x45c   : > { %v3713_v43 = vpop.f32.mrf.mxu0  ;;  %v3970_v17 = vpop.f32.mrf.mxu1 }
 0x45d   : > { %4474 = vst [vmem:[%s7073_s11 + $0x7a8] sm:$0xff] %v4218_v5  ;;  %4476 = vst [vmem:[%s7073_s11 + $0x7b8] sm:$0xff] %v4220_v40  ;;  %v4225_v28 = vmax.f32 %v3712_v12, 0.0  ;;  %v4227_v26 = vmax.f32 %v3969_v46, 0.0  ;;  %v3714_v1 = vadd.f32 %v3713_v43, %v7422_v13  ;;  %v3971_v19 = vadd.f32 %v3970_v17, %v7426_v6 }
 0x45f   : > { %4481 = vst [vmem:[%s7073_s11 + $0x7e0] sm:$0xff] %v4225_v28  ;;  %4483 = vst [vmem:[%s7073_s11 + $0x7f0] sm:$0xff] %v4227_v26  ;;  %v4226_v25 = vmax.f32 %v3714_v1, 0.0  ;;  %v4228_v34 = vmax.f32 %v3971_v19, 0.0 }
 0x461   : > { %4482 = vst [vmem:[%s7073_s11 + $0x7e8] sm:$0xff] %v4226_v25  ;;  %4484 = vst [vmem:[%s7073_s11 + $0x7f8] sm:$0xff] %v4228_v34 }
 0x462 PF: > { %s21_s13 = sadd.s32 1, %s5137_s13  }
 0x463   : > { %p18_p4 = scmp.ge.s32.totalorder %s21_s13, 4  }
 0x465   :  { %20 = sbr.rel (!%p18_p4) target bundleno = 1 (0x1), region = 98 }

</bundles_post_ra>
